<compile_context>
chip_gen: v7x
topology: tpu7x:2x2x1
jax: 0.10.0
libtpu: 0.0.40
codegen_flags: <defaults>
</compile_context>

<pallas_src>
import functools

import jax
import jax.numpy as jnp
from jax.experimental import pallas as pl
from jax.experimental.pallas import tpu as pltpu

EPS = 1e-8        # Stochastic.reparametrize eps
BN_EPS = 1e-5     # nn.BatchNorm1d default eps
KS = (3, 5, 7)    # branch kernel sizes (conv*_1, conv*_2, conv*_3)
KMAX = 7
PAD = KMAX // 2   # every branch is evaluated on a centred 7-tap window (k<7 -> zero taps)


# ------------------------------ fused Pallas kernel --------------------------------

def encoder_kernel(x_ref, u_ref,
                   w1_ref, w2_ref, w3_ref, w4_ref, w5_ref,
                   g1_ref, b1_ref, g2_ref, b2_ref, g3_ref, b3_ref,
                   g4_ref, b4_ref, g5_ref, b5_ref,
                   wl_ref, bl_ref,
                   z_ref, la_ref,
                   a1, a2, a3, a4,
                   *, batch, lengths, ks5, lamb, training_mode):
    """Whole Encoder forward (all 3 branches, 5 conv stages, sample head) in one kernel.

    Activations are 2-D (rows = batch*position with 3-row conv padding per batch
    segment, lanes = branch-packed channels).  Conv weights arrive pre-packed as
    (7*Cin_total, 3*Cout) so each layer is one lane-dense bf16 matmul per
    (batch, pool-parity).  Conv biases are omitted — they cancel exactly under the
    batch-statistics BatchNorm that immediately follows every conv.
    """
    # Zero the intermediate buffers once so their conv-padding rows stay zero.
    a1[...] = jnp.zeros(a1.shape, a1.dtype)
    a2[...] = jnp.zeros(a2.shape, a2.dtype)
    a3[...] = jnp.zeros(a3.shape, a3.dtype)

    def conv_bn_relu_pool(in_ref, out_ref, w_ref, g_ref, beta_ref,
                          l_in, s_in, s_out, o_out):
        """Branch-packed Conv1d(pad=k//2) + BatchNorm1d(batch stats) + ReLU + MaxPool1d(2)."""
        l_out = l_in // 2
        w = w_ref[...]                                    # (7*Cin, Cout) bf16
        c_out = w.shape[1]
        s1 = jnp.zeros((1, c_out), jnp.float32)
        s2 = jnp.zeros((1, c_out), jnp.float32)
        ys = []
        for b in range(batch):
            pair = []
            for p in range(2):                            # even / odd conv output positions
                patch = jnp.concatenate(
                    [in_ref[pl.ds(b * s_in + t + p, l_out, stride=2), :]
                     for t in range(KMAX)], axis=1).astype(jnp.bfloat16)
                y = jnp.dot(patch, w, preferred_element_type=jnp.float32)
                s1 = s1 + jnp.sum(y, axis=0, keepdims=True)
                s2 = s2 + jnp.sum(y * y, axis=0, keepdims=True)
                pair.append(y)
            ys.append(pair)
        # NOTE: if l_in is odd, the MaxPool-dropped tail element is also excluded from
        # the BN statistics (exact whenever window_size is divisible by 16).
        n = float(batch * 2 * l_out)
        mean = s1 / n
        var = s2 / n - mean * mean                        # single-pass E[x^2] - E[x]^2
        inv = jax.lax.rsqrt(var + BN_EPS) * g_ref[...]
        beta = beta_ref[...]
        for b in range(batch):
            y0 = (ys[b][0] - mean) * inv + beta
            y1 = (ys[b][1] - mean) * inv + beta
            pooled = jnp.maximum(jnp.maximum(y0, y1), 0.0)    # relu ∘ maxpool(2)
            out_ref[pl.ds(b * s_out + o_out, l_out), :] = pooled

    l0, l1, l2, l3 = lengths
    conv_bn_relu_pool(x_ref, a1, w1_ref, g1_ref, b1_ref, l0, l0 + 2 * PAD, l1 + 2 * PAD, PAD)
    conv_bn_relu_pool(a1, a2, w2_ref, g2_ref, b2_ref, l1, l1 + 2 * PAD, l2 + 2 * PAD, PAD)
    conv_bn_relu_pool(a2, a3, w3_ref, g3_ref, b3_ref, l2, l2 + 2 * PAD, l3 + 2 * PAD, PAD)
    conv_bn_relu_pool(a3, a4, w4_ref, g4_ref, b4_ref, l3, l3 + 2 * PAD, ks5, 0)

    # conv5 (valid conv over the whole remaining length, weight shared across branches)
    # + bn5 + ReLU.  Its output length is exactly 1, so this IS the flattened/concat feature.
    rows = [jnp.concatenate([a4[pl.ds(b * ks5 + t, 1), :] for t in range(ks5)], axis=1)
            for b in range(batch)]
    f_in = jnp.concatenate(rows, axis=0).astype(jnp.bfloat16)      # (B, ks5*3*f4)
    y5 = jnp.dot(f_in, w5_ref[...], preferred_element_type=jnp.float32)
    m5 = jnp.mean(y5, axis=0, keepdims=True)
    v5 = jnp.mean(y5 * y5, axis=0, keepdims=True) - m5 * m5
    feat = jnp.maximum((y5 - m5) * jax.lax.rsqrt(v5 + BN_EPS) * g5_ref[...] + b5_ref[...],
                       0.0)                                         # (B, 3*f4)

    # RelaxedBernoulliSample: Linear -> binary gumbel-softmax -> sigmoid.
    log_alpha = jnp.dot(feat, wl_ref[...], preferred_element_type=jnp.float32) + bl_ref[...]
    u = jnp.clip(u_ref[...], EPS, 1.0 - EPS)
    zlogit = (log_alpha + jnp.log(u) - jnp.log(1.0 - u)) / lamb
    z = 1.0 / (1.0 + jnp.exp(-zlogit))
    if not training_mode:
        z = jnp.where(z > 0.5, jnp.ones_like(z), jnp.zeros_like(z))
    z_ref[...] = z
    la_ref[...] = log_alpha


# ------------------------------ pallas_call wrapper ---------------------------------

def _vmem():
    return pl.BlockSpec(memory_space=pltpu.MemorySpace.VMEM)


def encoder_forward(params, x, u, lamb, training_mode):
    b, c0, l0 = x.shape
    f1, f2, f3, f4 = params["filters"]
    latent = params["wl"].shape[1]
    ks5 = params["ks5"]
    lengths = (l0, l0 // 2, l0 // 4, l0 // 8)
    l4 = lengths[3] // 2
    assert l4 == ks5 and l4 >= 1, "window_size must be >= 16"

    # One-time host prep: NCL -> (batch*position, channel) rows with the 3-row
    # zero conv padding baked into each batch segment.  Everything after this
    # stays in VMEM inside the single fused kernel.
    xp = jnp.pad(jnp.transpose(x, (0, 2, 1)).astype(jnp.float32),
                 ((0, 0), (PAD, PAD), (0, 0))).reshape(b * (l0 + 2 * PAD), c0)

    kern = functools.partial(encoder_kernel, batch=b, lengths=lengths, ks5=ks5,
                             lamb=float(lamb), training_mode=bool(training_mode))
    # TODO(synk): on v7x, split the work (e.g. batch halves) over a parallel grid axis
    # to use both TensorCores; BN's cross-batch coupling needs a two-pass reduction.
    z, log_alpha = pl.pallas_call(
        kern,
        out_shape=(jax.ShapeDtypeStruct((b, latent), jnp.float32),
                   jax.ShapeDtypeStruct((b, latent), jnp.float32)),
        in_specs=[_vmem() for _ in range(19)],
        out_specs=(_vmem(), _vmem()),
        scratch_shapes=[
            pltpu.VMEM((b * (lengths[1] + 2 * PAD), 3 * f1), jnp.float32),
            pltpu.VMEM((b * (lengths[2] + 2 * PAD), 3 * f2), jnp.float32),
            pltpu.VMEM((b * (lengths[3] + 2 * PAD), 3 * f3), jnp.float32),
            pltpu.VMEM((b * ks5, 3 * f4), jnp.float32),
        ],
        compiler_params=pltpu.CompilerParams(vmem_limit_bytes=32 * 1024 * 1024),
    )(xp, u,
      params["w1"], params["w2"], params["w3"], params["w4"], params["w5"],
      *params["bn1"], *params["bn2"], *params["bn3"], *params["bn4"], *params["bn5"],
      params["wl"], params["bl"])
    # TODO(synk): regress=True hierarchical path (sample1/sample2 + combine_groups)
    # is not implemented; this is the regress=False forward.
    return z, log_alpha


# ------------------------------ parameter packing ------------------------------------

def init_encoder_params(key, num_param, latent_dim, window_size,
                        filters=(8, 16, 32, 64), scale=0.1):
    """Random params pre-packed for the fused kernel.

    Conv weights become (7*Cin_total, 3*Cout) im2col matrices: the three
    kernel-size branches are concatenated along the output-channel (lane) axis,
    k<7 kernels are centred inside the 7-tap window, and layers 2-4 use a
    block-diagonal layout so each branch only sees its own channels.  Conv biases
    are omitted (they cancel exactly under batch-statistics BatchNorm).
    """
    assert window_size >= 16
    f1, f2, f3, f4 = filters
    ks5 = window_size // 16                 # == int(np.floor(window_size / 16))
    params = {"filters": filters, "ks5": ks5}

    def branch_block(k_, c_out, c_in, k):
        return scale * jax.random.normal(k_, (c_out, c_in, k), jnp.float32)

    # layer 1: all branches read the same raw input -> dense column concat.
    key, *bk = jax.random.split(key, 4)
    w1 = jnp.zeros((KMAX * num_param, 3 * f1), jnp.float32)
    for bi, (k, kk) in enumerate(zip(KS, bk)):
        w = branch_block(kk, f1, num_param, k)
        off = PAD - k // 2
        for t in range(k):
            w1 = w1.at[(off + t) * num_param:(off + t + 1) * num_param,
                       bi * f1:(bi + 1) * f1].set(w[:, :, t].T)
    params["w1"] = w1.astype(jnp.bfloat16)

    # layers 2-4: block-diagonal across branches.
    for li, (c_in, c_out) in enumerate(((f1, f2), (f2, f3), (f3, f4)), start=2):
        key, *bk = jax.random.split(key, 4)
        wp = jnp.zeros((KMAX * 3 * c_in, 3 * c_out), jnp.float32)
        for bi, (k, kk) in enumerate(zip(KS, bk)):
            w = branch_block(kk, c_out, c_in, k)
            off = PAD - k // 2
            for t in range(k):
                r0 = (off + t) * 3 * c_in + bi * c_in
                wp = wp.at[r0:r0 + c_in, bi * c_out:(bi + 1) * c_out].set(w[:, :, t].T)
        params[f"w{li}"] = wp.astype(jnp.bfloat16)

    # conv5: one weight shared by all three branches (repeated diagonal blocks).
    key, k5 = jax.random.split(key)
    w5 = branch_block(k5, f4, f4, ks5)
    w5p = jnp.zeros((ks5 * 3 * f4, 3 * f4), jnp.float32)
    for bi in range(3):
        for t in range(ks5):
            r0 = t * 3 * f4 + bi * f4
            w5p = w5p.at[r0:r0 + f4, bi * f4:(bi + 1) * f4].set(w5[:, :, t].T)
    params["w5"] = w5p.astype(jnp.bfloat16)

    # BatchNorm affine params (bn1..bn4, bn5), shared across branches -> tiled 3x.
    for li, c in enumerate((f1, f2, f3, f4, f4), start=1):
        key, kg, kb = jax.random.split(key, 3)
        gamma = 1.0 + scale * jax.random.normal(kg, (1, c), jnp.float32)
        beta = scale * jax.random.normal(kb, (1, c), jnp.float32)
        params[f"bn{li}"] = (jnp.tile(gamma, (1, 3)), jnp.tile(beta, (1, 3)))

    # RelaxedBernoulliSample's Linear (bias kept; it is not followed by BN).
    key, kw, kb = jax.random.split(key, 3)
    params["wl"] = scale * jax.random.normal(kw, (3 * f4, latent_dim), jnp.float32)
    params["bl"] = scale * jax.random.normal(kb, (1, latent_dim), jnp.float32)
    return params


if __name__ == "__main__":
    B, num_param, window_size = 2, 4, 16
    latent_dim, lamb = 16, 0.5
    key = jax.random.PRNGKey(0)
    key, kp, kx, ku = jax.random.split(key, 4)
    params = init_encoder_params(kp, num_param, latent_dim, window_size)
    x = jax.random.normal(kx, (B, num_param, window_size), jnp.float32)
    # u plays the role of torch.rand in Stochastic.reparametrize
    u = jax.random.uniform(ku, (B, latent_dim), jnp.float32)
    z, log_alpha = encoder_forward(params, x, u, lamb, training_mode=True)
    jax.block_until_ready((z, log_alpha))
    assert z.shape == (B, latent_dim) and log_alpha.shape == (B, latent_dim)
    print("KERNEL_OK")
</pallas_src>

<mosaic_0001>
module attributes {stable_mosaic.version = 11 : i64} {
  func.func @encoder_kernel(%arg0: memref<44x4xf32, #tpu.memory_space<vmem>>, %arg1: memref<2x16xf32, #tpu.memory_space<vmem>>, %arg2: memref<28x24xbf16, #tpu.memory_space<vmem>>, %arg3: memref<168x48xbf16, #tpu.memory_space<vmem>>, %arg4: memref<336x96xbf16, #tpu.memory_space<vmem>>, %arg5: memref<672x192xbf16, #tpu.memory_space<vmem>>, %arg6: memref<192x192xbf16, #tpu.memory_space<vmem>>, %arg7: memref<1x24xf32, #tpu.memory_space<vmem>>, %arg8: memref<1x24xf32, #tpu.memory_space<vmem>>, %arg9: memref<1x48xf32, #tpu.memory_space<vmem>>, %arg10: memref<1x48xf32, #tpu.memory_space<vmem>>, %arg11: memref<1x96xf32, #tpu.memory_space<vmem>>, %arg12: memref<1x96xf32, #tpu.memory_space<vmem>>, %arg13: memref<1x192xf32, #tpu.memory_space<vmem>>, %arg14: memref<1x192xf32, #tpu.memory_space<vmem>>, %arg15: memref<1x192xf32, #tpu.memory_space<vmem>>, %arg16: memref<1x192xf32, #tpu.memory_space<vmem>>, %arg17: memref<192x16xf32, #tpu.memory_space<vmem>>, %arg18: memref<1x16xf32, #tpu.memory_space<vmem>>, %arg19: memref<2x16xf32, #tpu.memory_space<vmem>>, %arg20: memref<2x16xf32, #tpu.memory_space<vmem>>, %arg21: memref<28x24xf32, #tpu.memory_space<vmem>>, %arg22: memref<20x48xf32, #tpu.memory_space<vmem>>, %arg23: memref<16x96xf32, #tpu.memory_space<vmem>>, %arg24: memref<2x192xf32, #tpu.memory_space<vmem>>) attributes {dimension_semantics = [], scalar_prefetch = 0 : i64, scratch_operands = 4 : i64, tpu.core_type = #tpu.core_type<tc>} {
    %cst = arith.constant 0.000000e+00 : f32
    %0 = vector.broadcast %cst : f32 to vector<28x24xf32>
    %c0 = arith.constant 0 : index
    %c0_0 = arith.constant 0 : index
    %1 = vector.load %arg21[%c0, %c0_0] : memref<28x24xf32, #tpu.memory_space<vmem>>, vector<28x24xf32>
    tpu.vector_store %arg21[%c0, %c0_0], %0 {strides = array<i32>} : memref<28x24xf32, #tpu.memory_space<vmem>>, vector<28x24xf32>,
    %cst_1 = arith.constant 0.000000e+00 : f32
    %2 = vector.broadcast %cst_1 : f32 to vector<20x48xf32>
    %c0_2 = arith.constant 0 : index
    %c0_3 = arith.constant 0 : index
    %3 = vector.load %arg22[%c0_2, %c0_3] : memref<20x48xf32, #tpu.memory_space<vmem>>, vector<20x48xf32>
    tpu.vector_store %arg22[%c0_2, %c0_3], %2 {strides = array<i32>} : memref<20x48xf32, #tpu.memory_space<vmem>>, vector<20x48xf32>,
    %cst_4 = arith.constant 0.000000e+00 : f32
    %4 = vector.broadcast %cst_4 : f32 to vector<16x96xf32>
    %c0_5 = arith.constant 0 : index
    %c0_6 = arith.constant 0 : index
    %5 = vector.load %arg23[%c0_5, %c0_6] : memref<16x96xf32, #tpu.memory_space<vmem>>, vector<16x96xf32>
    tpu.vector_store %arg23[%c0_5, %c0_6], %4 {strides = array<i32>} : memref<16x96xf32, #tpu.memory_space<vmem>>, vector<16x96xf32>,
    %c0_7 = arith.constant 0 : index
    %c0_8 = arith.constant 0 : index
    %6 = vector.load %arg2[%c0_7, %c0_8] : memref<28x24xbf16, #tpu.memory_space<vmem>>, vector<28x24xbf16>
    %cst_9 = arith.constant 0.000000e+00 : f32
    %7 = vector.broadcast %cst_9 : f32 to vector<1x24xf32>
    %cst_10 = arith.constant 0.000000e+00 : f32
    %8 = vector.broadcast %cst_10 : f32 to vector<1x24xf32>
    %c0_11 = arith.constant 0 : index
    %c0_12 = arith.constant 0 : index
    %9 = tpu.strided_load %arg0[%c0_11, %c0_12] {strides = array<i32: 2, 1>} : memref<44x4xf32, #tpu.memory_space<vmem>>, vector<8x4xf32>
    %c1 = arith.constant 1 : index
    %c0_13 = arith.constant 0 : index
    %10 = tpu.strided_load %arg0[%c1, %c0_13] {strides = array<i32: 2, 1>} : memref<44x4xf32, #tpu.memory_space<vmem>>, vector<8x4xf32>
    %c2 = arith.constant 2 : index
    %c0_14 = arith.constant 0 : index
    %11 = tpu.strided_load %arg0[%c2, %c0_14] {strides = array<i32: 2, 1>} : memref<44x4xf32, #tpu.memory_space<vmem>>, vector<8x4xf32>
    %c3 = arith.constant 3 : index
    %c0_15 = arith.constant 0 : index
    %12 = tpu.strided_load %arg0[%c3, %c0_15] {strides = array<i32: 2, 1>} : memref<44x4xf32, #tpu.memory_space<vmem>>, vector<8x4xf32>
    %c4 = arith.constant 4 : index
    %c0_16 = arith.constant 0 : index
    %13 = tpu.strided_load %arg0[%c4, %c0_16] {strides = array<i32: 2, 1>} : memref<44x4xf32, #tpu.memory_space<vmem>>, vector<8x4xf32>
    %c5 = arith.constant 5 : index
    %c0_17 = arith.constant 0 : index
    %14 = tpu.strided_load %arg0[%c5, %c0_17] {strides = array<i32: 2, 1>} : memref<44x4xf32, #tpu.memory_space<vmem>>, vector<8x4xf32>
    %c6 = arith.constant 6 : index
    %c0_18 = arith.constant 0 : index
    %15 = tpu.strided_load %arg0[%c6, %c0_18] {strides = array<i32: 2, 1>} : memref<44x4xf32, #tpu.memory_space<vmem>>, vector<8x4xf32>
    %16 = tpu.concatenate %9, %10, %11, %12, %13, %14, %15 in 1 : vector<8x4xf32>, vector<8x4xf32>, vector<8x4xf32>, vector<8x4xf32>, vector<8x4xf32>, vector<8x4xf32>, vector<8x4xf32> -> vector<8x28xf32>
    %17 = arith.truncf %16 : vector<8x28xf32> to vector<8x28xbf16>
    %cst_19 = arith.constant dense<0.000000e+00> : vector<8x24xf32>
    %18 = tpu.matmul %17, %6, %cst_19 {dimension_numbers = #tpu.dot_dimension_numbers<[1], [0], [0], [1], [0, 0, 1, 1], [], []>} : vector<8x28xbf16>, vector<28x24xbf16>, vector<8x24xf32> -> vector<8x24xf32>
    %cst_20 = arith.constant dense<0.000000e+00> : vector<24xf32>
    %19 = vector.multi_reduction <add>, %18, %cst_20 [0] : vector<8x24xf32> to vector<24xf32>
    %20 = vector.shape_cast %19 : vector<24xf32> to vector<1x24xf32>
    %21 = arith.addf %7, %20 : vector<1x24xf32>
    %22 = arith.mulf %18, %18 : vector<8x24xf32>
    %cst_21 = arith.constant dense<0.000000e+00> : vector<24xf32>
    %23 = vector.multi_reduction <add>, %22, %cst_21 [0] : vector<8x24xf32> to vector<24xf32>
    %24 = vector.shape_cast %23 : vector<24xf32> to vector<1x24xf32>
    %25 = arith.addf %8, %24 : vector<1x24xf32>
    %c1_22 = arith.constant 1 : index
    %c0_23 = arith.constant 0 : index
    %26 = tpu.strided_load %arg0[%c1_22, %c0_23] {strides = array<i32: 2, 1>} : memref<44x4xf32, #tpu.memory_space<vmem>>, vector<8x4xf32>
    %c2_24 = arith.constant 2 : index
    %c0_25 = arith.constant 0 : index
    %27 = tpu.strided_load %arg0[%c2_24, %c0_25] {strides = array<i32: 2, 1>} : memref<44x4xf32, #tpu.memory_space<vmem>>, vector<8x4xf32>
    %c3_26 = arith.constant 3 : index
    %c0_27 = arith.constant 0 : index
    %28 = tpu.strided_load %arg0[%c3_26, %c0_27] {strides = array<i32: 2, 1>} : memref<44x4xf32, #tpu.memory_space<vmem>>, vector<8x4xf32>
    %c4_28 = arith.constant 4 : index
    %c0_29 = arith.constant 0 : index
    %29 = tpu.strided_load %arg0[%c4_28, %c0_29] {strides = array<i32: 2, 1>} : memref<44x4xf32, #tpu.memory_space<vmem>>, vector<8x4xf32>
    %c5_30 = arith.constant 5 : index
    %c0_31 = arith.constant 0 : index
    %30 = tpu.strided_load %arg0[%c5_30, %c0_31] {strides = array<i32: 2, 1>} : memref<44x4xf32, #tpu.memory_space<vmem>>, vector<8x4xf32>
    %c6_32 = arith.constant 6 : index
    %c0_33 = arith.constant 0 : index
    %31 = tpu.strided_load %arg0[%c6_32, %c0_33] {strides = array<i32: 2, 1>} : memref<44x4xf32, #tpu.memory_space<vmem>>, vector<8x4xf32>
    %c7 = arith.constant 7 : index
    %c0_34 = arith.constant 0 : index
    %32 = tpu.strided_load %arg0[%c7, %c0_34] {strides = array<i32: 2, 1>} : memref<44x4xf32, #tpu.memory_space<vmem>>, vector<8x4xf32>
    %33 = tpu.concatenate %26, %27, %28, %29, %30, %31, %32 in 1 : vector<8x4xf32>, vector<8x4xf32>, vector<8x4xf32>, vector<8x4xf32>, vector<8x4xf32>, vector<8x4xf32>, vector<8x4xf32> -> vector<8x28xf32>
    %34 = arith.truncf %33 : vector<8x28xf32> to vector<8x28xbf16>
    %cst_35 = arith.constant dense<0.000000e+00> : vector<8x24xf32>
    %35 = tpu.matmul %34, %6, %cst_35 {dimension_numbers = #tpu.dot_dimension_numbers<[1], [0], [0], [1], [0, 0, 1, 1], [], []>} : vector<8x28xbf16>, vector<28x24xbf16>, vector<8x24xf32> -> vector<8x24xf32>
    %cst_36 = arith.constant dense<0.000000e+00> : vector<24xf32>
    %36 = vector.multi_reduction <add>, %35, %cst_36 [0] : vector<8x24xf32> to vector<24xf32>
    %37 = vector.shape_cast %36 : vector<24xf32> to vector<1x24xf32>
    %38 = arith.addf %21, %37 : vector<1x24xf32>
    %39 = arith.mulf %35, %35 : vector<8x24xf32>
    %cst_37 = arith.constant dense<0.000000e+00> : vector<24xf32>
    %40 = vector.multi_reduction <add>, %39, %cst_37 [0] : vector<8x24xf32> to vector<24xf32>
    %41 = vector.shape_cast %40 : vector<24xf32> to vector<1x24xf32>
    %42 = arith.addf %25, %41 : vector<1x24xf32>
    %c22 = arith.constant 22 : index
    %c0_38 = arith.constant 0 : index
    %43 = tpu.strided_load %arg0[%c22, %c0_38] {strides = array<i32: 2, 1>} : memref<44x4xf32, #tpu.memory_space<vmem>>, vector<8x4xf32>
    %c23 = arith.constant 23 : index
    %c0_39 = arith.constant 0 : index
    %44 = tpu.strided_load %arg0[%c23, %c0_39] {strides = array<i32: 2, 1>} : memref<44x4xf32, #tpu.memory_space<vmem>>, vector<8x4xf32>
    %c24 = arith.constant 24 : index
    %c0_40 = arith.constant 0 : index
    %45 = tpu.strided_load %arg0[%c24, %c0_40] {strides = array<i32: 2, 1>} : memref<44x4xf32, #tpu.memory_space<vmem>>, vector<8x4xf32>
    %c25 = arith.constant 25 : index
    %c0_41 = arith.constant 0 : index
    %46 = tpu.strided_load %arg0[%c25, %c0_41] {strides = array<i32: 2, 1>} : memref<44x4xf32, #tpu.memory_space<vmem>>, vector<8x4xf32>
    %c26 = arith.constant 26 : index
    %c0_42 = arith.constant 0 : index
    %47 = tpu.strided_load %arg0[%c26, %c0_42] {strides = array<i32: 2, 1>} : memref<44x4xf32, #tpu.memory_space<vmem>>, vector<8x4xf32>
    %c27 = arith.constant 27 : index
    %c0_43 = arith.constant 0 : index
    %48 = tpu.strided_load %arg0[%c27, %c0_43] {strides = array<i32: 2, 1>} : memref<44x4xf32, #tpu.memory_space<vmem>>, vector<8x4xf32>
    %c28 = arith.constant 28 : index
    %c0_44 = arith.constant 0 : index
    %49 = tpu.strided_load %arg0[%c28, %c0_44] {strides = array<i32: 2, 1>} : memref<44x4xf32, #tpu.memory_space<vmem>>, vector<8x4xf32>
    %50 = tpu.concatenate %43, %44, %45, %46, %47, %48, %49 in 1 : vector<8x4xf32>, vector<8x4xf32>, vector<8x4xf32>, vector<8x4xf32>, vector<8x4xf32>, vector<8x4xf32>, vector<8x4xf32> -> vector<8x28xf32>
    %51 = arith.truncf %50 : vector<8x28xf32> to vector<8x28xbf16>
    %cst_45 = arith.constant dense<0.000000e+00> : vector<8x24xf32>
    %52 = tpu.matmul %51, %6, %cst_45 {dimension_numbers = #tpu.dot_dimension_numbers<[1], [0], [0], [1], [0, 0, 1, 1], [], []>} : vector<8x28xbf16>, vector<28x24xbf16>, vector<8x24xf32> -> vector<8x24xf32>
    %cst_46 = arith.constant dense<0.000000e+00> : vector<24xf32>
    %53 = vector.multi_reduction <add>, %52, %cst_46 [0] : vector<8x24xf32> to vector<24xf32>
    %54 = vector.shape_cast %53 : vector<24xf32> to vector<1x24xf32>
    %55 = arith.addf %38, %54 : vector<1x24xf32>
    %56 = arith.mulf %52, %52 : vector<8x24xf32>
    %cst_47 = arith.constant dense<0.000000e+00> : vector<24xf32>
    %57 = vector.multi_reduction <add>, %56, %cst_47 [0] : vector<8x24xf32> to vector<24xf32>
    %58 = vector.shape_cast %57 : vector<24xf32> to vector<1x24xf32>
    %59 = arith.addf %42, %58 : vector<1x24xf32>
    %c23_48 = arith.constant 23 : index
    %c0_49 = arith.constant 0 : index
    %60 = tpu.strided_load %arg0[%c23_48, %c0_49] {strides = array<i32: 2, 1>} : memref<44x4xf32, #tpu.memory_space<vmem>>, vector<8x4xf32>
    %c24_50 = arith.constant 24 : index
    %c0_51 = arith.constant 0 : index
    %61 = tpu.strided_load %arg0[%c24_50, %c0_51] {strides = array<i32: 2, 1>} : memref<44x4xf32, #tpu.memory_space<vmem>>, vector<8x4xf32>
    %c25_52 = arith.constant 25 : index
    %c0_53 = arith.constant 0 : index
    %62 = tpu.strided_load %arg0[%c25_52, %c0_53] {strides = array<i32: 2, 1>} : memref<44x4xf32, #tpu.memory_space<vmem>>, vector<8x4xf32>
    %c26_54 = arith.constant 26 : index
    %c0_55 = arith.constant 0 : index
    %63 = tpu.strided_load %arg0[%c26_54, %c0_55] {strides = array<i32: 2, 1>} : memref<44x4xf32, #tpu.memory_space<vmem>>, vector<8x4xf32>
    %c27_56 = arith.constant 27 : index
    %c0_57 = arith.constant 0 : index
    %64 = tpu.strided_load %arg0[%c27_56, %c0_57] {strides = array<i32: 2, 1>} : memref<44x4xf32, #tpu.memory_space<vmem>>, vector<8x4xf32>
    %c28_58 = arith.constant 28 : index
    %c0_59 = arith.constant 0 : index
    %65 = tpu.strided_load %arg0[%c28_58, %c0_59] {strides = array<i32: 2, 1>} : memref<44x4xf32, #tpu.memory_space<vmem>>, vector<8x4xf32>
    %c29 = arith.constant 29 : index
    %c0_60 = arith.constant 0 : index
    %66 = tpu.strided_load %arg0[%c29, %c0_60] {strides = array<i32: 2, 1>} : memref<44x4xf32, #tpu.memory_space<vmem>>, vector<8x4xf32>
    %67 = tpu.concatenate %60, %61, %62, %63, %64, %65, %66 in 1 : vector<8x4xf32>, vector<8x4xf32>, vector<8x4xf32>, vector<8x4xf32>, vector<8x4xf32>, vector<8x4xf32>, vector<8x4xf32> -> vector<8x28xf32>
    %68 = arith.truncf %67 : vector<8x28xf32> to vector<8x28xbf16>
    %cst_61 = arith.constant dense<0.000000e+00> : vector<8x24xf32>
    %69 = tpu.matmul %68, %6, %cst_61 {dimension_numbers = #tpu.dot_dimension_numbers<[1], [0], [0], [1], [0, 0, 1, 1], [], []>} : vector<8x28xbf16>, vector<28x24xbf16>, vector<8x24xf32> -> vector<8x24xf32>
    %cst_62 = arith.constant dense<0.000000e+00> : vector<24xf32>
    %70 = vector.multi_reduction <add>, %69, %cst_62 [0] : vector<8x24xf32> to vector<24xf32>
    %71 = vector.shape_cast %70 : vector<24xf32> to vector<1x24xf32>
    %72 = arith.addf %55, %71 : vector<1x24xf32>
    %73 = arith.mulf %69, %69 : vector<8x24xf32>
    %cst_63 = arith.constant dense<0.000000e+00> : vector<24xf32>
    %74 = vector.multi_reduction <add>, %73, %cst_63 [0] : vector<8x24xf32> to vector<24xf32>
    %75 = vector.shape_cast %74 : vector<24xf32> to vector<1x24xf32>
    %76 = arith.addf %59, %75 : vector<1x24xf32>
    %cst_64 = arith.constant 3.200000e+01 : f32
    %77 = vector.broadcast %cst_64 : f32 to vector<1x24xf32>
    %78 = arith.divf %72, %77 : vector<1x24xf32>
    %cst_65 = arith.constant 3.200000e+01 : f32
    %79 = vector.broadcast %cst_65 : f32 to vector<1x24xf32>
    %80 = arith.divf %76, %79 : vector<1x24xf32>
    %81 = arith.mulf %78, %78 : vector<1x24xf32>
    %82 = arith.subf %80, %81 : vector<1x24xf32>
    %cst_66 = arith.constant 9.99999974E-6 : f32
    %83 = vector.broadcast %cst_66 : f32 to vector<1x24xf32>
    %84 = arith.addf %82, %83 : vector<1x24xf32>
    %85 = math.rsqrt %84 : vector<1x24xf32>
    %c0_67 = arith.constant 0 : index
    %c0_68 = arith.constant 0 : index
    %86 = vector.load %arg7[%c0_67, %c0_68] : memref<1x24xf32, #tpu.memory_space<vmem>>, vector<1x24xf32>
    %87 = arith.mulf %85, %86 : vector<1x24xf32>
    %c0_69 = arith.constant 0 : index
    %c0_70 = arith.constant 0 : index
    %88 = vector.load %arg8[%c0_69, %c0_70] : memref<1x24xf32, #tpu.memory_space<vmem>>, vector<1x24xf32>
    %89 = vector.broadcast %78 : vector<1x24xf32> to vector<8x24xf32>
    %90 = arith.subf %18, %89 : vector<8x24xf32>
    %91 = vector.broadcast %87 : vector<1x24xf32> to vector<8x24xf32>
    %92 = arith.mulf %90, %91 : vector<8x24xf32>
    %93 = vector.broadcast %88 : vector<1x24xf32> to vector<8x24xf32>
    %94 = arith.addf %92, %93 : vector<8x24xf32>
    %95 = vector.broadcast %78 : vector<1x24xf32> to vector<8x24xf32>
    %96 = arith.subf %35, %95 : vector<8x24xf32>
    %97 = vector.broadcast %87 : vector<1x24xf32> to vector<8x24xf32>
    %98 = arith.mulf %96, %97 : vector<8x24xf32>
    %99 = vector.broadcast %88 : vector<1x24xf32> to vector<8x24xf32>
    %100 = arith.addf %98, %99 : vector<8x24xf32>
    %101 = arith.maximumf %94, %100 : vector<8x24xf32>
    %cst_71 = arith.constant 0.000000e+00 : f32
    %102 = vector.broadcast %cst_71 : f32 to vector<8x24xf32>
    %103 = arith.maximumf %101, %102 : vector<8x24xf32>
    %c3_72 = arith.constant 3 : index
    %c0_73 = arith.constant 0 : index
    %104 = vector.load %arg21[%c3_72, %c0_73] : memref<28x24xf32, #tpu.memory_space<vmem>>, vector<8x24xf32>
    tpu.vector_store %arg21[%c3_72, %c0_73], %103 {strides = array<i32>} : memref<28x24xf32, #tpu.memory_space<vmem>>, vector<8x24xf32>,
    %105 = vector.broadcast %78 : vector<1x24xf32> to vector<8x24xf32>
    %106 = arith.subf %52, %105 : vector<8x24xf32>
    %107 = vector.broadcast %87 : vector<1x24xf32> to vector<8x24xf32>
    %108 = arith.mulf %106, %107 : vector<8x24xf32>
    %109 = vector.broadcast %88 : vector<1x24xf32> to vector<8x24xf32>
    %110 = arith.addf %108, %109 : vector<8x24xf32>
    %111 = vector.broadcast %78 : vector<1x24xf32> to vector<8x24xf32>
    %112 = arith.subf %69, %111 : vector<8x24xf32>
    %113 = vector.broadcast %87 : vector<1x24xf32> to vector<8x24xf32>
    %114 = arith.mulf %112, %113 : vector<8x24xf32>
    %115 = vector.broadcast %88 : vector<1x24xf32> to vector<8x24xf32>
    %116 = arith.addf %114, %115 : vector<8x24xf32>
    %117 = arith.maximumf %110, %116 : vector<8x24xf32>
    %cst_74 = arith.constant 0.000000e+00 : f32
    %118 = vector.broadcast %cst_74 : f32 to vector<8x24xf32>
    %119 = arith.maximumf %117, %118 : vector<8x24xf32>
    %c17 = arith.constant 17 : index
    %c0_75 = arith.constant 0 : index
    %120 = vector.load %arg21[%c17, %c0_75] : memref<28x24xf32, #tpu.memory_space<vmem>>, vector<8x24xf32>
    tpu.vector_store %arg21[%c17, %c0_75], %119 {strides = array<i32>} : memref<28x24xf32, #tpu.memory_space<vmem>>, vector<8x24xf32>,
    %c0_76 = arith.constant 0 : index
    %c0_77 = arith.constant 0 : index
    %121 = vector.load %arg3[%c0_76, %c0_77] : memref<168x48xbf16, #tpu.memory_space<vmem>>, vector<168x48xbf16>
    %cst_78 = arith.constant 0.000000e+00 : f32
    %122 = vector.broadcast %cst_78 : f32 to vector<1x48xf32>
    %cst_79 = arith.constant 0.000000e+00 : f32
    %123 = vector.broadcast %cst_79 : f32 to vector<1x48xf32>
    %c0_80 = arith.constant 0 : index
    %c0_81 = arith.constant 0 : index
    %124 = tpu.strided_load %arg21[%c0_80, %c0_81] {strides = array<i32: 2, 1>} : memref<28x24xf32, #tpu.memory_space<vmem>>, vector<4x24xf32>
    %c1_82 = arith.constant 1 : index
    %c0_83 = arith.constant 0 : index
    %125 = tpu.strided_load %arg21[%c1_82, %c0_83] {strides = array<i32: 2, 1>} : memref<28x24xf32, #tpu.memory_space<vmem>>, vector<4x24xf32>
    %c2_84 = arith.constant 2 : index
    %c0_85 = arith.constant 0 : index
    %126 = tpu.strided_load %arg21[%c2_84, %c0_85] {strides = array<i32: 2, 1>} : memref<28x24xf32, #tpu.memory_space<vmem>>, vector<4x24xf32>
    %c3_86 = arith.constant 3 : index
    %c0_87 = arith.constant 0 : index
    %127 = tpu.strided_load %arg21[%c3_86, %c0_87] {strides = array<i32: 2, 1>} : memref<28x24xf32, #tpu.memory_space<vmem>>, vector<4x24xf32>
    %c4_88 = arith.constant 4 : index
    %c0_89 = arith.constant 0 : index
    %128 = tpu.strided_load %arg21[%c4_88, %c0_89] {strides = array<i32: 2, 1>} : memref<28x24xf32, #tpu.memory_space<vmem>>, vector<4x24xf32>
    %c5_90 = arith.constant 5 : index
    %c0_91 = arith.constant 0 : index
    %129 = tpu.strided_load %arg21[%c5_90, %c0_91] {strides = array<i32: 2, 1>} : memref<28x24xf32, #tpu.memory_space<vmem>>, vector<4x24xf32>
    %c6_92 = arith.constant 6 : index
    %c0_93 = arith.constant 0 : index
    %130 = tpu.strided_load %arg21[%c6_92, %c0_93] {strides = array<i32: 2, 1>} : memref<28x24xf32, #tpu.memory_space<vmem>>, vector<4x24xf32>
    %131 = tpu.concatenate %124, %125, %126, %127, %128, %129, %130 in 1 : vector<4x24xf32>, vector<4x24xf32>, vector<4x24xf32>, vector<4x24xf32>, vector<4x24xf32>, vector<4x24xf32>, vector<4x24xf32> -> vector<4x168xf32>
    %132 = arith.truncf %131 : vector<4x168xf32> to vector<4x168xbf16>
    %cst_94 = arith.constant dense<0.000000e+00> : vector<4x48xf32>
    %133 = tpu.matmul %132, %121, %cst_94 {dimension_numbers = #tpu.dot_dimension_numbers<[1], [0], [0], [1], [0, 0, 1, 1], [], []>} : vector<4x168xbf16>, vector<168x48xbf16>, vector<4x48xf32> -> vector<4x48xf32>
    %cst_95 = arith.constant dense<0.000000e+00> : vector<48xf32>
    %134 = vector.multi_reduction <add>, %133, %cst_95 [0] : vector<4x48xf32> to vector<48xf32>
    %135 = vector.shape_cast %134 : vector<48xf32> to vector<1x48xf32>
    %136 = arith.addf %122, %135 : vector<1x48xf32>
    %137 = arith.mulf %133, %133 : vector<4x48xf32>
    %cst_96 = arith.constant dense<0.000000e+00> : vector<48xf32>
    %138 = vector.multi_reduction <add>, %137, %cst_96 [0] : vector<4x48xf32> to vector<48xf32>
    %139 = vector.shape_cast %138 : vector<48xf32> to vector<1x48xf32>
    %140 = arith.addf %123, %139 : vector<1x48xf32>
    %c1_97 = arith.constant 1 : index
    %c0_98 = arith.constant 0 : index
    %141 = tpu.strided_load %arg21[%c1_97, %c0_98] {strides = array<i32: 2, 1>} : memref<28x24xf32, #tpu.memory_space<vmem>>, vector<4x24xf32>
    %c2_99 = arith.constant 2 : index
    %c0_100 = arith.constant 0 : index
    %142 = tpu.strided_load %arg21[%c2_99, %c0_100] {strides = array<i32: 2, 1>} : memref<28x24xf32, #tpu.memory_space<vmem>>, vector<4x24xf32>
    %c3_101 = arith.constant 3 : index
    %c0_102 = arith.constant 0 : index
    %143 = tpu.strided_load %arg21[%c3_101, %c0_102] {strides = array<i32: 2, 1>} : memref<28x24xf32, #tpu.memory_space<vmem>>, vector<4x24xf32>
    %c4_103 = arith.constant 4 : index
    %c0_104 = arith.constant 0 : index
    %144 = tpu.strided_load %arg21[%c4_103, %c0_104] {strides = array<i32: 2, 1>} : memref<28x24xf32, #tpu.memory_space<vmem>>, vector<4x24xf32>
    %c5_105 = arith.constant 5 : index
    %c0_106 = arith.constant 0 : index
    %145 = tpu.strided_load %arg21[%c5_105, %c0_106] {strides = array<i32: 2, 1>} : memref<28x24xf32, #tpu.memory_space<vmem>>, vector<4x24xf32>
    %c6_107 = arith.constant 6 : index
    %c0_108 = arith.constant 0 : index
    %146 = tpu.strided_load %arg21[%c6_107, %c0_108] {strides = array<i32: 2, 1>} : memref<28x24xf32, #tpu.memory_space<vmem>>, vector<4x24xf32>
    %c7_109 = arith.constant 7 : index
    %c0_110 = arith.constant 0 : index
    %147 = tpu.strided_load %arg21[%c7_109, %c0_110] {strides = array<i32: 2, 1>} : memref<28x24xf32, #tpu.memory_space<vmem>>, vector<4x24xf32>
    %148 = tpu.concatenate %141, %142, %143, %144, %145, %146, %147 in 1 : vector<4x24xf32>, vector<4x24xf32>, vector<4x24xf32>, vector<4x24xf32>, vector<4x24xf32>, vector<4x24xf32>, vector<4x24xf32> -> vector<4x168xf32>
    %149 = arith.truncf %148 : vector<4x168xf32> to vector<4x168xbf16>
    %cst_111 = arith.constant dense<0.000000e+00> : vector<4x48xf32>
    %150 = tpu.matmul %149, %121, %cst_111 {dimension_numbers = #tpu.dot_dimension_numbers<[1], [0], [0], [1], [0, 0, 1, 1], [], []>} : vector<4x168xbf16>, vector<168x48xbf16>, vector<4x48xf32> -> vector<4x48xf32>
    %cst_112 = arith.constant dense<0.000000e+00> : vector<48xf32>
    %151 = vector.multi_reduction <add>, %150, %cst_112 [0] : vector<4x48xf32> to vector<48xf32>
    %152 = vector.shape_cast %151 : vector<48xf32> to vector<1x48xf32>
    %153 = arith.addf %136, %152 : vector<1x48xf32>
    %154 = arith.mulf %150, %150 : vector<4x48xf32>
    %cst_113 = arith.constant dense<0.000000e+00> : vector<48xf32>
    %155 = vector.multi_reduction <add>, %154, %cst_113 [0] : vector<4x48xf32> to vector<48xf32>
    %156 = vector.shape_cast %155 : vector<48xf32> to vector<1x48xf32>
    %157 = arith.addf %140, %156 : vector<1x48xf32>
    %c14 = arith.constant 14 : index
    %c0_114 = arith.constant 0 : index
    %158 = tpu.strided_load %arg21[%c14, %c0_114] {strides = array<i32: 2, 1>} : memref<28x24xf32, #tpu.memory_space<vmem>>, vector<4x24xf32>
    %c15 = arith.constant 15 : index
    %c0_115 = arith.constant 0 : index
    %159 = tpu.strided_load %arg21[%c15, %c0_115] {strides = array<i32: 2, 1>} : memref<28x24xf32, #tpu.memory_space<vmem>>, vector<4x24xf32>
    %c16 = arith.constant 16 : index
    %c0_116 = arith.constant 0 : index
    %160 = tpu.strided_load %arg21[%c16, %c0_116] {strides = array<i32: 2, 1>} : memref<28x24xf32, #tpu.memory_space<vmem>>, vector<4x24xf32>
    %c17_117 = arith.constant 17 : index
    %c0_118 = arith.constant 0 : index
    %161 = tpu.strided_load %arg21[%c17_117, %c0_118] {strides = array<i32: 2, 1>} : memref<28x24xf32, #tpu.memory_space<vmem>>, vector<4x24xf32>
    %c18 = arith.constant 18 : index
    %c0_119 = arith.constant 0 : index
    %162 = tpu.strided_load %arg21[%c18, %c0_119] {strides = array<i32: 2, 1>} : memref<28x24xf32, #tpu.memory_space<vmem>>, vector<4x24xf32>
    %c19 = arith.constant 19 : index
    %c0_120 = arith.constant 0 : index
    %163 = tpu.strided_load %arg21[%c19, %c0_120] {strides = array<i32: 2, 1>} : memref<28x24xf32, #tpu.memory_space<vmem>>, vector<4x24xf32>
    %c20 = arith.constant 20 : index
    %c0_121 = arith.constant 0 : index
    %164 = tpu.strided_load %arg21[%c20, %c0_121] {strides = array<i32: 2, 1>} : memref<28x24xf32, #tpu.memory_space<vmem>>, vector<4x24xf32>
    %165 = tpu.concatenate %158, %159, %160, %161, %162, %163, %164 in 1 : vector<4x24xf32>, vector<4x24xf32>, vector<4x24xf32>, vector<4x24xf32>, vector<4x24xf32>, vector<4x24xf32>, vector<4x24xf32> -> vector<4x168xf32>
    %166 = arith.truncf %165 : vector<4x168xf32> to vector<4x168xbf16>
    %cst_122 = arith.constant dense<0.000000e+00> : vector<4x48xf32>
    %167 = tpu.matmul %166, %121, %cst_122 {dimension_numbers = #tpu.dot_dimension_numbers<[1], [0], [0], [1], [0, 0, 1, 1], [], []>} : vector<4x168xbf16>, vector<168x48xbf16>, vector<4x48xf32> -> vector<4x48xf32>
    %cst_123 = arith.constant dense<0.000000e+00> : vector<48xf32>
    %168 = vector.multi_reduction <add>, %167, %cst_123 [0] : vector<4x48xf32> to vector<48xf32>
    %169 = vector.shape_cast %168 : vector<48xf32> to vector<1x48xf32>
    %170 = arith.addf %153, %169 : vector<1x48xf32>
    %171 = arith.mulf %167, %167 : vector<4x48xf32>
    %cst_124 = arith.constant dense<0.000000e+00> : vector<48xf32>
    %172 = vector.multi_reduction <add>, %171, %cst_124 [0] : vector<4x48xf32> to vector<48xf32>
    %173 = vector.shape_cast %172 : vector<48xf32> to vector<1x48xf32>
    %174 = arith.addf %157, %173 : vector<1x48xf32>
    %c15_125 = arith.constant 15 : index
    %c0_126 = arith.constant 0 : index
    %175 = tpu.strided_load %arg21[%c15_125, %c0_126] {strides = array<i32: 2, 1>} : memref<28x24xf32, #tpu.memory_space<vmem>>, vector<4x24xf32>
    %c16_127 = arith.constant 16 : index
    %c0_128 = arith.constant 0 : index
    %176 = tpu.strided_load %arg21[%c16_127, %c0_128] {strides = array<i32: 2, 1>} : memref<28x24xf32, #tpu.memory_space<vmem>>, vector<4x24xf32>
    %c17_129 = arith.constant 17 : index
    %c0_130 = arith.constant 0 : index
    %177 = tpu.strided_load %arg21[%c17_129, %c0_130] {strides = array<i32: 2, 1>} : memref<28x24xf32, #tpu.memory_space<vmem>>, vector<4x24xf32>
    %c18_131 = arith.constant 18 : index
    %c0_132 = arith.constant 0 : index
    %178 = tpu.strided_load %arg21[%c18_131, %c0_132] {strides = array<i32: 2, 1>} : memref<28x24xf32, #tpu.memory_space<vmem>>, vector<4x24xf32>
    %c19_133 = arith.constant 19 : index
    %c0_134 = arith.constant 0 : index
    %179 = tpu.strided_load %arg21[%c19_133, %c0_134] {strides = array<i32: 2, 1>} : memref<28x24xf32, #tpu.memory_space<vmem>>, vector<4x24xf32>
    %c20_135 = arith.constant 20 : index
    %c0_136 = arith.constant 0 : index
    %180 = tpu.strided_load %arg21[%c20_135, %c0_136] {strides = array<i32: 2, 1>} : memref<28x24xf32, #tpu.memory_space<vmem>>, vector<4x24xf32>
    %c21 = arith.constant 21 : index
    %c0_137 = arith.constant 0 : index
    %181 = tpu.strided_load %arg21[%c21, %c0_137] {strides = array<i32: 2, 1>} : memref<28x24xf32, #tpu.memory_space<vmem>>, vector<4x24xf32>
    %182 = tpu.concatenate %175, %176, %177, %178, %179, %180, %181 in 1 : vector<4x24xf32>, vector<4x24xf32>, vector<4x24xf32>, vector<4x24xf32>, vector<4x24xf32>, vector<4x24xf32>, vector<4x24xf32> -> vector<4x168xf32>
    %183 = arith.truncf %182 : vector<4x168xf32> to vector<4x168xbf16>
    %cst_138 = arith.constant dense<0.000000e+00> : vector<4x48xf32>
    %184 = tpu.matmul %183, %121, %cst_138 {dimension_numbers = #tpu.dot_dimension_numbers<[1], [0], [0], [1], [0, 0, 1, 1], [], []>} : vector<4x168xbf16>, vector<168x48xbf16>, vector<4x48xf32> -> vector<4x48xf32>
    %cst_139 = arith.constant dense<0.000000e+00> : vector<48xf32>
    %185 = vector.multi_reduction <add>, %184, %cst_139 [0] : vector<4x48xf32> to vector<48xf32>
    %186 = vector.shape_cast %185 : vector<48xf32> to vector<1x48xf32>
    %187 = arith.addf %170, %186 : vector<1x48xf32>
    %188 = arith.mulf %184, %184 : vector<4x48xf32>
    %cst_140 = arith.constant dense<0.000000e+00> : vector<48xf32>
    %189 = vector.multi_reduction <add>, %188, %cst_140 [0] : vector<4x48xf32> to vector<48xf32>
    %190 = vector.shape_cast %189 : vector<48xf32> to vector<1x48xf32>
    %191 = arith.addf %174, %190 : vector<1x48xf32>
    %cst_141 = arith.constant 1.600000e+01 : f32
    %192 = vector.broadcast %cst_141 : f32 to vector<1x48xf32>
    %193 = arith.divf %187, %192 : vector<1x48xf32>
    %cst_142 = arith.constant 1.600000e+01 : f32
    %194 = vector.broadcast %cst_142 : f32 to vector<1x48xf32>
    %195 = arith.divf %191, %194 : vector<1x48xf32>
    %196 = arith.mulf %193, %193 : vector<1x48xf32>
    %197 = arith.subf %195, %196 : vector<1x48xf32>
    %cst_143 = arith.constant 9.99999974E-6 : f32
    %198 = vector.broadcast %cst_143 : f32 to vector<1x48xf32>
    %199 = arith.addf %197, %198 : vector<1x48xf32>
    %200 = math.rsqrt %199 : vector<1x48xf32>
    %c0_144 = arith.constant 0 : index
    %c0_145 = arith.constant 0 : index
    %201 = vector.load %arg9[%c0_144, %c0_145] : memref<1x48xf32, #tpu.memory_space<vmem>>, vector<1x48xf32>
    %202 = arith.mulf %200, %201 : vector<1x48xf32>
    %c0_146 = arith.constant 0 : index
    %c0_147 = arith.constant 0 : index
    %203 = vector.load %arg10[%c0_146, %c0_147] : memref<1x48xf32, #tpu.memory_space<vmem>>, vector<1x48xf32>
    %204 = vector.broadcast %193 : vector<1x48xf32> to vector<4x48xf32>
    %205 = arith.subf %133, %204 : vector<4x48xf32>
    %206 = vector.broadcast %202 : vector<1x48xf32> to vector<4x48xf32>
    %207 = arith.mulf %205, %206 : vector<4x48xf32>
    %208 = vector.broadcast %203 : vector<1x48xf32> to vector<4x48xf32>
    %209 = arith.addf %207, %208 : vector<4x48xf32>
    %210 = vector.broadcast %193 : vector<1x48xf32> to vector<4x48xf32>
    %211 = arith.subf %150, %210 : vector<4x48xf32>
    %212 = vector.broadcast %202 : vector<1x48xf32> to vector<4x48xf32>
    %213 = arith.mulf %211, %212 : vector<4x48xf32>
    %214 = vector.broadcast %203 : vector<1x48xf32> to vector<4x48xf32>
    %215 = arith.addf %213, %214 : vector<4x48xf32>
    %216 = arith.maximumf %209, %215 : vector<4x48xf32>
    %cst_148 = arith.constant 0.000000e+00 : f32
    %217 = vector.broadcast %cst_148 : f32 to vector<4x48xf32>
    %218 = arith.maximumf %216, %217 : vector<4x48xf32>
    %c3_149 = arith.constant 3 : index
    %c0_150 = arith.constant 0 : index
    %219 = vector.load %arg22[%c3_149, %c0_150] : memref<20x48xf32, #tpu.memory_space<vmem>>, vector<4x48xf32>
    tpu.vector_store %arg22[%c3_149, %c0_150], %218 {strides = array<i32>} : memref<20x48xf32, #tpu.memory_space<vmem>>, vector<4x48xf32>,
    %220 = vector.broadcast %193 : vector<1x48xf32> to vector<4x48xf32>
    %221 = arith.subf %167, %220 : vector<4x48xf32>
    %222 = vector.broadcast %202 : vector<1x48xf32> to vector<4x48xf32>
    %223 = arith.mulf %221, %222 : vector<4x48xf32>
    %224 = vector.broadcast %203 : vector<1x48xf32> to vector<4x48xf32>
    %225 = arith.addf %223, %224 : vector<4x48xf32>
    %226 = vector.broadcast %193 : vector<1x48xf32> to vector<4x48xf32>
    %227 = arith.subf %184, %226 : vector<4x48xf32>
    %228 = vector.broadcast %202 : vector<1x48xf32> to vector<4x48xf32>
    %229 = arith.mulf %227, %228 : vector<4x48xf32>
    %230 = vector.broadcast %203 : vector<1x48xf32> to vector<4x48xf32>
    %231 = arith.addf %229, %230 : vector<4x48xf32>
    %232 = arith.maximumf %225, %231 : vector<4x48xf32>
    %cst_151 = arith.constant 0.000000e+00 : f32
    %233 = vector.broadcast %cst_151 : f32 to vector<4x48xf32>
    %234 = arith.maximumf %232, %233 : vector<4x48xf32>
    %c13 = arith.constant 13 : index
    %c0_152 = arith.constant 0 : index
    %235 = vector.load %arg22[%c13, %c0_152] : memref<20x48xf32, #tpu.memory_space<vmem>>, vector<4x48xf32>
    tpu.vector_store %arg22[%c13, %c0_152], %234 {strides = array<i32>} : memref<20x48xf32, #tpu.memory_space<vmem>>, vector<4x48xf32>,
    %c0_153 = arith.constant 0 : index
    %c0_154 = arith.constant 0 : index
    %236 = vector.load %arg4[%c0_153, %c0_154] : memref<336x96xbf16, #tpu.memory_space<vmem>>, vector<336x96xbf16>
    %cst_155 = arith.constant 0.000000e+00 : f32
    %237 = vector.broadcast %cst_155 : f32 to vector<1x96xf32>
    %cst_156 = arith.constant 0.000000e+00 : f32
    %238 = vector.broadcast %cst_156 : f32 to vector<1x96xf32>
    %c0_157 = arith.constant 0 : index
    %c0_158 = arith.constant 0 : index
    %239 = tpu.strided_load %arg22[%c0_157, %c0_158] {strides = array<i32: 2, 1>} : memref<20x48xf32, #tpu.memory_space<vmem>>, vector<2x48xf32>
    %c1_159 = arith.constant 1 : index
    %c0_160 = arith.constant 0 : index
    %240 = tpu.strided_load %arg22[%c1_159, %c0_160] {strides = array<i32: 2, 1>} : memref<20x48xf32, #tpu.memory_space<vmem>>, vector<2x48xf32>
    %c2_161 = arith.constant 2 : index
    %c0_162 = arith.constant 0 : index
    %241 = tpu.strided_load %arg22[%c2_161, %c0_162] {strides = array<i32: 2, 1>} : memref<20x48xf32, #tpu.memory_space<vmem>>, vector<2x48xf32>
    %c3_163 = arith.constant 3 : index
    %c0_164 = arith.constant 0 : index
    %242 = tpu.strided_load %arg22[%c3_163, %c0_164] {strides = array<i32: 2, 1>} : memref<20x48xf32, #tpu.memory_space<vmem>>, vector<2x48xf32>
    %c4_165 = arith.constant 4 : index
    %c0_166 = arith.constant 0 : index
    %243 = tpu.strided_load %arg22[%c4_165, %c0_166] {strides = array<i32: 2, 1>} : memref<20x48xf32, #tpu.memory_space<vmem>>, vector<2x48xf32>
    %c5_167 = arith.constant 5 : index
    %c0_168 = arith.constant 0 : index
    %244 = tpu.strided_load %arg22[%c5_167, %c0_168] {strides = array<i32: 2, 1>} : memref<20x48xf32, #tpu.memory_space<vmem>>, vector<2x48xf32>
    %c6_169 = arith.constant 6 : index
    %c0_170 = arith.constant 0 : index
    %245 = tpu.strided_load %arg22[%c6_169, %c0_170] {strides = array<i32: 2, 1>} : memref<20x48xf32, #tpu.memory_space<vmem>>, vector<2x48xf32>
    %246 = tpu.concatenate %239, %240, %241, %242, %243, %244, %245 in 1 : vector<2x48xf32>, vector<2x48xf32>, vector<2x48xf32>, vector<2x48xf32>, vector<2x48xf32>, vector<2x48xf32>, vector<2x48xf32> -> vector<2x336xf32>
    %247 = arith.truncf %246 : vector<2x336xf32> to vector<2x336xbf16>
    %cst_171 = arith.constant dense<0.000000e+00> : vector<2x96xf32>
    %248 = tpu.matmul %247, %236, %cst_171 {dimension_numbers = #tpu.dot_dimension_numbers<[1], [0], [0], [1], [0, 0, 1, 1], [], []>} : vector<2x336xbf16>, vector<336x96xbf16>, vector<2x96xf32> -> vector<2x96xf32>
    %cst_172 = arith.constant dense<0.000000e+00> : vector<96xf32>
    %249 = vector.multi_reduction <add>, %248, %cst_172 [0] : vector<2x96xf32> to vector<96xf32>
    %250 = vector.shape_cast %249 : vector<96xf32> to vector<1x96xf32>
    %251 = arith.addf %237, %250 : vector<1x96xf32>
    %252 = arith.mulf %248, %248 : vector<2x96xf32>
    %cst_173 = arith.constant dense<0.000000e+00> : vector<96xf32>
    %253 = vector.multi_reduction <add>, %252, %cst_173 [0] : vector<2x96xf32> to vector<96xf32>
    %254 = vector.shape_cast %253 : vector<96xf32> to vector<1x96xf32>
    %255 = arith.addf %238, %254 : vector<1x96xf32>
    %c1_174 = arith.constant 1 : index
    %c0_175 = arith.constant 0 : index
    %256 = tpu.strided_load %arg22[%c1_174, %c0_175] {strides = array<i32: 2, 1>} : memref<20x48xf32, #tpu.memory_space<vmem>>, vector<2x48xf32>
    %c2_176 = arith.constant 2 : index
    %c0_177 = arith.constant 0 : index
    %257 = tpu.strided_load %arg22[%c2_176, %c0_177] {strides = array<i32: 2, 1>} : memref<20x48xf32, #tpu.memory_space<vmem>>, vector<2x48xf32>
    %c3_178 = arith.constant 3 : index
    %c0_179 = arith.constant 0 : index
    %258 = tpu.strided_load %arg22[%c3_178, %c0_179] {strides = array<i32: 2, 1>} : memref<20x48xf32, #tpu.memory_space<vmem>>, vector<2x48xf32>
    %c4_180 = arith.constant 4 : index
    %c0_181 = arith.constant 0 : index
    %259 = tpu.strided_load %arg22[%c4_180, %c0_181] {strides = array<i32: 2, 1>} : memref<20x48xf32, #tpu.memory_space<vmem>>, vector<2x48xf32>
    %c5_182 = arith.constant 5 : index
    %c0_183 = arith.constant 0 : index
    %260 = tpu.strided_load %arg22[%c5_182, %c0_183] {strides = array<i32: 2, 1>} : memref<20x48xf32, #tpu.memory_space<vmem>>, vector<2x48xf32>
    %c6_184 = arith.constant 6 : index
    %c0_185 = arith.constant 0 : index
    %261 = tpu.strided_load %arg22[%c6_184, %c0_185] {strides = array<i32: 2, 1>} : memref<20x48xf32, #tpu.memory_space<vmem>>, vector<2x48xf32>
    %c7_186 = arith.constant 7 : index
    %c0_187 = arith.constant 0 : index
    %262 = tpu.strided_load %arg22[%c7_186, %c0_187] {strides = array<i32: 2, 1>} : memref<20x48xf32, #tpu.memory_space<vmem>>, vector<2x48xf32>
    %263 = tpu.concatenate %256, %257, %258, %259, %260, %261, %262 in 1 : vector<2x48xf32>, vector<2x48xf32>, vector<2x48xf32>, vector<2x48xf32>, vector<2x48xf32>, vector<2x48xf32>, vector<2x48xf32> -> vector<2x336xf32>
    %264 = arith.truncf %263 : vector<2x336xf32> to vector<2x336xbf16>
    %cst_188 = arith.constant dense<0.000000e+00> : vector<2x96xf32>
    %265 = tpu.matmul %264, %236, %cst_188 {dimension_numbers = #tpu.dot_dimension_numbers<[1], [0], [0], [1], [0, 0, 1, 1], [], []>} : vector<2x336xbf16>, vector<336x96xbf16>, vector<2x96xf32> -> vector<2x96xf32>
    %cst_189 = arith.constant dense<0.000000e+00> : vector<96xf32>
    %266 = vector.multi_reduction <add>, %265, %cst_189 [0] : vector<2x96xf32> to vector<96xf32>
    %267 = vector.shape_cast %266 : vector<96xf32> to vector<1x96xf32>
    %268 = arith.addf %251, %267 : vector<1x96xf32>
    %269 = arith.mulf %265, %265 : vector<2x96xf32>
    %cst_190 = arith.constant dense<0.000000e+00> : vector<96xf32>
    %270 = vector.multi_reduction <add>, %269, %cst_190 [0] : vector<2x96xf32> to vector<96xf32>
    %271 = vector.shape_cast %270 : vector<96xf32> to vector<1x96xf32>
    %272 = arith.addf %255, %271 : vector<1x96xf32>
    %c10 = arith.constant 10 : index
    %c0_191 = arith.constant 0 : index
    %273 = tpu.strided_load %arg22[%c10, %c0_191] {strides = array<i32: 2, 1>} : memref<20x48xf32, #tpu.memory_space<vmem>>, vector<2x48xf32>
    %c11 = arith.constant 11 : index
    %c0_192 = arith.constant 0 : index
    %274 = tpu.strided_load %arg22[%c11, %c0_192] {strides = array<i32: 2, 1>} : memref<20x48xf32, #tpu.memory_space<vmem>>, vector<2x48xf32>
    %c12 = arith.constant 12 : index
    %c0_193 = arith.constant 0 : index
    %275 = tpu.strided_load %arg22[%c12, %c0_193] {strides = array<i32: 2, 1>} : memref<20x48xf32, #tpu.memory_space<vmem>>, vector<2x48xf32>
    %c13_194 = arith.constant 13 : index
    %c0_195 = arith.constant 0 : index
    %276 = tpu.strided_load %arg22[%c13_194, %c0_195] {strides = array<i32: 2, 1>} : memref<20x48xf32, #tpu.memory_space<vmem>>, vector<2x48xf32>
    %c14_196 = arith.constant 14 : index
    %c0_197 = arith.constant 0 : index
    %277 = tpu.strided_load %arg22[%c14_196, %c0_197] {strides = array<i32: 2, 1>} : memref<20x48xf32, #tpu.memory_space<vmem>>, vector<2x48xf32>
    %c15_198 = arith.constant 15 : index
    %c0_199 = arith.constant 0 : index
    %278 = tpu.strided_load %arg22[%c15_198, %c0_199] {strides = array<i32: 2, 1>} : memref<20x48xf32, #tpu.memory_space<vmem>>, vector<2x48xf32>
    %c16_200 = arith.constant 16 : index
    %c0_201 = arith.constant 0 : index
    %279 = tpu.strided_load %arg22[%c16_200, %c0_201] {strides = array<i32: 2, 1>} : memref<20x48xf32, #tpu.memory_space<vmem>>, vector<2x48xf32>
    %280 = tpu.concatenate %273, %274, %275, %276, %277, %278, %279 in 1 : vector<2x48xf32>, vector<2x48xf32>, vector<2x48xf32>, vector<2x48xf32>, vector<2x48xf32>, vector<2x48xf32>, vector<2x48xf32> -> vector<2x336xf32>
    %281 = arith.truncf %280 : vector<2x336xf32> to vector<2x336xbf16>
    %cst_202 = arith.constant dense<0.000000e+00> : vector<2x96xf32>
    %282 = tpu.matmul %281, %236, %cst_202 {dimension_numbers = #tpu.dot_dimension_numbers<[1], [0], [0], [1], [0, 0, 1, 1], [], []>} : vector<2x336xbf16>, vector<336x96xbf16>, vector<2x96xf32> -> vector<2x96xf32>
    %cst_203 = arith.constant dense<0.000000e+00> : vector<96xf32>
    %283 = vector.multi_reduction <add>, %282, %cst_203 [0] : vector<2x96xf32> to vector<96xf32>
    %284 = vector.shape_cast %283 : vector<96xf32> to vector<1x96xf32>
    %285 = arith.addf %268, %284 : vector<1x96xf32>
    %286 = arith.mulf %282, %282 : vector<2x96xf32>
    %cst_204 = arith.constant dense<0.000000e+00> : vector<96xf32>
    %287 = vector.multi_reduction <add>, %286, %cst_204 [0] : vector<2x96xf32> to vector<96xf32>
    %288 = vector.shape_cast %287 : vector<96xf32> to vector<1x96xf32>
    %289 = arith.addf %272, %288 : vector<1x96xf32>
    %c11_205 = arith.constant 11 : index
    %c0_206 = arith.constant 0 : index
    %290 = tpu.strided_load %arg22[%c11_205, %c0_206] {strides = array<i32: 2, 1>} : memref<20x48xf32, #tpu.memory_space<vmem>>, vector<2x48xf32>
    %c12_207 = arith.constant 12 : index
    %c0_208 = arith.constant 0 : index
    %291 = tpu.strided_load %arg22[%c12_207, %c0_208] {strides = array<i32: 2, 1>} : memref<20x48xf32, #tpu.memory_space<vmem>>, vector<2x48xf32>
    %c13_209 = arith.constant 13 : index
    %c0_210 = arith.constant 0 : index
    %292 = tpu.strided_load %arg22[%c13_209, %c0_210] {strides = array<i32: 2, 1>} : memref<20x48xf32, #tpu.memory_space<vmem>>, vector<2x48xf32>
    %c14_211 = arith.constant 14 : index
    %c0_212 = arith.constant 0 : index
    %293 = tpu.strided_load %arg22[%c14_211, %c0_212] {strides = array<i32: 2, 1>} : memref<20x48xf32, #tpu.memory_space<vmem>>, vector<2x48xf32>
    %c15_213 = arith.constant 15 : index
    %c0_214 = arith.constant 0 : index
    %294 = tpu.strided_load %arg22[%c15_213, %c0_214] {strides = array<i32: 2, 1>} : memref<20x48xf32, #tpu.memory_space<vmem>>, vector<2x48xf32>
    %c16_215 = arith.constant 16 : index
    %c0_216 = arith.constant 0 : index
    %295 = tpu.strided_load %arg22[%c16_215, %c0_216] {strides = array<i32: 2, 1>} : memref<20x48xf32, #tpu.memory_space<vmem>>, vector<2x48xf32>
    %c17_217 = arith.constant 17 : index
    %c0_218 = arith.constant 0 : index
    %296 = tpu.strided_load %arg22[%c17_217, %c0_218] {strides = array<i32: 2, 1>} : memref<20x48xf32, #tpu.memory_space<vmem>>, vector<2x48xf32>
    %297 = tpu.concatenate %290, %291, %292, %293, %294, %295, %296 in 1 : vector<2x48xf32>, vector<2x48xf32>, vector<2x48xf32>, vector<2x48xf32>, vector<2x48xf32>, vector<2x48xf32>, vector<2x48xf32> -> vector<2x336xf32>
    %298 = arith.truncf %297 : vector<2x336xf32> to vector<2x336xbf16>
    %cst_219 = arith.constant dense<0.000000e+00> : vector<2x96xf32>
    %299 = tpu.matmul %298, %236, %cst_219 {dimension_numbers = #tpu.dot_dimension_numbers<[1], [0], [0], [1], [0, 0, 1, 1], [], []>} : vector<2x336xbf16>, vector<336x96xbf16>, vector<2x96xf32> -> vector<2x96xf32>
    %cst_220 = arith.constant dense<0.000000e+00> : vector<96xf32>
    %300 = vector.multi_reduction <add>, %299, %cst_220 [0] : vector<2x96xf32> to vector<96xf32>
    %301 = vector.shape_cast %300 : vector<96xf32> to vector<1x96xf32>
    %302 = arith.addf %285, %301 : vector<1x96xf32>
    %303 = arith.mulf %299, %299 : vector<2x96xf32>
    %cst_221 = arith.constant dense<0.000000e+00> : vector<96xf32>
    %304 = vector.multi_reduction <add>, %303, %cst_221 [0] : vector<2x96xf32> to vector<96xf32>
    %305 = vector.shape_cast %304 : vector<96xf32> to vector<1x96xf32>
    %306 = arith.addf %289, %305 : vector<1x96xf32>
    %cst_222 = arith.constant 8.000000e+00 : f32
    %307 = vector.broadcast %cst_222 : f32 to vector<1x96xf32>
    %308 = arith.divf %302, %307 : vector<1x96xf32>
    %cst_223 = arith.constant 8.000000e+00 : f32
    %309 = vector.broadcast %cst_223 : f32 to vector<1x96xf32>
    %310 = arith.divf %306, %309 : vector<1x96xf32>
    %311 = arith.mulf %308, %308 : vector<1x96xf32>
    %312 = arith.subf %310, %311 : vector<1x96xf32>
    %cst_224 = arith.constant 9.99999974E-6 : f32
    %313 = vector.broadcast %cst_224 : f32 to vector<1x96xf32>
    %314 = arith.addf %312, %313 : vector<1x96xf32>
    %315 = math.rsqrt %314 : vector<1x96xf32>
    %c0_225 = arith.constant 0 : index
    %c0_226 = arith.constant 0 : index
    %316 = vector.load %arg11[%c0_225, %c0_226] : memref<1x96xf32, #tpu.memory_space<vmem>>, vector<1x96xf32>
    %317 = arith.mulf %315, %316 : vector<1x96xf32>
    %c0_227 = arith.constant 0 : index
    %c0_228 = arith.constant 0 : index
    %318 = vector.load %arg12[%c0_227, %c0_228] : memref<1x96xf32, #tpu.memory_space<vmem>>, vector<1x96xf32>
    %319 = vector.broadcast %308 : vector<1x96xf32> to vector<2x96xf32>
    %320 = arith.subf %248, %319 : vector<2x96xf32>
    %321 = vector.broadcast %317 : vector<1x96xf32> to vector<2x96xf32>
    %322 = arith.mulf %320, %321 : vector<2x96xf32>
    %323 = vector.broadcast %318 : vector<1x96xf32> to vector<2x96xf32>
    %324 = arith.addf %322, %323 : vector<2x96xf32>
    %325 = vector.broadcast %308 : vector<1x96xf32> to vector<2x96xf32>
    %326 = arith.subf %265, %325 : vector<2x96xf32>
    %327 = vector.broadcast %317 : vector<1x96xf32> to vector<2x96xf32>
    %328 = arith.mulf %326, %327 : vector<2x96xf32>
    %329 = vector.broadcast %318 : vector<1x96xf32> to vector<2x96xf32>
    %330 = arith.addf %328, %329 : vector<2x96xf32>
    %331 = arith.maximumf %324, %330 : vector<2x96xf32>
    %cst_229 = arith.constant 0.000000e+00 : f32
    %332 = vector.broadcast %cst_229 : f32 to vector<2x96xf32>
    %333 = arith.maximumf %331, %332 : vector<2x96xf32>
    %c3_230 = arith.constant 3 : index
    %c0_231 = arith.constant 0 : index
    %334 = vector.load %arg23[%c3_230, %c0_231] : memref<16x96xf32, #tpu.memory_space<vmem>>, vector<2x96xf32>
    tpu.vector_store %arg23[%c3_230, %c0_231], %333 {strides = array<i32>} : memref<16x96xf32, #tpu.memory_space<vmem>>, vector<2x96xf32>,
    %335 = vector.broadcast %308 : vector<1x96xf32> to vector<2x96xf32>
    %336 = arith.subf %282, %335 : vector<2x96xf32>
    %337 = vector.broadcast %317 : vector<1x96xf32> to vector<2x96xf32>
    %338 = arith.mulf %336, %337 : vector<2x96xf32>
    %339 = vector.broadcast %318 : vector<1x96xf32> to vector<2x96xf32>
    %340 = arith.addf %338, %339 : vector<2x96xf32>
    %341 = vector.broadcast %308 : vector<1x96xf32> to vector<2x96xf32>
    %342 = arith.subf %299, %341 : vector<2x96xf32>
    %343 = vector.broadcast %317 : vector<1x96xf32> to vector<2x96xf32>
    %344 = arith.mulf %342, %343 : vector<2x96xf32>
    %345 = vector.broadcast %318 : vector<1x96xf32> to vector<2x96xf32>
    %346 = arith.addf %344, %345 : vector<2x96xf32>
    %347 = arith.maximumf %340, %346 : vector<2x96xf32>
    %cst_232 = arith.constant 0.000000e+00 : f32
    %348 = vector.broadcast %cst_232 : f32 to vector<2x96xf32>
    %349 = arith.maximumf %347, %348 : vector<2x96xf32>
    %c11_233 = arith.constant 11 : index
    %c0_234 = arith.constant 0 : index
    %350 = vector.load %arg23[%c11_233, %c0_234] : memref<16x96xf32, #tpu.memory_space<vmem>>, vector<2x96xf32>
    tpu.vector_store %arg23[%c11_233, %c0_234], %349 {strides = array<i32>} : memref<16x96xf32, #tpu.memory_space<vmem>>, vector<2x96xf32>,
    %c0_235 = arith.constant 0 : index
    %c0_236 = arith.constant 0 : index
    %351 = vector.load %arg5[%c0_235, %c0_236] : memref<672x192xbf16, #tpu.memory_space<vmem>>, vector<672x192xbf16>
    %cst_237 = arith.constant 0.000000e+00 : f32
    %352 = vector.broadcast %cst_237 : f32 to vector<1x192xf32>
    %cst_238 = arith.constant 0.000000e+00 : f32
    %353 = vector.broadcast %cst_238 : f32 to vector<1x192xf32>
    %c0_239 = arith.constant 0 : index
    %c0_240 = arith.constant 0 : index
    %354 = tpu.strided_load %arg23[%c0_239, %c0_240] {strides = array<i32: 2, 1>} : memref<16x96xf32, #tpu.memory_space<vmem>>, vector<1x96xf32>
    %c1_241 = arith.constant 1 : index
    %c0_242 = arith.constant 0 : index
    %355 = tpu.strided_load %arg23[%c1_241, %c0_242] {strides = array<i32: 2, 1>} : memref<16x96xf32, #tpu.memory_space<vmem>>, vector<1x96xf32>
    %c2_243 = arith.constant 2 : index
    %c0_244 = arith.constant 0 : index
    %356 = tpu.strided_load %arg23[%c2_243, %c0_244] {strides = array<i32: 2, 1>} : memref<16x96xf32, #tpu.memory_space<vmem>>, vector<1x96xf32>
    %c3_245 = arith.constant 3 : index
    %c0_246 = arith.constant 0 : index
    %357 = tpu.strided_load %arg23[%c3_245, %c0_246] {strides = array<i32: 2, 1>} : memref<16x96xf32, #tpu.memory_space<vmem>>, vector<1x96xf32>
    %c4_247 = arith.constant 4 : index
    %c0_248 = arith.constant 0 : index
    %358 = tpu.strided_load %arg23[%c4_247, %c0_248] {strides = array<i32: 2, 1>} : memref<16x96xf32, #tpu.memory_space<vmem>>, vector<1x96xf32>
    %c5_249 = arith.constant 5 : index
    %c0_250 = arith.constant 0 : index
    %359 = tpu.strided_load %arg23[%c5_249, %c0_250] {strides = array<i32: 2, 1>} : memref<16x96xf32, #tpu.memory_space<vmem>>, vector<1x96xf32>
    %c6_251 = arith.constant 6 : index
    %c0_252 = arith.constant 0 : index
    %360 = tpu.strided_load %arg23[%c6_251, %c0_252] {strides = array<i32: 2, 1>} : memref<16x96xf32, #tpu.memory_space<vmem>>, vector<1x96xf32>
    %361 = tpu.concatenate %354, %355, %356, %357, %358, %359, %360 in 1 : vector<1x96xf32>, vector<1x96xf32>, vector<1x96xf32>, vector<1x96xf32>, vector<1x96xf32>, vector<1x96xf32>, vector<1x96xf32> -> vector<1x672xf32>
    %362 = arith.truncf %361 : vector<1x672xf32> to vector<1x672xbf16>
    %cst_253 = arith.constant dense<0.000000e+00> : vector<1x192xf32>
    %363 = tpu.matmul %362, %351, %cst_253 {dimension_numbers = #tpu.dot_dimension_numbers<[1], [0], [0], [1], [0, 0, 1, 1], [], []>} : vector<1x672xbf16>, vector<672x192xbf16>, vector<1x192xf32> -> vector<1x192xf32>
    %cst_254 = arith.constant dense<0.000000e+00> : vector<192xf32>
    %364 = vector.multi_reduction <add>, %363, %cst_254 [0] : vector<1x192xf32> to vector<192xf32>
    %365 = vector.shape_cast %364 : vector<192xf32> to vector<1x192xf32>
    %366 = arith.addf %352, %365 : vector<1x192xf32>
    %367 = arith.mulf %363, %363 : vector<1x192xf32>
    %cst_255 = arith.constant dense<0.000000e+00> : vector<192xf32>
    %368 = vector.multi_reduction <add>, %367, %cst_255 [0] : vector<1x192xf32> to vector<192xf32>
    %369 = vector.shape_cast %368 : vector<192xf32> to vector<1x192xf32>
    %370 = arith.addf %353, %369 : vector<1x192xf32>
    %c1_256 = arith.constant 1 : index
    %c0_257 = arith.constant 0 : index
    %371 = tpu.strided_load %arg23[%c1_256, %c0_257] {strides = array<i32: 2, 1>} : memref<16x96xf32, #tpu.memory_space<vmem>>, vector<1x96xf32>
    %c2_258 = arith.constant 2 : index
    %c0_259 = arith.constant 0 : index
    %372 = tpu.strided_load %arg23[%c2_258, %c0_259] {strides = array<i32: 2, 1>} : memref<16x96xf32, #tpu.memory_space<vmem>>, vector<1x96xf32>
    %c3_260 = arith.constant 3 : index
    %c0_261 = arith.constant 0 : index
    %373 = tpu.strided_load %arg23[%c3_260, %c0_261] {strides = array<i32: 2, 1>} : memref<16x96xf32, #tpu.memory_space<vmem>>, vector<1x96xf32>
    %c4_262 = arith.constant 4 : index
    %c0_263 = arith.constant 0 : index
    %374 = tpu.strided_load %arg23[%c4_262, %c0_263] {strides = array<i32: 2, 1>} : memref<16x96xf32, #tpu.memory_space<vmem>>, vector<1x96xf32>
    %c5_264 = arith.constant 5 : index
    %c0_265 = arith.constant 0 : index
    %375 = tpu.strided_load %arg23[%c5_264, %c0_265] {strides = array<i32: 2, 1>} : memref<16x96xf32, #tpu.memory_space<vmem>>, vector<1x96xf32>
    %c6_266 = arith.constant 6 : index
    %c0_267 = arith.constant 0 : index
    %376 = tpu.strided_load %arg23[%c6_266, %c0_267] {strides = array<i32: 2, 1>} : memref<16x96xf32, #tpu.memory_space<vmem>>, vector<1x96xf32>
    %c7_268 = arith.constant 7 : index
    %c0_269 = arith.constant 0 : index
    %377 = tpu.strided_load %arg23[%c7_268, %c0_269] {strides = array<i32: 2, 1>} : memref<16x96xf32, #tpu.memory_space<vmem>>, vector<1x96xf32>
    %378 = tpu.concatenate %371, %372, %373, %374, %375, %376, %377 in 1 : vector<1x96xf32>, vector<1x96xf32>, vector<1x96xf32>, vector<1x96xf32>, vector<1x96xf32>, vector<1x96xf32>, vector<1x96xf32> -> vector<1x672xf32>
    %379 = arith.truncf %378 : vector<1x672xf32> to vector<1x672xbf16>
    %cst_270 = arith.constant dense<0.000000e+00> : vector<1x192xf32>
    %380 = tpu.matmul %379, %351, %cst_270 {dimension_numbers = #tpu.dot_dimension_numbers<[1], [0], [0], [1], [0, 0, 1, 1], [], []>} : vector<1x672xbf16>, vector<672x192xbf16>, vector<1x192xf32> -> vector<1x192xf32>
    %cst_271 = arith.constant dense<0.000000e+00> : vector<192xf32>
    %381 = vector.multi_reduction <add>, %380, %cst_271 [0] : vector<1x192xf32> to vector<192xf32>
    %382 = vector.shape_cast %381 : vector<192xf32> to vector<1x192xf32>
    %383 = arith.addf %366, %382 : vector<1x192xf32>
    %384 = arith.mulf %380, %380 : vector<1x192xf32>
    %cst_272 = arith.constant dense<0.000000e+00> : vector<192xf32>
    %385 = vector.multi_reduction <add>, %384, %cst_272 [0] : vector<1x192xf32> to vector<192xf32>
    %386 = vector.shape_cast %385 : vector<192xf32> to vector<1x192xf32>
    %387 = arith.addf %370, %386 : vector<1x192xf32>
    %c8 = arith.constant 8 : index
    %c0_273 = arith.constant 0 : index
    %388 = tpu.strided_load %arg23[%c8, %c0_273] {strides = array<i32: 2, 1>} : memref<16x96xf32, #tpu.memory_space<vmem>>, vector<1x96xf32>
    %c9 = arith.constant 9 : index
    %c0_274 = arith.constant 0 : index
    %389 = tpu.strided_load %arg23[%c9, %c0_274] {strides = array<i32: 2, 1>} : memref<16x96xf32, #tpu.memory_space<vmem>>, vector<1x96xf32>
    %c10_275 = arith.constant 10 : index
    %c0_276 = arith.constant 0 : index
    %390 = tpu.strided_load %arg23[%c10_275, %c0_276] {strides = array<i32: 2, 1>} : memref<16x96xf32, #tpu.memory_space<vmem>>, vector<1x96xf32>
    %c11_277 = arith.constant 11 : index
    %c0_278 = arith.constant 0 : index
    %391 = tpu.strided_load %arg23[%c11_277, %c0_278] {strides = array<i32: 2, 1>} : memref<16x96xf32, #tpu.memory_space<vmem>>, vector<1x96xf32>
    %c12_279 = arith.constant 12 : index
    %c0_280 = arith.constant 0 : index
    %392 = tpu.strided_load %arg23[%c12_279, %c0_280] {strides = array<i32: 2, 1>} : memref<16x96xf32, #tpu.memory_space<vmem>>, vector<1x96xf32>
    %c13_281 = arith.constant 13 : index
    %c0_282 = arith.constant 0 : index
    %393 = tpu.strided_load %arg23[%c13_281, %c0_282] {strides = array<i32: 2, 1>} : memref<16x96xf32, #tpu.memory_space<vmem>>, vector<1x96xf32>
    %c14_283 = arith.constant 14 : index
    %c0_284 = arith.constant 0 : index
    %394 = tpu.strided_load %arg23[%c14_283, %c0_284] {strides = array<i32: 2, 1>} : memref<16x96xf32, #tpu.memory_space<vmem>>, vector<1x96xf32>
    %395 = tpu.concatenate %388, %389, %390, %391, %392, %393, %394 in 1 : vector<1x96xf32>, vector<1x96xf32>, vector<1x96xf32>, vector<1x96xf32>, vector<1x96xf32>, vector<1x96xf32>, vector<1x96xf32> -> vector<1x672xf32>
    %396 = arith.truncf %395 : vector<1x672xf32> to vector<1x672xbf16>
    %cst_285 = arith.constant dense<0.000000e+00> : vector<1x192xf32>
    %397 = tpu.matmul %396, %351, %cst_285 {dimension_numbers = #tpu.dot_dimension_numbers<[1], [0], [0], [1], [0, 0, 1, 1], [], []>} : vector<1x672xbf16>, vector<672x192xbf16>, vector<1x192xf32> -> vector<1x192xf32>
    %cst_286 = arith.constant dense<0.000000e+00> : vector<192xf32>
    %398 = vector.multi_reduction <add>, %397, %cst_286 [0] : vector<1x192xf32> to vector<192xf32>
    %399 = vector.shape_cast %398 : vector<192xf32> to vector<1x192xf32>
    %400 = arith.addf %383, %399 : vector<1x192xf32>
    %401 = arith.mulf %397, %397 : vector<1x192xf32>
    %cst_287 = arith.constant dense<0.000000e+00> : vector<192xf32>
    %402 = vector.multi_reduction <add>, %401, %cst_287 [0] : vector<1x192xf32> to vector<192xf32>
    %403 = vector.shape_cast %402 : vector<192xf32> to vector<1x192xf32>
    %404 = arith.addf %387, %403 : vector<1x192xf32>
    %c9_288 = arith.constant 9 : index
    %c0_289 = arith.constant 0 : index
    %405 = tpu.strided_load %arg23[%c9_288, %c0_289] {strides = array<i32: 2, 1>} : memref<16x96xf32, #tpu.memory_space<vmem>>, vector<1x96xf32>
    %c10_290 = arith.constant 10 : index
    %c0_291 = arith.constant 0 : index
    %406 = tpu.strided_load %arg23[%c10_290, %c0_291] {strides = array<i32: 2, 1>} : memref<16x96xf32, #tpu.memory_space<vmem>>, vector<1x96xf32>
    %c11_292 = arith.constant 11 : index
    %c0_293 = arith.constant 0 : index
    %407 = tpu.strided_load %arg23[%c11_292, %c0_293] {strides = array<i32: 2, 1>} : memref<16x96xf32, #tpu.memory_space<vmem>>, vector<1x96xf32>
    %c12_294 = arith.constant 12 : index
    %c0_295 = arith.constant 0 : index
    %408 = tpu.strided_load %arg23[%c12_294, %c0_295] {strides = array<i32: 2, 1>} : memref<16x96xf32, #tpu.memory_space<vmem>>, vector<1x96xf32>
    %c13_296 = arith.constant 13 : index
    %c0_297 = arith.constant 0 : index
    %409 = tpu.strided_load %arg23[%c13_296, %c0_297] {strides = array<i32: 2, 1>} : memref<16x96xf32, #tpu.memory_space<vmem>>, vector<1x96xf32>
    %c14_298 = arith.constant 14 : index
    %c0_299 = arith.constant 0 : index
    %410 = tpu.strided_load %arg23[%c14_298, %c0_299] {strides = array<i32: 2, 1>} : memref<16x96xf32, #tpu.memory_space<vmem>>, vector<1x96xf32>
    %c15_300 = arith.constant 15 : index
    %c0_301 = arith.constant 0 : index
    %411 = tpu.strided_load %arg23[%c15_300, %c0_301] {strides = array<i32: 2, 1>} : memref<16x96xf32, #tpu.memory_space<vmem>>, vector<1x96xf32>
    %412 = tpu.concatenate %405, %406, %407, %408, %409, %410, %411 in 1 : vector<1x96xf32>, vector<1x96xf32>, vector<1x96xf32>, vector<1x96xf32>, vector<1x96xf32>, vector<1x96xf32>, vector<1x96xf32> -> vector<1x672xf32>
    %413 = arith.truncf %412 : vector<1x672xf32> to vector<1x672xbf16>
    %cst_302 = arith.constant dense<0.000000e+00> : vector<1x192xf32>
    %414 = tpu.matmul %413, %351, %cst_302 {dimension_numbers = #tpu.dot_dimension_numbers<[1], [0], [0], [1], [0, 0, 1, 1], [], []>} : vector<1x672xbf16>, vector<672x192xbf16>, vector<1x192xf32> -> vector<1x192xf32>
    %cst_303 = arith.constant dense<0.000000e+00> : vector<192xf32>
    %415 = vector.multi_reduction <add>, %414, %cst_303 [0] : vector<1x192xf32> to vector<192xf32>
    %416 = vector.shape_cast %415 : vector<192xf32> to vector<1x192xf32>
    %417 = arith.addf %400, %416 : vector<1x192xf32>
    %418 = arith.mulf %414, %414 : vector<1x192xf32>
    %cst_304 = arith.constant dense<0.000000e+00> : vector<192xf32>
    %419 = vector.multi_reduction <add>, %418, %cst_304 [0] : vector<1x192xf32> to vector<192xf32>
    %420 = vector.shape_cast %419 : vector<192xf32> to vector<1x192xf32>
    %421 = arith.addf %404, %420 : vector<1x192xf32>
    %cst_305 = arith.constant 4.000000e+00 : f32
    %422 = vector.broadcast %cst_305 : f32 to vector<1x192xf32>
    %423 = arith.divf %417, %422 : vector<1x192xf32>
    %cst_306 = arith.constant 4.000000e+00 : f32
    %424 = vector.broadcast %cst_306 : f32 to vector<1x192xf32>
    %425 = arith.divf %421, %424 : vector<1x192xf32>
    %426 = arith.mulf %423, %423 : vector<1x192xf32>
    %427 = arith.subf %425, %426 : vector<1x192xf32>
    %cst_307 = arith.constant 9.99999974E-6 : f32
    %428 = vector.broadcast %cst_307 : f32 to vector<1x192xf32>
    %429 = arith.addf %427, %428 : vector<1x192xf32>
    %430 = math.rsqrt %429 : vector<1x192xf32>
    %c0_308 = arith.constant 0 : index
    %c0_309 = arith.constant 0 : index
    %431 = vector.load %arg13[%c0_308, %c0_309] : memref<1x192xf32, #tpu.memory_space<vmem>>, vector<1x192xf32>
    %432 = arith.mulf %430, %431 : vector<1x192xf32>
    %c0_310 = arith.constant 0 : index
    %c0_311 = arith.constant 0 : index
    %433 = vector.load %arg14[%c0_310, %c0_311] : memref<1x192xf32, #tpu.memory_space<vmem>>, vector<1x192xf32>
    %434 = arith.subf %363, %423 : vector<1x192xf32>
    %435 = arith.mulf %434, %432 : vector<1x192xf32>
    %436 = arith.addf %435, %433 : vector<1x192xf32>
    %437 = arith.subf %380, %423 : vector<1x192xf32>
    %438 = arith.mulf %437, %432 : vector<1x192xf32>
    %439 = arith.addf %438, %433 : vector<1x192xf32>
    %440 = arith.maximumf %436, %439 : vector<1x192xf32>
    %cst_312 = arith.constant 0.000000e+00 : f32
    %441 = vector.broadcast %cst_312 : f32 to vector<1x192xf32>
    %442 = arith.maximumf %440, %441 : vector<1x192xf32>
    %c0_313 = arith.constant 0 : index
    %c0_314 = arith.constant 0 : index
    %443 = vector.load %arg24[%c0_313, %c0_314] : memref<2x192xf32, #tpu.memory_space<vmem>>, vector<1x192xf32>
    tpu.vector_store %arg24[%c0_313, %c0_314], %442 {strides = array<i32>} : memref<2x192xf32, #tpu.memory_space<vmem>>, vector<1x192xf32>,
    %444 = arith.subf %397, %423 : vector<1x192xf32>
    %445 = arith.mulf %444, %432 : vector<1x192xf32>
    %446 = arith.addf %445, %433 : vector<1x192xf32>
    %447 = arith.subf %414, %423 : vector<1x192xf32>
    %448 = arith.mulf %447, %432 : vector<1x192xf32>
    %449 = arith.addf %448, %433 : vector<1x192xf32>
    %450 = arith.maximumf %446, %449 : vector<1x192xf32>
    %cst_315 = arith.constant 0.000000e+00 : f32
    %451 = vector.broadcast %cst_315 : f32 to vector<1x192xf32>
    %452 = arith.maximumf %450, %451 : vector<1x192xf32>
    %c1_316 = arith.constant 1 : index
    %c0_317 = arith.constant 0 : index
    %453 = vector.load %arg24[%c1_316, %c0_317] : memref<2x192xf32, #tpu.memory_space<vmem>>, vector<1x192xf32>
    tpu.vector_store %arg24[%c1_316, %c0_317], %452 {strides = array<i32>} : memref<2x192xf32, #tpu.memory_space<vmem>>, vector<1x192xf32>,
    %c0_318 = arith.constant 0 : index
    %c0_319 = arith.constant 0 : index
    %454 = vector.load %arg24[%c0_318, %c0_319] : memref<2x192xf32, #tpu.memory_space<vmem>>, vector<1x192xf32>
    %c1_320 = arith.constant 1 : index
    %c0_321 = arith.constant 0 : index
    %455 = vector.load %arg24[%c1_320, %c0_321] : memref<2x192xf32, #tpu.memory_space<vmem>>, vector<1x192xf32>
    %456 = tpu.concatenate %454, %455 in 0 : vector<1x192xf32>, vector<1x192xf32> -> vector<2x192xf32>
    %457 = arith.truncf %456 : vector<2x192xf32> to vector<2x192xbf16>
    %c0_322 = arith.constant 0 : index
    %c0_323 = arith.constant 0 : index
    %458 = vector.load %arg6[%c0_322, %c0_323] : memref<192x192xbf16, #tpu.memory_space<vmem>>, vector<192x192xbf16>
    %cst_324 = arith.constant dense<0.000000e+00> : vector<2x192xf32>
    %459 = tpu.matmul %457, %458, %cst_324 {dimension_numbers = #tpu.dot_dimension_numbers<[1], [0], [0], [1], [0, 0, 1, 1], [], []>} : vector<2x192xbf16>, vector<192x192xbf16>, vector<2x192xf32> -> vector<2x192xf32>
    %cst_325 = arith.constant dense<0.000000e+00> : vector<192xf32>
    %460 = vector.multi_reduction <add>, %459, %cst_325 [0] : vector<2x192xf32> to vector<192xf32>
    %461 = vector.shape_cast %460 : vector<192xf32> to vector<1x192xf32>
    %cst_326 = arith.constant 2.000000e+00 : f32
    %462 = vector.broadcast %cst_326 : f32 to vector<1x192xf32>
    %463 = arith.divf %461, %462 : vector<1x192xf32>
    %464 = arith.mulf %459, %459 : vector<2x192xf32>
    %cst_327 = arith.constant dense<0.000000e+00> : vector<192xf32>
    %465 = vector.multi_reduction <add>, %464, %cst_327 [0] : vector<2x192xf32> to vector<192xf32>
    %466 = vector.shape_cast %465 : vector<192xf32> to vector<1x192xf32>
    %cst_328 = arith.constant 2.000000e+00 : f32
    %467 = vector.broadcast %cst_328 : f32 to vector<1x192xf32>
    %468 = arith.divf %466, %467 : vector<1x192xf32>
    %469 = arith.mulf %463, %463 : vector<1x192xf32>
    %470 = arith.subf %468, %469 : vector<1x192xf32>
    %471 = vector.broadcast %463 : vector<1x192xf32> to vector<2x192xf32>
    %472 = arith.subf %459, %471 : vector<2x192xf32>
    %cst_329 = arith.constant 9.99999974E-6 : f32
    %473 = vector.broadcast %cst_329 : f32 to vector<1x192xf32>
    %474 = arith.addf %470, %473 : vector<1x192xf32>
    %475 = math.rsqrt %474 : vector<1x192xf32>
    %476 = vector.broadcast %475 : vector<1x192xf32> to vector<2x192xf32>
    %477 = arith.mulf %472, %476 : vector<2x192xf32>
    %c0_330 = arith.constant 0 : index
    %c0_331 = arith.constant 0 : index
    %478 = vector.load %arg15[%c0_330, %c0_331] : memref<1x192xf32, #tpu.memory_space<vmem>>, vector<1x192xf32>
    %479 = vector.broadcast %478 : vector<1x192xf32> to vector<2x192xf32>
    %480 = arith.mulf %477, %479 : vector<2x192xf32>
    %c0_332 = arith.constant 0 : index
    %c0_333 = arith.constant 0 : index
    %481 = vector.load %arg16[%c0_332, %c0_333] : memref<1x192xf32, #tpu.memory_space<vmem>>, vector<1x192xf32>
    %482 = vector.broadcast %481 : vector<1x192xf32> to vector<2x192xf32>
    %483 = arith.addf %480, %482 : vector<2x192xf32>
    %cst_334 = arith.constant 0.000000e+00 : f32
    %484 = vector.broadcast %cst_334 : f32 to vector<2x192xf32>
    %485 = arith.maximumf %483, %484 : vector<2x192xf32>
    %c0_335 = arith.constant 0 : index
    %c0_336 = arith.constant 0 : index
    %486 = vector.load %arg17[%c0_335, %c0_336] : memref<192x16xf32, #tpu.memory_space<vmem>>, vector<192x16xf32>
    %cst_337 = arith.constant dense<0.000000e+00> : vector<2x16xf32>
    %487 = tpu.matmul %485, %486, %cst_337 {dimension_numbers = #tpu.dot_dimension_numbers<[1], [0], [0], [1], [0, 0, 1, 1], [], []>} : vector<2x192xf32>, vector<192x16xf32>, vector<2x16xf32> -> vector<2x16xf32>
    %c0_338 = arith.constant 0 : index
    %c0_339 = arith.constant 0 : index
    %488 = vector.load %arg18[%c0_338, %c0_339] : memref<1x16xf32, #tpu.memory_space<vmem>>, vector<1x16xf32>
    %489 = vector.broadcast %488 : vector<1x16xf32> to vector<2x16xf32>
    %490 = arith.addf %487, %489 : vector<2x16xf32>
    %c0_340 = arith.constant 0 : index
    %c0_341 = arith.constant 0 : index
    %491 = vector.load %arg1[%c0_340, %c0_341] : memref<2x16xf32, #tpu.memory_space<vmem>>, vector<2x16xf32>
    %cst_342 = arith.constant 9.99999993E-9 : f32
    %cst_343 = arith.constant 1.000000e+00 : f32
    %492 = vector.broadcast %cst_342 : f32 to vector<2x16xf32>
    %493 = arith.maximumf %492, %491 : vector<2x16xf32>
    %494 = vector.broadcast %cst_343 : f32 to vector<2x16xf32>
    %495 = arith.minimumf %494, %493 : vector<2x16xf32>
    %496 = math.log %495 : vector<2x16xf32>
    %497 = arith.addf %490, %496 : vector<2x16xf32>
    %cst_344 = arith.constant 1.000000e+00 : f32
    %498 = vector.broadcast %cst_344 : f32 to vector<2x16xf32>
    %499 = arith.subf %498, %495 : vector<2x16xf32>
    %500 = math.log %499 : vector<2x16xf32>
    %501 = arith.subf %497, %500 : vector<2x16xf32>
    %cst_345 = arith.constant 5.000000e-01 : f32
    %502 = vector.broadcast %cst_345 : f32 to vector<2x16xf32>
    %503 = arith.divf %501, %502 : vector<2x16xf32>
    %cst_346 = arith.constant 0.000000e+00 : f32
    %504 = vector.broadcast %cst_346 : f32 to vector<2x16xf32>
    %505 = arith.subf %504, %503 : vector<2x16xf32>
    %506 = math.exp %505 : vector<2x16xf32>
    %cst_347 = arith.constant 1.000000e+00 : f32
    %507 = vector.broadcast %cst_347 : f32 to vector<2x16xf32>
    %508 = arith.addf %507, %506 : vector<2x16xf32>
    %cst_348 = arith.constant 1.000000e+00 : f32
    %509 = vector.broadcast %cst_348 : f32 to vector<2x16xf32>
    %510 = arith.divf %509, %508 : vector<2x16xf32>
    %c0_349 = arith.constant 0 : index
    %c0_350 = arith.constant 0 : index
    %511 = vector.load %arg19[%c0_349, %c0_350] : memref<2x16xf32, #tpu.memory_space<vmem>>, vector<2x16xf32>
    tpu.vector_store %arg19[%c0_349, %c0_350], %510 {strides = array<i32>} : memref<2x16xf32, #tpu.memory_space<vmem>>, vector<2x16xf32>,
    %c0_351 = arith.constant 0 : index
    %c0_352 = arith.constant 0 : index
    %512 = vector.load %arg20[%c0_351, %c0_352] : memref<2x16xf32, #tpu.memory_space<vmem>>, vector<2x16xf32>
    tpu.vector_store %arg20[%c0_351, %c0_352], %490 {strides = array<i32>} : memref<2x16xf32, #tpu.memory_space<vmem>>, vector<2x16xf32>,
    return
  }
}

</mosaic_0001>

<bundles_post_ra>
// kernel: tpu_custom_call.1
= control target key start
LH: loop header
LB: loop body
LE: loop exit
PB: predicated region body
PF: predicated region fallthrough
CT: control target
= control target key end

     0   :  { %s6451_s0 = inlined_call_operand.vmem [shape: f32[44,4], index: 0, kind: input, shape index: {}]   ;;  %s6452_s1 = inlined_call_operand.vmem [shape: f32[2,16], index: 1, kind: input, shape index: {}]   ;;  %s6453_s2 = inlined_call_operand.vmem [shape: bf16[28,24], index: 2, kind: input, shape index: {}]   ;;  %s6454_s3 = inlined_call_operand.vmem [shape: bf16[168,48], index: 3, kind: input, shape index: {}]   ;;  %s6455_s4 = inlined_call_operand.vmem [shape: bf16[336,96], index: 4, kind: input, shape index: {}]   ;;  %s6456_s5 = inlined_call_operand.vmem [shape: bf16[672,192], index: 5, kind: input, shape index: {}]   ;;  %s6457_s6 = inlined_call_operand.vmem [shape: bf16[192,192], index: 6, kind: input, shape index: {}]   ;;  %s6458_s7 = inlined_call_operand.vmem [shape: f32[1,24], index: 7, kind: input, shape index: {}]   ;;  %s6459_s8 = inlined_call_operand.vmem [shape: f32[1,24], index: 8, kind: input, shape index: {}]   ;;  %s6460_s9 = inlined_call_operand.vmem [shape: f32[1,48], index: 9, kind: input, shape index: {}]   ;;  %s6461_s10 = inlined_call_operand.vmem [shape: f32[1,48], index: 10, kind: input, shape index: {}]   ;;  %s6462_s11 = inlined_call_operand.vmem [shape: f32[1,96], index: 11, kind: input, shape index: {}]   ;;  %s6463_s12 = inlined_call_operand.vmem [shape: f32[1,96], index: 12, kind: input, shape index: {}]   ;;  %s6464_s13 = inlined_call_operand.vmem [shape: f32[1,192], index: 13, kind: input, shape index: {}]   ;;  %s6465_s14 = inlined_call_operand.vmem [shape: f32[1,192], index: 14, kind: input, shape index: {}]   ;;  %s6466_s15 = inlined_call_operand.vmem [shape: f32[1,192], index: 15, kind: input, shape index: {}]   ;;  %s6467_s16 = inlined_call_operand.vmem [shape: f32[1,192], index: 16, kind: input, shape index: {}]   ;;  %s6468_s17 = inlined_call_operand.vmem [shape: f32[192,16], index: 17, kind: input, shape index: {}]   ;;  %s6469_s18 = inlined_call_operand.vmem [shape: f32[1,16], index: 18, kind: input, shape index: {}]   ;;  %s6470_s19 = inlined_call_operand.hbm [shape: f32[2,16], index: 19, kind: output, shape index: {0}]   ;;  %s6471_s20 = inlined_call_operand.hbm [shape: f32[2,16], index: 20, kind: output, shape index: {1}]  }
   0x1   :  { %6603 = sst [smem:[#allocation75_spill]] %s6451_s0 }
   0x2   :  { %6604 = sst [smem:[#allocation76_spill]] %s6452_s1 }
   0x3   :  { %6605 = sst [smem:[#allocation77_spill]] %s6453_s2 }
   0x4   :  { %6606 = sst [smem:[#allocation78_spill]] %s6454_s3 }
   0x5   :  { %6607 = sst [smem:[#allocation79_spill]] %s6455_s4 }
   0x6   :  { %26 = vsyncpa [#allocation7], 0  ;;  %s6608_s23 = sld [smem:[#allocation75_spill]]  ;;  %s4441_s29 = smov 4   ;;  %v4445_v17 = vmov 0.0   ;;  %vm67_vm0 = vcmask 195584  }
   0x7   :  { %s4442_s30 = smov 12   ;;  %s6609_s25 = sld [smem:[#allocation77_spill]]  ;;  %3874 = vmatprep.subr.bf16.mxu0 %v4445_v17  ;;  %vm149_vm1 = vcmask 1045504   ;;  %3882 = vmatprep.subr.bf16.mxu1 %v4445_v17  ;;  %68 = vst.msk [vmem:[#allocation2] sm:$0xff] %vm67_vm0, %v4445_v17  ;;  %69 = vst.msk [vmem:[#allocation2 + $0x8] sm:$0xff] %vm67_vm0, %v4445_v17  ;;  %vm4448_vm2 = vmmov 0  }
   0x8   :  { %s4443_s4 = smov 8   ;;  %s4444_s0 = smov 16   ;;  %70 = vst.msk [vmem:[#allocation2 + $0x10] sm:$0xff] %vm67_vm0, %v4445_v17  ;;  %3878 = vmatprep.mubr.msk.bf16.mxu0 %vm4448_vm2, %v4445_v17  ;;  %3886 = vmatprep.mubr.msk.bf16.mxu1 %vm4448_vm2, %v4445_v17 }
   0x9   :  { %s4446_s26 = smov 20  }
   0xc   :  { %v4569_v0 = vld [vmem:[%s6608_s23 + $0x1] ss:$2 sm:$0xff]  ;;  %v3572_v1 = vld [vmem:[%s6608_s23 + $0x2] ss:$2 sm:$0xff] }
   0xd   :  { %v4050_v2 = vpack.i.bf16 %v3572_v1, %v4569_v0  ;;  %v3574_v3 = vld [vmem:[%s6608_s23 + $0x4] ss:$2 sm:$0xff]  ;;  %v3575_v4 = vld [vmem:[%s6608_s23 + $0x5] ss:$2 sm:$0xff] }
   0xe   :  { %v3573_v5 = vld [vmem:[%s6608_s23 + $0x3] ss:$2 sm:$0xff]  ;;  %v4065_v8 = vpack.i.bf16 %v3575_v4, %v3574_v3  ;;  %v3576_v9 = vld [vmem:[%s6608_s23 + $0x6] ss:$2 sm:$0xff] }
   0xf   :  { %v4060_v6 = vpack.i.bf16 %v3574_v3, %v3573_v5  ;;  %4051 = vrot.lane.b32.xlu0 %v4050_v2, %s4441_s29  ;;  %v4055_v7 = vpack.i.bf16 %v3573_v5, %v3572_v1  ;;  %v3580_v10 = vld [vmem:[%s6608_s23 + $0x7] ss:$2 sm:$0xff]  ;;  %v4600_v12 = vld [vmem:[%s6608_s23 + $0x17] ss:$2 sm:$0xff]  ;;  %v3584_v13 = vld [vmem:[%s6608_s23 + $0x18] ss:$2 sm:$0xff]  ;;  %v4070_v14 = vpack.i.bf16 %v3576_v9, %v3575_v4 }
  0x10   :  { %v4595_v11 = vld [vmem:[%s6609_s25] sm:$0xff]   ;;  %v4075_v15 = vpack.i.bf16 %v3580_v10, %v3576_v9  ;;  %v4176_v18 = vld [vmem:[%s6609_s25 + $0x8] sm:$0x3f]   ;;  %v4080_v20 = vpack.i.bf16 %v3584_v13, %v4600_v12  ;;  %s4447_s25 = smov 24  }
  0x11   :  { %4061 = vrot.lane.b32.xlu1 %v4060_v6, %s4442_s30  ;;  %v3585_v16 = vld [vmem:[%s6608_s23 + $0x19] ss:$2 sm:$0xff]  ;;  %3875 = vmatpush3.bf16.msra.mxu0 %v4595_v11  ;;  %v3586_v19 = vld [vmem:[%s6608_s23 + $0x1a] ss:$2 sm:$0xff]  ;;  %v4632_v22 = vsel %vm149_vm1, %v4176_v18, 0 }
  0x12   :  { %3883 = vmatpush3.bf16.msra.mxu1 %v4595_v11  ;;  %3876 = vmatprep.subr.bf16.mxu0 %v4445_v17  ;;  %v3587_v21 = vld [vmem:[%s6608_s23 + $0x1b] ss:$2 sm:$0xff]  ;;  %v4085_v23 = vpack.i.bf16 %v3585_v16, %v3584_v13  ;;  %v3588_v24 = vld [vmem:[%s6608_s23 + $0x1c] ss:$2 sm:$0xff]  ;;  %v4090_v25 = vpack.i.bf16 %v3586_v19, %v3585_v16 }
  0x13   :  { %4056 = vrot.lane.b32.xlu0 %v4055_v7, %s4443_s4  ;;  %3884 = vmatprep.subr.bf16.mxu1 %v4445_v17  ;;  %v4095_v26 = vpack.i.bf16 %v3587_v21, %v3586_v19  ;;  %v4100_v27 = vpack.i.bf16 %v3588_v24, %v3587_v21  ;;  %v3590_v28 = vld [vmem:[%s6608_s23 + $0x1d] ss:$2 sm:$0xff] }
  0x15   :  { %4066 = vrot.lane.b32.xlu1 %v4065_v8, %s4444_s0  ;;  %3877 = vmatpush3.bf16.msra.mxu0 %v4632_v22 }
  0x16   :  { %3885 = vmatpush3.bf16.msra.mxu1 %v4632_v22  ;;  %3890 = vmatprep.subr.bf16.mxu0 %v4445_v17 }
  0x17   :  { %4071 = vrot.lane.b32.xlu0 %v4070_v14, %s4446_s26  ;;  %3898 = vmatprep.subr.bf16.mxu1 %v4445_v17 }
  0x19   :  { %4076 = vrot.lane.b32.xlu1 %v4075_v15, %s4447_s25 }
  0x1b   :  { %4081 = vrot.lane.b32.xlu0 %v4080_v20, %s4441_s29 }
  0x1d   :  { %4086 = vrot.lane.b32.xlu1 %v4085_v23, %s4443_s4 }
  0x1f   :  { %4091 = vrot.lane.b32.xlu0 %v4090_v25, %s4442_s30 }
  0x21   :  { %4096 = vrot.lane.b32.xlu1 %v4095_v26, %s4444_s0 }
  0x23   :  { %4101 = vrot.lane.b32.xlu0 %v4100_v27, %s4446_s26 }
  0x25   :  { %333 = vrot.lane.b32.xlu1 %v3588_v24, %s4447_s25 }
  0x27   :  { %421 = vrot.lane.b32.xlu0 %v3590_v28, %s4447_s25 }
  0x28   :  { %27 = vsyncpa [#allocation9], 0  ;;  %vm122_vm3 = vcmask 31744   ;;  %v85_v33 = vld [vmem:[%s6608_s23] ss:$2 sm:$0xff]  ;;  %vm124_vm4 = vcmask 64512  }
  0x29   :  { %vm126_vm5 = vcmask 97280   ;;  %vm128_vm6 = vcmask 130048   ;;  %vm130_vm7 = vcmask 162816   ;;  %v3582_v60 = vld [vmem:[%s6608_s23 + $0x16] ss:$2 sm:$0xff]  ;;  %vm145_vm8 = vcmask 228352  }
  0x2a   :  { %vm71_vm9 = vcmask 191488   ;;  %s6610_s26 = sld [smem:[#allocation78_spill]]  ;;  %vm73_vm10 = vcmask 392192   ;;  %vm78_vm11 = vcmask 785408   ;;  %s4450_s4 = smov 48   ;;  %vm664_vm12 = vcmask 1043456  }
  0x2b   :  { %72 = vst.msk [vmem:[#allocation2 + $0x18] sm:$0xf] %vm71_vm9, %v4445_v17  ;;  %s4451_s2 = smov 96   ;;  %s4452_s27 = smov 72   ;;  %vm76_vm13 = vcmask 388096   ;;  %vm589_vm14 = vcmask 588800  }
  0x2c   :  { %74 = vst.msk [vmem:[#allocation3] sm:$0xff] %vm73_vm10, %v4445_v17  ;;  %75 = vst.msk [vmem:[#allocation3 + $0x8] sm:$0xff] %vm73_vm10, %v4445_v17  ;;  %s4453_s28 = smov 120   ;;  %vm592_vm15 = vcmask 982016   ;;  %vm660_vm1 = vcmask 326656   ;;  %s6613_s21 = sld [smem:[#allocation79_spill]] }
  0x2d   :  { %79 = vst.msk [vmem:[#allocation4] sm:$0xff] %vm78_vm11, %v4445_v17  ;;  %80 = vst.msk [vmem:[#allocation4 + $0x8] sm:$0xff] %vm78_vm11, %v4445_v17  ;;  %s4455_s29 = smov 112   ;;  %vm3347_vm9 = vcmask 517120  }
  0x2e   :  { %77 = vst.msk [vmem:[#allocation3 + $0x10] sm:$0xf] %vm76_vm13, %v4445_v17 }
  0x81   :  { %v4052_v29 = vpop.permute.xlu0 %4051 }
  0x82   :  { %v4054_v31 = vunpack.i.h.bf16 %v4052_v29  ;;  %v4053_v32 = vunpack.i.l.bf16 %v4052_v29 }
  0x83   :  { %v4062_v30 = vpop.permute.xlu1 %4061 }
  0x84   :  { %v4064_v35 = vunpack.i.h.bf16 %v4062_v30  ;;  %v4063_v36 = vunpack.i.l.bf16 %v4062_v30  ;;  %v231_v40 = vsel %vm122_vm3, %v4569_v0, %v4054_v31  ;;  %v123_v41 = vsel %vm122_vm3, %v85_v33, %v4053_v32  ;;  %v4714_v33 = vld [vmem:[%s6610_s26 + $0x8] sm:$0xff]  }
  0x85   :  { %v4057_v34 = vpop.permute.xlu0 %4056  ;;  %v4449_v32 = vmov 0  }
  0x86   :  { %v4059_v37 = vunpack.i.h.bf16 %v4057_v34  ;;  %v4058_v38 = vunpack.i.l.bf16 %v4057_v34  ;;  %v4723_v34 = vld [vmem:[%s6610_s26 + $0x10] sm:$0xff]  }
  0x87   :  { %v4067_v39 = vpop.permute.xlu1 %4066 }
  0x88   :  { %v4069_v42 = vunpack.i.h.bf16 %v4067_v39  ;;  %v4068_v43 = vunpack.i.l.bf16 %v4067_v39  ;;  %v125_v44 = vsel %vm124_vm4, %v123_v41, %v4058_v38  ;;  %v232_v45 = vsel %vm124_vm4, %v231_v40, %v4059_v37  ;;  %v4750_v37 = vld [vmem:[%s6610_s26 + $0x28] sm:$0xff]   ;;  %v4759_v38 = vld [vmem:[%s6610_s26 + $0x30] sm:$0xff]   ;;  %v4768_v39 = vld [vmem:[%s6610_s26 + $0x38] sm:$0xff]  }
  0x89   :  { %v127_v46 = vsel %vm126_vm5, %v125_v44, %v4063_v36  ;;  %v233_v47 = vsel %vm126_vm5, %v232_v45, %v4064_v35  ;;  %v4072_v48 = vpop.permute.xlu0 %4071  ;;  %v4732_v35 = vld [vmem:[%s6610_s26 + $0x18] sm:$0xff]   ;;  %v4741_v36 = vld [vmem:[%s6610_s26 + $0x20] sm:$0xff]  }
  0x8a   :  { %v129_v49 = vsel %vm128_vm6, %v127_v46, %v4068_v43  ;;  %v234_v50 = vsel %vm128_vm6, %v233_v47, %v4069_v42  ;;  %v4074_v51 = vunpack.i.h.bf16 %v4072_v48  ;;  %v4073_v52 = vunpack.i.l.bf16 %v4072_v48 }
  0x8b   :  { %v4077_v53 = vpop.permute.xlu1 %4076 }
  0x8c   :  { %v4079_v54 = vunpack.i.h.bf16 %v4077_v53  ;;  %v4078_v55 = vunpack.i.l.bf16 %v4077_v53  ;;  %v131_v56 = vsel %vm130_vm7, %v129_v49, %v4073_v52  ;;  %v235_v57 = vsel %vm130_vm7, %v234_v50, %v4074_v51 }
  0x8d   :  { %v4082_v61 = vpop.permute.xlu0 %4081 }
  0x8e   :  { %v132_v58 = vsel %vm67_vm0, %v131_v56, %v4078_v55  ;;  %v236_v59 = vsel %vm67_vm0, %v235_v57, %v4079_v54  ;;  %v4084_v0 = vunpack.i.h.bf16 %v4082_v61  ;;  %v4083_v1 = vunpack.i.l.bf16 %v4082_v61 }
  0x8f   :  { %v133_v62 = vpack.c.bf16 %v132_v58, %v132_v58  ;;  %v237_v63 = vpack.c.bf16 %v236_v59, %v236_v59  ;;  %v4087_v2 = vpop.permute.xlu1 %4086 }
  0x90   :  { %v4089_v3 = vunpack.i.h.bf16 %v4087_v2  ;;  %v4088_v4 = vunpack.i.l.bf16 %v4087_v2  ;;  %v424_v5 = vsel %vm122_vm3, %v4600_v12, %v4084_v0  ;;  %v336_v6 = vsel %vm122_vm3, %v3582_v60, %v4083_v1 }
  0x91   :  { %3879 = vmatmul.mubr.msk.bf16.vlgmr.msra.gmra.mrb[0].mxu0 %vm145_vm8, %v133_v62  ;;  %3887 = vmatmul.mubr.msk.bf16.vlgmr.msra.gmra.mrb[0].mxu1 %vm145_vm8, %v237_v63  ;;  %v4092_v7 = vpop.permute.xlu0 %4091  ;;  %vm1264_vm3 = vcmask 654336  }
  0x92   :  { %3891 = vmatpush3.bf16.msra.mxu0 %v4595_v11  ;;  %3899 = vmatpush3.bf16.msra.mxu1 %v4595_v11  ;;  %v4094_v8 = vunpack.i.h.bf16 %v4092_v7  ;;  %v4093_v9 = vunpack.i.l.bf16 %v4092_v7  ;;  %v337_v12 = vsel %vm124_vm4, %v336_v6, %v4088_v4  ;;  %v425_v13 = vsel %vm124_vm4, %v424_v5, %v4089_v3 }
  0x93   :  { %v4097_v10 = vpop.permute.xlu1 %4096  ;;  %3892 = vmatprep.subr.bf16.mxu0 %v4445_v17  ;;  %3900 = vmatprep.subr.bf16.mxu1 %v4445_v17  ;;  %vm1129_vm4 = vcmask 523264  }
  0x94   :  { %v4099_v14 = vunpack.i.h.bf16 %v4097_v10  ;;  %v4098_v15 = vunpack.i.l.bf16 %v4097_v10  ;;  %3894 = vmatprep.mubr.msk.bf16.mxu0 %vm4448_vm2, %v4445_v17  ;;  %3902 = vmatprep.mubr.msk.bf16.mxu1 %vm4448_vm2, %v4445_v17  ;;  %v338_v11 = vsel %vm126_vm5, %v337_v12, %v4093_v9  ;;  %v426_v16 = vsel %vm126_vm5, %v425_v13, %v4094_v8 }
  0x95   :  { %v4102_v18 = vpop.permute.xlu0 %4101  ;;  %vm1131_vm5 = vcmask 916480  }
  0x96   :  { %3893 = vmatpush3.bf16.msra.mxu0 %v4632_v22  ;;  %3901 = vmatpush3.bf16.msra.mxu1 %v4632_v22  ;;  %v4104_v19 = vunpack.i.h.bf16 %v4102_v18  ;;  %v4103_v20 = vunpack.i.l.bf16 %v4102_v18  ;;  %v339_v23 = vsel %vm128_vm6, %v338_v11, %v4098_v15  ;;  %v427_v24 = vsel %vm128_vm6, %v426_v16, %v4099_v14  ;;  %v4705_v22 = vld [vmem:[%s6610_s26] sm:$0xff]  }
  0x97   :  { %v334_v21 = vpop.permute.xlu1 %333  ;;  %668 = vmatprep.subr.bf16.mxu0 %v4449_v32  ;;  %757 = vmatprep.subr.bf16.mxu1 %v4449_v32 }
  0x98   :  { %v340_v25 = vsel %vm130_vm7, %v339_v23, %v4103_v20  ;;  %v428_v26 = vsel %vm130_vm7, %v427_v24, %v4104_v19  ;;  %vm3146_vm7 = vcmask 1040384  }
  0x99   :  { %v341_v27 = vsel %vm67_vm0, %v340_v25, %v334_v21  ;;  %v422_v28 = vpop.permute.xlu0 %421 }
  0x9a   :  { %v342_v29 = vpack.c.bf16 %v341_v27, %v341_v27  ;;  %v429_v30 = vsel %vm67_vm0, %v428_v26, %v422_v28 }
  0x9b   :  { %v430_v31 = vpack.c.bf16 %v429_v30, %v429_v30 }
  0x9c   :  { %3895 = vmatmul.mubr.msk.bf16.vlgmr.msra.gmra.mrb[4].mxu0 %vm145_vm8, %v342_v29 }
  0x9d   :  { %3903 = vmatmul.mubr.msk.bf16.vlgmr.msra.gmra.mrb[4].mxu1 %vm145_vm8, %v430_v31  ;;  %669 = vmatpush1.bf16.msra.mxu0 %v4705_v22  ;;  %vm3339_vm8 = vcmask 1041408  }
  0x9e   :  { %758 = vmatpush1.bf16.msra.mxu1 %v4705_v22  ;;  %670 = vmatprep.subr.bf16.mxu0 %v4449_v32 }
  0x9f   :  { %759 = vmatprep.subr.bf16.mxu1 %v4449_v32 }
  0xa1   :  { %671 = vmatpush1.bf16.msra.mxu0 %v4714_v33 }
  0xa2   :  { %760 = vmatpush1.bf16.msra.mxu1 %v4714_v33  ;;  %672 = vmatprep.subr.bf16.mxu0 %v4449_v32 }
  0xa3   :  { %761 = vmatprep.subr.bf16.mxu1 %v4449_v32 }
  0xa5   :  { %673 = vmatpush1.bf16.msra.mxu0 %v4723_v34 }
  0xa6   :  { %762 = vmatpush1.bf16.msra.mxu1 %v4723_v34  ;;  %674 = vmatprep.subr.bf16.mxu0 %v4449_v32 }
  0xa7   :  { %763 = vmatprep.subr.bf16.mxu1 %v4449_v32 }
  0xa9   :  { %675 = vmatpush1.bf16.msra.mxu0 %v4732_v35 }
  0xaa   :  { %764 = vmatpush1.bf16.msra.mxu1 %v4732_v35  ;;  %676 = vmatprep.subr.bf16.mxu0 %v4449_v32 }
  0xab   :  { %765 = vmatprep.subr.bf16.mxu1 %v4449_v32 }
  0xad   :  { %677 = vmatpush1.bf16.msra.mxu0 %v4741_v36 }
  0xae   :  { %766 = vmatpush1.bf16.msra.mxu1 %v4741_v36  ;;  %678 = vmatprep.subr.bf16.mxu0 %v4449_v32 }
  0xaf   :  { %767 = vmatprep.subr.bf16.mxu1 %v4449_v32 }
  0xb1   :  { %679 = vmatpush1.bf16.msra.mxu0 %v4750_v37 }
  0xb2   :  { %768 = vmatpush1.bf16.msra.mxu1 %v4750_v37  ;;  %680 = vmatprep.subr.bf16.mxu0 %v4449_v32 }
  0xb3   :  { %769 = vmatprep.subr.bf16.mxu1 %v4449_v32 }
  0xb5   :  { %681 = vmatpush1.bf16.msra.mxu0 %v4759_v38 }
  0xb6   :  { %770 = vmatpush1.bf16.msra.mxu1 %v4759_v38  ;;  %682 = vmatprep.subr.bf16.mxu0 %v4449_v32 }
  0xb7   :  { %771 = vmatprep.subr.bf16.mxu1 %v4449_v32 }
  0xb9   :  { %683 = vmatpush1.bf16.msra.mxu0 %v4768_v39 }
  0xba   :  { %772 = vmatpush1.bf16.msra.mxu1 %v4768_v39  ;;  %684 = vmatprep.subr.bf16.mxu0 %v4449_v32 }
  0xbb   :  { %773 = vmatprep.subr.bf16.mxu1 %v4449_v32 }
 0x164   :  { %v4776_v40 = vpop.f32.mrb[0].mxu0  ;;  %v4778_v41 = vpop.f32.mrb[0].mxu1 }
 0x165   :  { %v193_v42 = vsel %vm67_vm0, %v4776_v40, 0.0  ;;  %v201_v43 = vmul.f32 %v4776_v40, %v4776_v40  ;;  %v281_v44 = vsel %vm67_vm0, %v4778_v41, 0.0  ;;  %v289_v45 = vmul.f32 %v4778_v41, %v4778_v41  ;;  %v3880_v46 = vpop.f32.mrb[1].mxu0  ;;  %v3888_v47 = vpop.f32.mrb[1].mxu1 }
 0x166   :  { %v194_v48 = vrot.slane %v193_v42, 4  ;;  %v282_v49 = vrot.slane %v281_v44, 4  ;;  %v190_v50 = vpop.f32.mrb[2].mxu0  ;;  %v278_v51 = vpop.f32.mrb[2].mxu1 }
 0x167   :  { %v202_v52 = vsel %vm67_vm0, %v201_v43, 0.0  ;;  %v290_v53 = vsel %vm67_vm0, %v289_v45, 0.0  ;;  %v3881_v54 = vpop.f32.mrb[3].mxu0  ;;  %v3889_v55 = vpop.f32.mrb[3].mxu1 }
 0x168   :  { %v195_v56 = vadd.f32 %v194_v48, %v193_v42  ;;  %v203_v57 = vrot.slane %v202_v52, 4  ;;  %v283_v58 = vadd.f32 %v282_v49, %v281_v44  ;;  %v291_v59 = vrot.slane %v290_v53, 4 }
 0x16a   :  { %v196_v60 = vrot.slane %v195_v56, 2  ;;  %v204_v61 = vadd.f32 %v203_v57, %v202_v52  ;;  %v284_v62 = vrot.slane %v283_v58, 2  ;;  %v292_v63 = vadd.f32 %v291_v59, %v290_v53 }
 0x16c   :  { %v197_v0 = vadd.f32 %v196_v60, %v195_v56  ;;  %v205_v1 = vrot.slane %v204_v61, 2  ;;  %v285_v2 = vadd.f32 %v284_v62, %v283_v58  ;;  %v293_v3 = vrot.slane %v292_v63, 2 }
 0x16e   :  { %v198_v4 = vrot.slane %v197_v0, 1  ;;  %v206_v5 = vadd.f32 %v205_v1, %v204_v61  ;;  %v286_v6 = vrot.slane %v285_v2, 1  ;;  %v294_v7 = vadd.f32 %v293_v3, %v292_v63 }
 0x16f   :  { %v4790_v13 = vpop.f32.mrb[4].mxu0 }
 0x170   :  { %v199_v8 = vadd.f32 %v198_v4, %v197_v0  ;;  %v207_v9 = vrot.slane %v206_v5, 1  ;;  %v287_v10 = vadd.f32 %v286_v6, %v285_v2  ;;  %v295_v12 = vrot.slane %v294_v7, 1  ;;  %v3896_v11 = vpop.f32.mrb[5].mxu0  ;;  %v4796_v16 = vpop.f32.mrb[4].mxu1 }
 0x171   :  { %v386_v14 = vsel %vm67_vm0, %v4790_v13, 0.0  ;;  %v394_v15 = vmul.f32 %v4790_v13, %v4790_v13  ;;  %v383_v23 = vpop.f32.mrb[6].mxu0  ;;  %v3904_v24 = vpop.f32.mrb[5].mxu1  ;;  %v474_v26 = vsel %vm67_vm0, %v4796_v16, 0.0  ;;  %v482_v27 = vmul.f32 %v4796_v16, %v4796_v16 }
 0x172   :  { %v208_v18 = vadd.f32 %v207_v9, %v206_v5  ;;  %v288_v19 = vadd.f32 %v287_v10, %v199_v8  ;;  %v296_v20 = vadd.f32 %v295_v12, %v294_v7  ;;  %v387_v21 = vrot.slane %v386_v14, 4  ;;  %v3897_v28 = vpop.f32.mrb[7].mxu0  ;;  %v471_v29 = vpop.f32.mrb[6].mxu1 }
 0x173   :  { %v395_v25 = vsel %vm67_vm0, %v394_v15, 0.0  ;;  %v475_v43 = vrot.slane %v474_v26, 4  ;;  %v3905_v44 = vpop.f32.mrb[7].mxu1  ;;  %v483_v45 = vsel %vm67_vm0, %v482_v27, 0.0 }
 0x174   :  { %v297_v30 = vadd.f32 %v296_v20, %v208_v18  ;;  %v388_v31 = vadd.f32 %v387_v21, %v386_v14  ;;  %v396_v42 = vrot.slane %v395_v25, 4  ;;  %v484_v49 = vrot.slane %v483_v45, 4  ;;  %v498_v20 = vld [vmem:[%s6458_s7] sm:$0x1]  ;;  %s4454_s7 = smov 32  }
 0x175   :  { %v476_v48 = vadd.f32 %v475_v43, %v474_v26  ;;  %v6476_v18 = vlaneseq }
 0x176   :  { %v389_v46 = vrot.slane %v388_v31, 2  ;;  %v397_v47 = vadd.f32 %v396_v42, %v395_v25  ;;  %v485_v53 = vadd.f32 %v484_v49, %v483_v45  ;;  %v4826_v45 = vld [vmem:[%s6610_s26 + $0x40] sm:$0xff]  }
 0x177   :  { %v477_v52 = vrot.slane %v476_v48, 2  ;;  %685 = vmatpush1.bf16.msra.mxu0 %v4826_v45  ;;  %774 = vmatpush1.bf16.msra.mxu1 %v4826_v45 }
 0x178   :  { %v390_v50 = vadd.f32 %v389_v46, %v388_v31  ;;  %v398_v51 = vrot.slane %v397_v47, 2  ;;  %v486_v57 = vrot.slane %v485_v53, 2  ;;  %686 = vmatprep.subr.bf16.mxu0 %v4449_v32  ;;  %775 = vmatprep.subr.bf16.mxu1 %v4449_v32  ;;  %v4839_v46 = vld [vmem:[%s6610_s26 + $0x48] sm:$0xff]  }
 0x179   :  { %v478_v56 = vadd.f32 %v477_v52, %v476_v48 }
 0x17a   :  { %v391_v54 = vrot.slane %v390_v50, 1  ;;  %v399_v55 = vadd.f32 %v398_v51, %v397_v47  ;;  %v487_v61 = vadd.f32 %v486_v57, %v485_v53  ;;  %v4187_v57 = vld [vmem:[%s6610_s26 + $0x50] ss:$0 sps:$4 sm:$0xff]  }
 0x17b   :  { %v479_v60 = vrot.slane %v478_v56, 1  ;;  %687 = vmatpush1.bf16.msra.mxu0 %v4839_v46  ;;  %776 = vmatpush1.bf16.msra.mxu1 %v4839_v46 }
 0x17c   :  { %v392_v58 = vadd.f32 %v391_v54, %v390_v50  ;;  %v400_v59 = vrot.slane %v399_v55, 1  ;;  %v488_v1 = vrot.slane %v487_v61, 1  ;;  %688 = vmatprep.subr.bf16.mxu0 %v4449_v32  ;;  %777 = vmatprep.subr.bf16.mxu1 %v4449_v32 }
 0x17d   :  { %v480_v0 = vadd.f32 %v479_v60, %v478_v56 }
 0x17e   :  { %v393_v62 = vadd.f32 %v392_v58, %v288_v19  ;;  %v401_v63 = vadd.f32 %v400_v59, %v399_v55  ;;  %v489_v4 = vadd.f32 %v488_v1, %v487_v61  ;;  %v4809_v19 = vshrl.u32 %v6476_v18, 7 }
 0x17f   :  { %v4855_v58 = vsel %vm664_vm12, %v4187_v57, 0 }
 0x180   :  { %v402_v2 = vadd.f32 %v401_v63, %v297_v30  ;;  %v481_v3 = vadd.f32 %v480_v0, %v393_v62  ;;  %6611 = vst [vmem:[#allocation12_spill] sm:$0xff] %v4809_v19  ;;  %v4815_v21 = vsub.s32 0, %v4809_v19  ;;  %689 = vmatpush1.bf16.msra.mxu0 %v4855_v58  ;;  %778 = vmatpush1.bf16.msra.mxu1 %v4855_v58 }
 0x181   :  { %863 = vmatprep.subr.bf16.mxu0 %v4449_v32  ;;  %952 = vmatprep.subr.bf16.mxu1 %v4449_v32 }
 0x182   :  { %v490_v5 = vadd.f32 %v489_v4, %v402_v2  ;;  %v492_v6 = vmul.f32 0.03125, %v481_v3  ;;  %6612 = vst [vmem:[#allocation13_spill] sm:$0xff] %v4815_v21 }
 0x184   :  { %v493_v7 = vmul.f32 0.03125, %v490_v5  ;;  %v494_v8 = vmul.f32 %v492_v6, %v492_v6  ;;  %v501_v9 = vsub.f32 %v4776_v40, %v492_v6  ;;  %v514_v10 = vsub.f32 %v4778_v41, %v492_v6 }
 0x185   :  { %v520_v12 = vsub.f32 %v4790_v13, %v492_v6  ;;  %v523_v14 = vsub.f32 %v4796_v16, %v492_v6  ;;  %v3592_v16 = vld [vmem:[%s6459_s8] ss:$0 sm:$0xff] }
 0x186   :  { %v495_v15 = vsub.f32 %v493_v7, %v494_v8 }
 0x188   :  { %v496_v11 = vadd.f32 1e-05, %v495_v15 }
 0x18a   :  { %4371 = vrsqrt.f32 %v496_v11 }
 0x194   :  { %v4372_v40 = vpop.eup %4371 }
 0x195   :  { %v499_v41 = vmul.f32 %v4372_v40, %v498_v20 }
 0x197   :  { %v505_v13 = vrot.slane %v499_v41, %v4815_v21 }
 0x199   :  { %v506_v23 = vmul.f32 %v505_v13, %v501_v9  ;;  %v515_v24 = vmul.f32 %v514_v10, %v505_v13  ;;  %v521_v25 = vmul.f32 %v520_v12, %v505_v13  ;;  %v524_v26 = vmul.f32 %v523_v14, %v505_v13 }
 0x19b   :  { %v513_v27 = vadd.f32 %v3592_v16, %v506_v23  ;;  %v516_v28 = vadd.f32 %v3592_v16, %v515_v24  ;;  %v522_v29 = vadd.f32 %v3592_v16, %v521_v25  ;;  %v525_v30 = vadd.f32 %v3592_v16, %v524_v26 }
 0x19d   :  { %v517_v31 = vmax.f32 %v513_v27, %v516_v28  ;;  %v526_v42 = vmax.f32 %v522_v29, %v525_v30 }
 0x19f   :  { %v518_v43 = vmax.f32 %v517_v31, 0.0  ;;  %v527_v44 = vmax.f32 %v526_v42, 0.0 }
 0x1a1   :  { %519 = vst.msk [vmem:[#allocation2 + $0x3] sm:$0xff] %vm67_vm0, %v518_v43  ;;  %528 = vst.msk [vmem:[#allocation2 + $0x11] sm:$0xff] %vm67_vm0, %v527_v44 }
 0x1a8   :  { %v554_v47 = vld [vmem:[#allocation2 + $0x2] ss:$2 sm:$0xf]  ;;  %v556_v48 = vld [vmem:[#allocation2 + $0x3] ss:$2 sm:$0xf] }
 0x1a9   :  { %v4110_v49 = vpack.i.bf16 %v556_v48, %v554_v47  ;;  %v552_v50 = vld [vmem:[#allocation2 + $0x1] ss:$2 sm:$0xf]  ;;  %v558_v52 = vld [vmem:[#allocation2 + $0x4] ss:$2 sm:$0xf] }
 0x1aa   :  { %v4105_v51 = vpack.i.bf16 %v554_v47, %v552_v50  ;;  %v560_v53 = vld [vmem:[#allocation2 + $0x5] ss:$2 sm:$0xf]  ;;  %v4115_v55 = vpack.i.bf16 %v558_v52, %v556_v48  ;;  %v562_v56 = vld [vmem:[#allocation2 + $0x6] ss:$2 sm:$0xf] }
 0x1ab   :  { %4111 = vrot.lane.b32.xlu0 %v4110_v49, %s4450_s4  ;;  %v4120_v54 = vpack.i.bf16 %v560_v53, %v558_v52  ;;  %v4125_v59 = vpack.i.bf16 %v562_v56, %v560_v53  ;;  %v4857_v60 = vld [vmem:[#allocation2 + $0xf] ss:$2 sm:$0xf]  ;;  %v819_v61 = vld [vmem:[#allocation2 + $0x10] ss:$2 sm:$0xf] }
 0x1ac   :  { %4106 = vrot.lane.b32.xlu1 %v4105_v51, %s4447_s25  ;;  %v4130_v62 = vpack.i.bf16 %v819_v61, %v4857_v60  ;;  %v821_v63 = vld [vmem:[#allocation2 + $0x11] ss:$2 sm:$0xf]  ;;  %v823_v0 = vld [vmem:[#allocation2 + $0x12] ss:$2 sm:$0xf] }
 0x1ad   :  { %v726_v1 = vld [vmem:[#allocation2 + $0x7] ss:$2 sm:$0xf]  ;;  %v4140_v2 = vpack.i.bf16 %v823_v0, %v821_v63  ;;  %v4135_v3 = vpack.i.bf16 %v821_v63, %v819_v61  ;;  %v825_v4 = vld [vmem:[#allocation2 + $0x13] ss:$2 sm:$0xf] }
 0x1ae   :  { %v827_v5 = vld [vmem:[#allocation2 + $0x14] ss:$2 sm:$0xf]  ;;  %v4145_v7 = vpack.i.bf16 %v825_v4, %v823_v0  ;;  %v921_v8 = vld [vmem:[#allocation2 + $0x15] ss:$2 sm:$0xf] }
 0x1af   :  { %4121 = vrot.lane.b32.xlu0 %v4120_v54, %s4451_s2  ;;  %v4150_v6 = vpack.i.bf16 %v827_v5, %v825_v4  ;;  %v550_v11 = vld [vmem:[#allocation2] ss:$2 sm:$0xf] }
 0x1b0   :  { %4116 = vrot.lane.b32.xlu1 %v4115_v55, %s4452_s27 }
 0x1b3   :  { %584 = vrot.lane.b32.xlu0 %v562_v56, %s4444_s0 }
 0x1b4   :  { %4126 = vrot.lane.b32.xlu1 %v4125_v59, %s4453_s28 }
 0x1b7   :  { %4131 = vrot.lane.b32.xlu0 %v4130_v62, %s4447_s25 }
 0x1b8   :  { %743 = vrot.lane.b32.xlu1 %v726_v1, %s4444_s0 }
 0x1bb   :  { %4141 = vrot.lane.b32.xlu0 %v4140_v2, %s4452_s27 }
 0x1bc   :  { %4136 = vrot.lane.b32.xlu1 %v4135_v3, %s4450_s4 }
 0x1bf   :  { %4151 = vrot.lane.b32.xlu0 %v4150_v6, %s4453_s28 }
 0x1c0   :  { %4146 = vrot.lane.b32.xlu1 %v4145_v7, %s4451_s2 }
 0x1c3   :  { %938 = vrot.lane.b32.xlu0 %v921_v8, %s4444_s0 }
 0x1c4   :  { %849 = vrot.lane.b32.xlu1 %v827_v5, %s4444_s0 }
 0x21d   :  { %v4112_v9 = vpop.permute.xlu0 %4111 }
 0x21e   :  { %v4107_v10 = vpop.permute.xlu1 %4106  ;;  %v4113_v15 = vunpack.i.l.bf16 %v4112_v9  ;;  %v4114_v20 = vunpack.i.h.bf16 %v4112_v9 }
 0x21f   :  { %v4109_v12 = vunpack.i.h.bf16 %v4107_v10  ;;  %v4108_v14 = vunpack.i.l.bf16 %v4107_v10 }
 0x221   :  { %v587_v40 = vsel %vm67_vm0, %v550_v11, %v4108_v14  ;;  %v4122_v41 = vpop.permute.xlu0 %4121  ;;  %v746_v13 = vsel %vm67_vm0, %v552_v50, %v4109_v12 }
 0x222   :  { %v4117_v16 = vpop.permute.xlu1 %4116  ;;  %v4123_v25 = vunpack.i.l.bf16 %v4122_v41  ;;  %v588_v26 = vsel %vm73_vm10, %v587_v40, %v4113_v15  ;;  %v4124_v27 = vunpack.i.h.bf16 %v4122_v41  ;;  %v747_v29 = vsel %vm73_vm10, %v746_v13, %v4114_v20 }
 0x223   :  { %v4119_v23 = vunpack.i.h.bf16 %v4117_v16  ;;  %v4118_v24 = vunpack.i.l.bf16 %v4117_v16 }
 0x225   :  { %v590_v28 = vsel %vm589_vm14, %v588_v26, %v4118_v24  ;;  %v585_v30 = vpop.permute.xlu0 %584  ;;  %v748_v31 = vsel %vm589_vm14, %v747_v29, %v4119_v23 }
 0x226   :  { %v4127_v42 = vpop.permute.xlu1 %4126  ;;  %v591_v47 = vsel %vm78_vm11, %v590_v28, %v4123_v25  ;;  %v749_v50 = vsel %vm78_vm11, %v748_v31, %v4124_v27 }
 0x227   :  { %v4129_v43 = vunpack.i.h.bf16 %v4127_v42  ;;  %v4128_v44 = vunpack.i.l.bf16 %v4127_v42 }
 0x229   :  { %v593_v48 = vsel %vm592_vm15, %v591_v47, %v4128_v44  ;;  %v594_v49 = vsel %vm128_vm6, %v4128_v44, %v585_v30  ;;  %v4883_v51 = vpop.permute.xlu0 %4131  ;;  %v750_v54 = vsel %vm592_vm15, %v749_v50, %v4129_v43 }
 0x22a   :  { %v595_v52 = vpack.c.bf16 %v593_v48, %v593_v48  ;;  %v596_v53 = vpack.c.bf16 %v594_v49, %v594_v49  ;;  %v744_v55 = vpop.permute.xlu1 %743  ;;  %v752_v59 = vpack.c.bf16 %v750_v54, %v750_v54 }
 0x22b   :  { %v751_v56 = vsel %vm128_vm6, %v4129_v43, %v744_v55 }
 0x22c   :  { %v753_v57 = vpack.c.bf16 %v751_v56, %v751_v56  ;;  %3604 = vmatprep.mubr.msk.bf16.mxu0 %vm660_vm1, %v596_v53 }
 0x22d   :  { %701 = vmatmul.mubr.bf16.vlgmr.msra.gmra.mrb[8].mxu0 %v595_v52  ;;  %v4888_v61 = vpop.permute.xlu0 %4141 }
 0x22e   :  { %864 = vmatpush1.bf16.msra.mxu0 %v4705_v22  ;;  %v4137_v62 = vpop.permute.xlu1 %4136  ;;  %3605 = vmatprep.mubr.msk.bf16.mxu1 %vm660_vm1, %v753_v57  ;;  %v4143_v9 = vunpack.i.l.bf16 %v4888_v61  ;;  %v4144_v14 = vunpack.i.h.bf16 %v4888_v61 }
 0x22f   :  { %790 = vmatmul.mubr.bf16.vlgmr.msra.gmra.mrb[8].mxu1 %v752_v59  ;;  %865 = vmatprep.subr.bf16.mxu0 %v4449_v32  ;;  %v4139_v8 = vunpack.i.h.bf16 %v4137_v62 }
 0x230   :  { %953 = vmatpush1.bf16.msra.mxu1 %v4705_v22 }
 0x231   :  { %v4894_v63 = vpop.permute.xlu0 %4151  ;;  %954 = vmatprep.subr.bf16.mxu1 %v4449_v32 }
 0x232   :  { %866 = vmatpush1.bf16.msra.mxu0 %v4714_v33  ;;  %v4147_v0 = vpop.permute.xlu1 %4146  ;;  %v4154_v1 = vunpack.i.h.bf16 %v4894_v63  ;;  %v4153_v2 = vunpack.i.l.bf16 %v4894_v63 }
 0x233   :  { %867 = vmatprep.subr.bf16.mxu0 %v4449_v32  ;;  %v4149_v11 = vunpack.i.h.bf16 %v4147_v0 }
 0x234   :  { %955 = vmatpush1.bf16.msra.mxu1 %v4714_v33  ;;  %v4133_v33 = vunpack.i.l.bf16 %v4883_v51 }
 0x235   :  { %v939_v3 = vpop.permute.xlu0 %938  ;;  %956 = vmatprep.subr.bf16.mxu1 %v4449_v32 }
 0x236   :  { %868 = vmatpush1.bf16.msra.mxu0 %v4723_v34  ;;  %v946_v22 = vsel %vm128_vm6, %v4154_v1, %v939_v3  ;;  %v850_v4 = vpop.permute.xlu1 %849 }
 0x237   :  { %v948_v5 = vpack.c.bf16 %v946_v22, %v946_v22  ;;  %v857_v6 = vsel %vm128_vm6, %v4153_v2, %v850_v4  ;;  %869 = vmatprep.subr.bf16.mxu0 %v4449_v32 }
 0x238   :  { %v859_v7 = vpack.c.bf16 %v857_v6, %v857_v6  ;;  %957 = vmatpush1.bf16.msra.mxu1 %v4723_v34  ;;  %v4138_v34 = vunpack.i.l.bf16 %v4137_v62 }
 0x239   :  { %958 = vmatprep.subr.bf16.mxu1 %v4449_v32  ;;  %3607 = vmatprep.mubr.msk.bf16.mxu1 %vm660_vm1, %v948_v5 }
 0x23a   :  { %870 = vmatpush1.bf16.msra.mxu0 %v4732_v35  ;;  %3606 = vmatprep.mubr.msk.bf16.mxu0 %vm660_vm1, %v859_v7 }
 0x23b   :  { %871 = vmatprep.subr.bf16.mxu0 %v4449_v32 }
 0x23c   :  { %959 = vmatpush1.bf16.msra.mxu1 %v4732_v35  ;;  %v4134_v35 = vunpack.i.h.bf16 %v4883_v51 }
 0x23d   :  { %960 = vmatprep.subr.bf16.mxu1 %v4449_v32 }
 0x23e   :  { %872 = vmatpush1.bf16.msra.mxu0 %v4741_v36  ;;  %v941_v12 = vsel %vm67_vm0, %v4857_v60, %v4134_v35 }
 0x23f   :  { %873 = vmatprep.subr.bf16.mxu0 %v4449_v32  ;;  %v942_v15 = vsel %vm73_vm10, %v941_v12, %v4139_v8  ;;  %v4999_v8 = vld [vmem:[%s6613_s21 + $0x48] sm:$0xff]   ;;  %v5031_v12 = vld [vmem:[%s6613_s21 + $0x90] sm:$0xff]  }
 0x240   :  { %961 = vmatpush1.bf16.msra.mxu1 %v4741_v36  ;;  %v815_v36 = vld [vmem:[#allocation2 + $0xe] ss:$2 sm:$0xf]  ;;  %v943_v40 = vsel %vm589_vm14, %v942_v15, %v4144_v14  ;;  %v5038_v14 = vld [vmem:[%s6613_s21 + $0x58] sm:$0xff]  }
 0x241   :  { %962 = vmatprep.subr.bf16.mxu1 %v4449_v32  ;;  %v944_v60 = vsel %vm78_vm11, %v943_v40, %v4149_v11  ;;  %v5045_v15 = vld [vmem:[%s6613_s21 + $0x18] sm:$0xff]   ;;  %v5069_v40 = vld [vmem:[%s6613_s21 + $0xa0] sm:$0xff]  }
 0x242   :  { %874 = vmatpush1.bf16.msra.mxu0 %v4750_v37  ;;  %v5050_v11 = vld [vmem:[%s6613_s21 + $0x98] sm:$0xff]  }
 0x243   :  { %875 = vmatprep.subr.bf16.mxu0 %v4449_v32 }
 0x244   :  { %963 = vmatpush1.bf16.msra.mxu1 %v4750_v37  ;;  %v852_v37 = vsel %vm67_vm0, %v815_v36, %v4133_v33  ;;  %v4982_v33 = vld [vmem:[%s6613_s21 + $0x40] sm:$0xff]   ;;  %vm1133_vm0 = vcmask 261120  }
 0x245   :  { %964 = vmatprep.subr.bf16.mxu1 %v4449_v32  ;;  %v853_v10 = vsel %vm73_vm10, %v852_v37, %v4138_v34  ;;  %v4987_v34 = vld [vmem:[%s6613_s21] sm:$0xff]   ;;  %v5007_v37 = vld [vmem:[%s6613_s21 + $0x8] sm:$0xff]  }
 0x246   :  { %876 = vmatpush1.bf16.msra.mxu0 %v4759_v38  ;;  %v854_v20 = vsel %vm589_vm14, %v853_v10, %v4143_v9  ;;  %v4994_v36 = vld [vmem:[%s6613_s21 + $0x80] sm:$0xff]   ;;  %v5012_v9 = vld [vmem:[%s6613_s21 + $0x88] sm:$0xff]   ;;  %v5019_v10 = vld [vmem:[%s6613_s21 + $0x50] sm:$0xff]  }
 0x247   :  { %877 = vmatprep.subr.bf16.mxu0 %v4449_v32 }
 0x248   :  { %965 = vmatpush1.bf16.msra.mxu1 %v4759_v38  ;;  %v4148_v38 = vunpack.i.l.bf16 %v4147_v0 }
 0x249   :  { %966 = vmatprep.subr.bf16.mxu1 %v4449_v32 }
 0x24a   :  { %878 = vmatpush1.bf16.msra.mxu0 %v4768_v39 }
 0x24b   :  { %879 = vmatprep.subr.bf16.mxu0 %v4449_v32 }
 0x24c   :  { %967 = vmatpush1.bf16.msra.mxu1 %v4768_v39  ;;  %v855_v39 = vsel %vm78_vm11, %v854_v20, %v4148_v38  ;;  %v5026_v38 = vld [vmem:[%s6613_s21 + $0x10] sm:$0xff]   ;;  %v5057_v20 = vld [vmem:[%s6613_s21 + $0x60] sm:$0xff]  }
 0x24d   :  { %968 = vmatprep.subr.bf16.mxu1 %v4449_v32  ;;  %v856_v41 = vsel %vm592_vm15, %v855_v39, %v4153_v2  ;;  %v5064_v39 = vld [vmem:[%s6613_s21 + $0x20] sm:$0xff]  }
 0x24e   :  { %880 = vmatpush1.bf16.msra.mxu0 %v4826_v45  ;;  %v858_v13 = vpack.c.bf16 %v856_v41, %v856_v41 }
 0x24f   :  { %881 = vmatprep.subr.bf16.mxu0 %v4449_v32 }
 0x250   :  { %969 = vmatpush1.bf16.msra.mxu1 %v4826_v45  ;;  %v945_v45 = vsel %vm592_vm15, %v944_v60, %v4154_v1 }
 0x251   :  { %970 = vmatprep.subr.bf16.mxu1 %v4449_v32  ;;  %v947_v16 = vpack.c.bf16 %v945_v45, %v945_v45 }
 0x252   :  { %882 = vmatpush1.bf16.msra.mxu0 %v4839_v46 }
 0x253   :  { %883 = vmatprep.subr.bf16.mxu0 %v4449_v32 }
 0x254   :  { %971 = vmatpush1.bf16.msra.mxu1 %v4839_v46 }
 0x255   :  { %972 = vmatprep.subr.bf16.mxu1 %v4449_v32 }
 0x256   :  { %884 = vmatpush1.bf16.msra.mxu0 %v4855_v58 }
 0x257   :  { %3762 = vmatprep.subr.bf16.mxu0 %v4982_v33 }
 0x258   :  { %973 = vmatpush1.bf16.msra.mxu1 %v4855_v58 }
 0x259   :  { %896 = vmatmul.mubr.bf16.vlgmr.msra.gmra.mrb[12].mxu0 %v858_v13  ;;  %3906 = vmatprep.subr.bf16.mxu1 %v4445_v17 }
 0x25a   :  { %3763 = vmatpush3.bf16.msra.mxu0 %v4987_v34 }
 0x25b   :  { %985 = vmatmul.mubr.bf16.vlgmr.msra.gmra.mrb[12].mxu1 %v947_v16  ;;  %3764 = vmatprep.subr.bf16.mxu0 %v4999_v8 }
 0x25c   :  { %3916 = vmatprep.mubr.msk.bf16.mxu1 %vm4448_vm2, %v4445_v17  ;;  %3907 = vmatpush3.bf16.msra.mxu1 %v4994_v36 }
 0x25d   :  { %3908 = vmatprep.subr.bf16.mxu1 %v4445_v17 }
 0x25e   :  { %3765 = vmatpush3.bf16.msra.mxu0 %v5007_v37 }
 0x25f   :  { %3766 = vmatprep.subr.bf16.mxu0 %v5019_v10 }
 0x260   :  { %3909 = vmatpush3.bf16.msra.mxu1 %v5012_v9 }
 0x261   :  { %3910 = vmatprep.subr.bf16.mxu1 %v4445_v17 }
 0x262   :  { %3767 = vmatpush3.bf16.msra.mxu0 %v5026_v38 }
 0x263   :  { %3768 = vmatprep.subr.bf16.mxu0 %v5038_v14 }
 0x264   :  { %3911 = vmatpush3.bf16.msra.mxu1 %v5031_v12 }
 0x265   :  { %3912 = vmatprep.subr.bf16.mxu1 %v4445_v17 }
 0x266   :  { %3769 = vmatpush3.bf16.msra.mxu0 %v5045_v15 }
 0x267   :  { %3770 = vmatprep.subr.bf16.mxu0 %v5057_v20 }
 0x268   :  { %3913 = vmatpush3.bf16.msra.mxu1 %v5050_v11 }
 0x269   :  { %3914 = vmatprep.subr.bf16.mxu1 %v4445_v17 }
 0x26a   :  { %3771 = vmatpush3.bf16.msra.mxu0 %v5064_v39 }
 0x26c   :  { %3915 = vmatpush3.bf16.msra.mxu1 %v5069_v40 }
 0x26d   :  { %3790 = vmatprep.subr.bf16.mxu1 %v4982_v33 }
 0x300   :  { %v4963_v46 = vpop.f32.mrb[8].mxu0 }
 0x301   :  { %v708_v32 = vsel %vm76_vm13, %v4963_v46, 0.0  ;;  %v716_v23 = vmul.f32 %v4963_v46, %v4963_v46  ;;  %v704_v24 = vpop.f32.mrb[9].mxu0 }
 0x302   :  { %v709_v25 = vrot.slane %v708_v32, 4  ;;  %v705_v26 = vpop.f32.mrb[10].mxu0  ;;  %v4969_v58 = vpop.f32.mrb[8].mxu1 }
 0x303   :  { %v717_v27 = vsel %vm76_vm13, %v716_v23, 0.0  ;;  %v797_v28 = vsel %vm76_vm13, %v4969_v58, 0.0  ;;  %v805_v29 = vmul.f32 %v4969_v58, %v4969_v58  ;;  %v706_v30 = vpop.f32.mrb[11].mxu0  ;;  %v793_v31 = vpop.f32.mrb[9].mxu1 }
 0x304   :  { %v710_v42 = vadd.f32 %v709_v25, %v708_v32  ;;  %v718_v43 = vrot.slane %v717_v27, 4  ;;  %v798_v44 = vrot.slane %v797_v28, 4  ;;  %v794_v47 = vpop.f32.mrb[10].mxu1 }
 0x305   :  { %v806_v48 = vsel %vm76_vm13, %v805_v29, 0.0  ;;  %v795_v49 = vpop.f32.mrb[11].mxu1 }
 0x306   :  { %v711_v50 = vrot.slane %v710_v42, 2  ;;  %v719_v51 = vadd.f32 %v718_v43, %v717_v27  ;;  %v799_v52 = vadd.f32 %v798_v44, %v797_v28  ;;  %v807_v53 = vrot.slane %v806_v48, 4 }
 0x308   :  { %v712_v54 = vadd.f32 %v711_v50, %v710_v42  ;;  %v720_v55 = vrot.slane %v719_v51, 2  ;;  %v800_v56 = vrot.slane %v799_v52, 2  ;;  %v808_v57 = vadd.f32 %v807_v53, %v806_v48 }
 0x30a   :  { %v713_v59 = vrot.slane %v712_v54, 1  ;;  %v721_v61 = vadd.f32 %v720_v55, %v719_v51  ;;  %v801_v62 = vadd.f32 %v800_v56, %v799_v52  ;;  %v809_v63 = vrot.slane %v808_v57, 2 }
 0x30c   :  { %v722_v0 = vrot.slane %v721_v61, 1  ;;  %v802_v1 = vrot.slane %v801_v62, 1  ;;  %v810_v2 = vadd.f32 %v809_v63, %v808_v57  ;;  %v714_v3 = vadd.f32 %v713_v59, %v712_v54 }
 0x30e   :  { %v803_v22 = vadd.f32 %v802_v1, %v801_v62  ;;  %v811_v4 = vrot.slane %v810_v2, 1  ;;  %v723_v5 = vadd.f32 %v722_v0, %v721_v61 }
 0x310   :  { %v4977_v6 = vadd.f32 %v803_v22, %v714_v3  ;;  %v812_v7 = vadd.f32 %v811_v4, %v810_v2 }
 0x312   :  { %v4989_v35 = vadd.f32 %v812_v7, %v723_v5 }
 0x32c   :  { %v897_v60 = vpop.f32.mrb[12].mxu0 }
 0x32d   :  { %v903_v41 = vsel %vm76_vm13, %v897_v60, 0.0  ;;  %v911_v45 = vmul.f32 %v897_v60, %v897_v60  ;;  %v899_v13 = vpop.f32.mrb[13].mxu0 }
 0x32e   :  { %v904_v16 = vrot.slane %v903_v41, 4  ;;  %v900_v32 = vpop.f32.mrb[14].mxu0  ;;  %v986_v23 = vpop.f32.mrb[12].mxu1 }
 0x32f   :  { %v912_v24 = vsel %vm76_vm13, %v911_v45, 0.0  ;;  %v992_v25 = vsel %vm76_vm13, %v986_v23, 0.0  ;;  %v1000_v26 = vmul.f32 %v986_v23, %v986_v23  ;;  %v901_v27 = vpop.f32.mrb[15].mxu0  ;;  %v988_v28 = vpop.f32.mrb[13].mxu1 }
 0x330   :  { %v905_v29 = vadd.f32 %v904_v16, %v903_v41  ;;  %v913_v30 = vrot.slane %v912_v24, 4  ;;  %v993_v31 = vrot.slane %v992_v25, 4  ;;  %v989_v42 = vpop.f32.mrb[14].mxu1 }
 0x331   :  { %v1001_v43 = vsel %vm76_vm13, %v1000_v26, 0.0  ;;  %v990_v44 = vpop.f32.mrb[15].mxu1 }
 0x332   :  { %v906_v47 = vrot.slane %v905_v29, 2  ;;  %v914_v48 = vadd.f32 %v913_v30, %v912_v24  ;;  %v994_v49 = vadd.f32 %v993_v31, %v992_v25  ;;  %v1002_v50 = vrot.slane %v1001_v43, 4  ;;  %v3608_v31 = vld [vmem:[%s6461_s10] ss:$0 sm:$0xff] }
 0x334   :  { %v907_v51 = vadd.f32 %v906_v47, %v905_v29  ;;  %v915_v52 = vrot.slane %v914_v48, 2  ;;  %v995_v53 = vrot.slane %v994_v49, 2  ;;  %v1003_v54 = vadd.f32 %v1002_v50, %v1001_v43  ;;  %v5094_v50 = vld [vmem:[%s6613_s21 + $0x68] sm:$0xff]  }
 0x335   :  { %3772 = vmatprep.subr.bf16.mxu0 %v5094_v50 }
 0x336   :  { %v908_v55 = vrot.slane %v907_v51, 1  ;;  %v916_v56 = vadd.f32 %v915_v52, %v914_v48  ;;  %v996_v57 = vadd.f32 %v995_v53, %v994_v49  ;;  %v1004_v59 = vrot.slane %v1003_v54, 2 }
 0x338   :  { %v909_v61 = vadd.f32 %v908_v55, %v907_v51  ;;  %v917_v62 = vrot.slane %v916_v56, 1  ;;  %v997_v63 = vrot.slane %v996_v57, 1  ;;  %v1005_v0 = vadd.f32 %v1004_v59, %v1003_v54  ;;  %v5099_v51 = vld [vmem:[%s6613_s21 + $0x28] sm:$0xff]   ;;  %v5106_v54 = vld [vmem:[%s6613_s21 + $0x70] sm:$0xff]  }
 0x339   :  { %3773 = vmatpush3.bf16.msra.mxu0 %v5099_v51  ;;  %v5111_v55 = vld [vmem:[%s6613_s21 + $0x30] sm:$0xff]  }
 0x33a   :  { %v910_v1 = vadd.f32 %v909_v61, %v4977_v6  ;;  %v918_v2 = vadd.f32 %v917_v62, %v916_v56  ;;  %v998_v3 = vadd.f32 %v997_v63, %v996_v57  ;;  %v1006_v22 = vrot.slane %v1005_v0, 1  ;;  %v1016_v6 = vld [vmem:[%s6460_s9] sm:$0x1]  ;;  %3774 = vmatprep.subr.bf16.mxu0 %v5106_v54  ;;  %v5120_v56 = vld [vmem:[%s6613_s21 + $0x78] sm:$0xff]   ;;  %s6751_s9 = sld [smem:[#allocation76_spill]] }
 0x33b   :  { %v5125_v57 = vld [vmem:[%s6613_s21 + $0x38] sm:$0xff]   ;;  %s4456_s21 = smov 64  }
 0x33c   :  { %v919_v4 = vadd.f32 %v918_v2, %v4989_v35  ;;  %v999_v5 = vadd.f32 %v998_v3, %v910_v1  ;;  %v1007_v7 = vadd.f32 %v1006_v22, %v1005_v0  ;;  %v1367_v2 = vld [vmem:[#allocation3 + $0x7] ss:$2 sm:$0x3] }
 0x33d   :  { %3775 = vmatpush3.bf16.msra.mxu0 %v5111_v55 }
 0x33e   :  { %v1008_v41 = vadd.f32 %v1007_v7, %v919_v4  ;;  %v1010_v45 = vmul.f32 0.0625, %v999_v5  ;;  %3776 = vmatprep.subr.bf16.mxu0 %v5120_v56 }
 0x340   :  { %v1011_v13 = vmul.f32 0.0625, %v1008_v41  ;;  %v1012_v16 = vmul.f32 %v1010_v45, %v1010_v45  ;;  %v1019_v32 = vsub.f32 %v4963_v46, %v1010_v45  ;;  %v1032_v24 = vsub.f32 %v4969_v58, %v1010_v45 }
 0x341   :  { %v1038_v25 = vsub.f32 %v897_v60, %v1010_v45  ;;  %v1041_v26 = vsub.f32 %v986_v23, %v1010_v45  ;;  %3777 = vmatpush3.bf16.msra.mxu0 %v5125_v57  ;;  %v1644_v45 = vld [vmem:[#allocation3 + $0x11] ss:$2 sm:$0x3] }
 0x342   :  { %v1013_v27 = vsub.f32 %v1011_v13, %v1012_v16  ;;  %3920 = vmatprep.subr.bf16.mxu0 %v4445_v17 }
 0x344   :  { %v1014_v28 = vadd.f32 1e-05, %v1013_v27  ;;  %v1089_v27 = vld [vmem:[#allocation3] ss:$2 sm:$0x3] }
 0x346   :  { %4373 = vrsqrt.f32 %v1014_v28 }
 0x350   :  { %v4374_v35 = vpop.eup %4373 }
 0x351   :  { %v1017_v29 = vmul.f32 %v4374_v35, %v1016_v6 }
 0x353   :  { %v1023_v30 = vrot.slane %v1017_v29, %v4815_v21 }
 0x355   :  { %v1024_v46 = vmul.f32 %v1023_v30, %v1019_v32  ;;  %v1033_v42 = vmul.f32 %v1032_v24, %v1023_v30  ;;  %v1039_v58 = vmul.f32 %v1038_v25, %v1023_v30  ;;  %v1042_v60 = vmul.f32 %v1041_v26, %v1023_v30 }
 0x357   :  { %v1031_v23 = vadd.f32 %v3608_v31, %v1024_v46  ;;  %v1034_v43 = vadd.f32 %v3608_v31, %v1033_v42  ;;  %v1040_v44 = vadd.f32 %v3608_v31, %v1039_v58  ;;  %v1043_v47 = vadd.f32 %v3608_v31, %v1042_v60 }
 0x359   :  { %v1035_v48 = vmax.f32 %v1031_v23, %v1034_v43  ;;  %v1044_v49 = vmax.f32 %v1040_v44, %v1043_v47 }
 0x35b   :  { %v1036_v52 = vmax.f32 %v1035_v48, 0.0  ;;  %v1045_v53 = vmax.f32 %v1044_v49, 0.0 }
 0x35d   :  { %1037 = vst.msk [vmem:[#allocation3 + $0x3] sm:$0xf] %vm76_vm13, %v1036_v52  ;;  %1046 = vst.msk [vmem:[#allocation3 + $0xd] sm:$0xf] %vm76_vm13, %v1045_v53 }
 0x364   :  { %v1101_v59 = vld [vmem:[#allocation3 + $0x6] ss:$2 sm:$0x3]  ;;  %v1099_v61 = vld [vmem:[#allocation3 + $0x5] ss:$2 sm:$0x3] }
 0x365   :  { %1123 = vrot.lane.b32.xlu0 %v1101_v59, %s4454_s7  ;;  %1119 = vrot.lane.b32.xlu1 %v1099_v61, %s4455_s29  ;;  %v1095_v62 = vld [vmem:[#allocation3 + $0x3] ss:$2 sm:$0x3]  ;;  %v1093_v63 = vld [vmem:[#allocation3 + $0x2] ss:$2 sm:$0x3] }
 0x366   :  { %v1097_v0 = vld [vmem:[#allocation3 + $0x4] ss:$2 sm:$0x3]  ;;  %v5134_v1 = vld [vmem:[#allocation3 + $0x1] ss:$2 sm:$0x3] }
 0x367   :  { %v1507_v3 = vld [vmem:[#allocation3 + $0xf] ss:$2 sm:$0x3]  ;;  %v1509_v22 = vld [vmem:[#allocation3 + $0x10] ss:$2 sm:$0x3] }
 0x368   :  { %v1501_v4 = vld [vmem:[#allocation3 + $0xc] ss:$2 sm:$0x3]  ;;  %v1503_v5 = vld [vmem:[#allocation3 + $0xd] ss:$2 sm:$0x3] }
 0x369   :  { %1111 = vrot.lane.b32.xlu0 %v1095_v62, %s4444_s0  ;;  %1107 = vrot.lane.b32.xlu1 %v1093_v63, %s4451_s2  ;;  %v1505_v7 = vld [vmem:[#allocation3 + $0xe] ss:$2 sm:$0x3]  ;;  %v5149_v41 = vld [vmem:[#allocation3 + $0xb] ss:$2 sm:$0x3] }
 0x36d   :  { %1115 = vrot.lane.b32.xlu1 %v1097_v0, %s4456_s21  ;;  %1103 = vrot.lane.b32.xlu0 %v5134_v1, %s4450_s4 }
 0x371   :  { %1371 = vrot.lane.b32.xlu1 %v1095_v62, %s4451_s2  ;;  %1374 = vrot.lane.b32.xlu0 %v1097_v0, %s4444_s0 }
 0x375   :  { %1377 = vrot.lane.b32.xlu1 %v1099_v61, %s4456_s21  ;;  %1368 = vrot.lane.b32.xlu0 %v1093_v63, %s4450_s4 }
 0x379   :  { %1380 = vrot.lane.b32.xlu1 %v1101_v59, %s4455_s29  ;;  %1384 = vrot.lane.b32.xlu0 %v1367_v2, %s4454_s7 }
 0x37d   :  { %1527 = vrot.lane.b32.xlu1 %v1507_v3, %s4455_s29  ;;  %1531 = vrot.lane.b32.xlu0 %v1509_v22, %s4454_s7 }
 0x381   :  { %1515 = vrot.lane.b32.xlu1 %v1501_v4, %s4451_s2  ;;  %1519 = vrot.lane.b32.xlu0 %v1503_v5, %s4444_s0 }
 0x385   :  { %1523 = vrot.lane.b32.xlu1 %v1505_v7, %s4456_s21  ;;  %1511 = vrot.lane.b32.xlu0 %v5149_v41, %s4450_s4 }
 0x389   :  { %1648 = vrot.lane.b32.xlu1 %v1503_v5, %s4451_s2  ;;  %1651 = vrot.lane.b32.xlu0 %v1505_v7, %s4444_s0 }
 0x38d   :  { %1654 = vrot.lane.b32.xlu1 %v1507_v3, %s4456_s21  ;;  %1645 = vrot.lane.b32.xlu0 %v1501_v4, %s4450_s4 }
 0x391   :  { %1657 = vrot.lane.b32.xlu1 %v1509_v22, %s4455_s29  ;;  %1661 = vrot.lane.b32.xlu0 %v1644_v45, %s4454_s7 }
 0x3d7   :  { %v1124_v13 = vpop.permute.xlu0 %1123  ;;  %v1120_v16 = vpop.permute.xlu1 %1119 }
 0x3d8   :  { %v1134_v32 = vsel %vm1133_vm0, %v1120_v16, %v1124_v13 }
 0x3d9   :  { %v1137_v24 = vpack.c.bf16 %v1134_v32, %v1134_v32 }
 0x3db   :  { %3917 = vmatmul.mubr.msk.bf16.vlgmr.msra.gmra.mrb[16].mxu1 %vm1264_vm3, %v1137_v24  ;;  %v1112_v25 = vpop.permute.xlu0 %1111  ;;  %v1108_v26 = vpop.permute.xlu1 %1107 }
 0x3dc   :  { %3791 = vmatpush3.bf16.msra.mxu1 %v4987_v34  ;;  %v1128_v28 = vsel %vm128_vm6, %v1108_v26, %v1112_v25 }
 0x3dd   :  { %3792 = vmatprep.subr.bf16.mxu1 %v4999_v8 }
 0x3df   :  { %v1116_v6 = vpop.permute.xlu1 %1115  ;;  %v1104_v35 = vpop.permute.xlu0 %1103 }
 0x3e0   :  { %3793 = vmatpush3.bf16.msra.mxu1 %v5007_v37  ;;  %v1130_v29 = vsel %vm1129_vm4, %v1128_v28, %v1116_v6  ;;  %v1126_v30 = vsel %vm73_vm10, %v1089_v27, %v1104_v35 }
 0x3e1   :  { %v1132_v31 = vsel %vm1131_vm5, %v1130_v29, %v1120_v16  ;;  %v1127_v46 = vsel %vm78_vm11, %v1126_v30, %v1108_v26  ;;  %3794 = vmatprep.subr.bf16.mxu1 %v5019_v10 }
 0x3e2   :  { %v1135_v42 = vpack.c.bf16 %v1127_v46, %v1127_v46  ;;  %v1136_v58 = vpack.c.bf16 %v1132_v31, %v1132_v31  ;;  %v1497_v31 = vld [vmem:[#allocation3 + $0xa] ss:$2 sm:$0x3] }
 0x3e3   :  { %v1372_v60 = vpop.permute.xlu1 %1371  ;;  %v1375_v23 = vpop.permute.xlu0 %1374 }
 0x3e4   :  { %3795 = vmatpush3.bf16.msra.mxu1 %v5026_v38  ;;  %1300 = vmatprep.mubr.bf16.mxu0 %v1136_v58  ;;  %v1389_v47 = vsel %vm128_vm6, %v1372_v60, %v1375_v23  ;;  %v5365_v23 = vld [vmem:[%s6456_s5 + $0x54] ss:$8 sps:$4 sm:$0xff]  }
 0x3e5   :  { %1301 = vmatmul.mubr.bf16.vlgmr.msra.gmra.mrb[16].mxu0 %v1135_v42  ;;  %3796 = vmatprep.subr.bf16.mxu1 %v5038_v14  ;;  %6619 = vst [vmem:[#allocation19_spill] sm:$0xff] %v5365_v23 }
 0x3e6   :  { %3921 = vmatpush3.bf16.msra.mxu0 %v4994_v36  ;;  %3930 = vmatprep.mubr.msk.bf16.mxu0 %vm4448_vm2, %v4445_v17 }
 0x3e7   :  { %v1378_v43 = vpop.permute.xlu1 %1377  ;;  %v1369_v44 = vpop.permute.xlu0 %1368  ;;  %3922 = vmatprep.subr.bf16.mxu0 %v4445_v17 }
 0x3e8   :  { %3797 = vmatpush3.bf16.msra.mxu1 %v5045_v15  ;;  %v1390_v48 = vsel %vm1129_vm4, %v1389_v47, %v1378_v43  ;;  %v1387_v63 = vsel %vm73_vm10, %v5134_v1, %v1369_v44  ;;  %v5370_v43 = vld [vmem:[%s6456_s5 + $0x50] ss:$8 sps:$4 sm:$0xff]   ;;  %v5379_v44 = vld [vmem:[%s6456_s5 + $0x64] ss:$8 sps:$4 sm:$0xff]   ;;  %v5384_v47 = vld [vmem:[%s6456_s5 + $0x60] ss:$8 sps:$4 sm:$0xff]  }
 0x3e9   :  { %3798 = vmatprep.subr.bf16.mxu1 %v5057_v20  ;;  %v1388_v22 = vsel %vm78_vm11, %v1387_v63, %v1372_v60  ;;  %v5356_v60 = vld [vmem:[%s6456_s5 + $0x40] ss:$8 sps:$4 sm:$0xff]   ;;  %6620 = vst [vmem:[#allocation20_spill] sm:$0xff] %v5370_v43  ;;  %6621 = vst [vmem:[#allocation21_spill] sm:$0xff] %v5379_v44 }
 0x3ea   :  { %3923 = vmatpush3.bf16.msra.mxu0 %v5012_v9  ;;  %v1393_v45 = vpack.c.bf16 %v1388_v22, %v1388_v22  ;;  %6618 = vst [vmem:[#allocation18_spill] sm:$0xff] %v5356_v60  ;;  %6622 = vst [vmem:[#allocation22_spill] sm:$0xff] %v5384_v47  ;;  %v5440_v63 = vld [vmem:[%s6456_s5 + $0xa0] ss:$8 sps:$4 sm:$0xff]  }
 0x3eb   :  { %v1381_v49 = vpop.permute.xlu1 %1380  ;;  %v1385_v52 = vpop.permute.xlu0 %1384  ;;  %3924 = vmatprep.subr.bf16.mxu0 %v4445_v17  ;;  %6630 = vst [vmem:[#allocation30_spill] sm:$0xff] %v5440_v63 }
 0x3ec   :  { %3799 = vmatpush3.bf16.msra.mxu1 %v5064_v39  ;;  %v1391_v53 = vsel %vm1131_vm5, %v1390_v48, %v1381_v49  ;;  %v1392_v2 = vsel %vm1133_vm0, %v1381_v49, %v1385_v52  ;;  %v5393_v48 = vld [vmem:[%s6456_s5 + $0x74] ss:$8 sps:$4 sm:$0xff]   ;;  %v5398_v49 = vld [vmem:[%s6456_s5 + $0x70] ss:$8 sps:$4 sm:$0xff]   ;;  %v5407_v52 = vld [vmem:[%s6456_s5 + $0x84] ss:$8 sps:$4 sm:$0xff]  }
 0x3ed   :  { %v1394_v59 = vpack.c.bf16 %v1391_v53, %v1391_v53  ;;  %3800 = vmatprep.subr.bf16.mxu1 %v5094_v50  ;;  %v1395_v4 = vpack.c.bf16 %v1392_v2, %v1392_v2  ;;  %6623 = vst [vmem:[#allocation23_spill] sm:$0xff] %v5393_v48  ;;  %6624 = vst [vmem:[#allocation24_spill] sm:$0xff] %v5398_v49  ;;  %v5412_v53 = vld [vmem:[%s6456_s5 + $0x80] ss:$8 sps:$4 sm:$0xff]  }
 0x3ee   :  { %3925 = vmatpush3.bf16.msra.mxu0 %v5031_v12  ;;  %6625 = vst [vmem:[#allocation25_spill] sm:$0xff] %v5407_v52  ;;  %6626 = vst [vmem:[#allocation26_spill] sm:$0xff] %v5412_v53 }
 0x3ef   :  { %v1528_v61 = vpop.permute.xlu1 %1527  ;;  %1431 = vmatprep.mubr.bf16.mxu1 %v1394_v59  ;;  %v1532_v62 = vpop.permute.xlu0 %1531  ;;  %3926 = vmatprep.subr.bf16.mxu0 %v4445_v17  ;;  %v5421_v59 = vld [vmem:[%s6456_s5 + $0x94] ss:$8 sps:$4 sm:$0xff]  }
 0x3f0   :  { %3801 = vmatpush3.bf16.msra.mxu1 %v5099_v51  ;;  %v1539_v6 = vsel %vm1133_vm0, %v1528_v61, %v1532_v62  ;;  %6627 = vst [vmem:[#allocation27_spill] sm:$0xff] %v5421_v59  ;;  %v5435_v62 = vld [vmem:[%s6456_s5 + $0xa4] ss:$8 sps:$4 sm:$0xff]  }
 0x3f1   :  { %3802 = vmatprep.subr.bf16.mxu1 %v5106_v54  ;;  %v1542_v30 = vpack.c.bf16 %v1539_v6, %v1539_v6  ;;  %6629 = vst [vmem:[#allocation29_spill] sm:$0xff] %v5435_v62  ;;  %v5502_v6 = vld [vmem:[%s6456_s5 + $0xf4] ss:$8 sps:$4 sm:$0xff]  }
 0x3f2   :  { %3927 = vmatpush3.bf16.msra.mxu0 %v5050_v11  ;;  %6639 = vst [vmem:[#allocation39_spill] sm:$0xff] %v5502_v6 }
 0x3f3   :  { %v5193_v0 = vpop.permute.xlu1 %1515  ;;  %3928 = vmatprep.subr.bf16.mxu0 %v4445_v17  ;;  %v1520_v3 = vpop.permute.xlu0 %1519 }
 0x3f4   :  { %3803 = vmatpush3.bf16.msra.mxu1 %v5111_v55  ;;  %v1536_v5 = vsel %vm128_vm6, %v5193_v0, %v1520_v3  ;;  %v5449_v3 = vld [vmem:[%s6456_s5 + $0xb4] ss:$8 sps:$4 sm:$0xff]  }
 0x3f5   :  { %3804 = vmatprep.subr.bf16.mxu1 %v5120_v56  ;;  %6631 = vst [vmem:[#allocation31_spill] sm:$0xff] %v5449_v3 }
 0x3f6   :  { %3929 = vmatpush3.bf16.msra.mxu0 %v5069_v40 }
 0x3f7   :  { %v1524_v1 = vpop.permute.xlu1 %1523  ;;  %3818 = vmatprep.subr.bf16.mxu0 %v4982_v33  ;;  %v1512_v24 = vpop.permute.xlu0 %1511 }
 0x3f8   :  { %3805 = vmatpush3.bf16.msra.mxu1 %v5125_v57  ;;  %v1537_v7 = vsel %vm1129_vm4, %v1536_v5, %v1524_v1  ;;  %v1534_v42 = vsel %vm73_vm10, %v1497_v31, %v1512_v24  ;;  %v5463_v1 = vld [vmem:[%s6456_s5 + $0xc4] ss:$8 sps:$4 sm:$0xff]   ;;  %v5513_v31 = vld [vmem:[%s6456_s5 + $0xf0] ss:$8 sps:$4 sm:$0xff]  }
 0x3f9   :  { %v1538_v13 = vsel %vm1131_vm5, %v1537_v7, %v1528_v61  ;;  %3931 = vmatmul.mubr.msk.bf16.vlgmr.msra.gmra.mrb[20].mxu0 %vm1264_vm3, %v1395_v4  ;;  %3934 = vmatprep.subr.bf16.mxu1 %v4445_v17  ;;  %v5426_v61 = vld [vmem:[%s6456_s5 + $0x90] ss:$8 sps:$4 sm:$0xff]   ;;  %6633 = vst [vmem:[#allocation33_spill] sm:$0xff] %v5463_v1  ;;  %v5468_v7 = vld [vmem:[%s6456_s5 + $0xc0] ss:$8 sps:$4 sm:$0xff]   ;;  %6640 = vst [vmem:[#allocation40_spill] sm:$0xff] %v5513_v31 }
 0x3fa   :  { %3819 = vmatpush3.bf16.msra.mxu0 %v4987_v34  ;;  %v1541_v16 = vpack.c.bf16 %v1538_v13, %v1538_v13  ;;  %6628 = vst [vmem:[#allocation28_spill] sm:$0xff] %v5426_v61  ;;  %v5454_v4 = vld [vmem:[%s6456_s5 + $0xb0] ss:$8 sps:$4 sm:$0xff]   ;;  %6634 = vst [vmem:[#allocation34_spill] sm:$0xff] %v5468_v7 }
 0x3fb   :  { %1432 = vmatmul.mubr.bf16.vlgmr.msra.gmra.mrb[20].mxu1 %v1393_v45  ;;  %3820 = vmatprep.subr.bf16.mxu0 %v4999_v8  ;;  %v5211_v32 = vpop.permute.xlu1 %1648  ;;  %v1652_v26 = vpop.permute.xlu0 %1651  ;;  %6632 = vst [vmem:[#allocation32_spill] sm:$0xff] %v5454_v4  ;;  %v5476_v45 = vld [vmem:[%s6456_s5 + $0xd4] ss:$8 sps:$4 sm:$0xff]   ;;  %v5481_v13 = vld [vmem:[%s6456_s5 + $0xd0] ss:$8 sps:$4 sm:$0xff]  }
 0x3fc   :  { %3935 = vmatpush3.bf16.msra.mxu1 %v4994_v36  ;;  %1578 = vmatprep.mubr.bf16.mxu0 %v1541_v16  ;;  %v1666_v28 = vsel %vm128_vm6, %v5211_v32, %v1652_v26  ;;  %6635 = vst [vmem:[#allocation35_spill] sm:$0xff] %v5476_v45  ;;  %6636 = vst [vmem:[#allocation36_spill] sm:$0xff] %v5481_v13  ;;  %v5487_v16 = vld [vmem:[%s6456_s5 + $0xe4] ss:$8 sps:$4 sm:$0xff]  }
 0x3fd   :  { %3936 = vmatprep.subr.bf16.mxu1 %v4445_v17  ;;  %3944 = vmatprep.mubr.msk.bf16.mxu1 %vm4448_vm2, %v4445_v17  ;;  %6637 = vst [vmem:[#allocation37_spill] sm:$0xff] %v5487_v16 }
 0x3fe   :  { %3821 = vmatpush3.bf16.msra.mxu0 %v5007_v37 }
 0x3ff   :  { %3822 = vmatprep.subr.bf16.mxu0 %v5019_v10  ;;  %v1655_v25 = vpop.permute.xlu1 %1654 }
 0x400   :  { %3937 = vmatpush3.bf16.msra.mxu1 %v5012_v9  ;;  %v1667_v35 = vsel %vm1129_vm4, %v1666_v28, %v1655_v25 }
 0x401   :  { %3938 = vmatprep.subr.bf16.mxu1 %v4445_v17 }
 0x402   :  { %3823 = vmatpush3.bf16.msra.mxu0 %v5026_v38 }
 0x403   :  { %3824 = vmatprep.subr.bf16.mxu0 %v5038_v14  ;;  %v1658_v27 = vpop.permute.xlu1 %1657 }
 0x404   :  { %3939 = vmatpush3.bf16.msra.mxu1 %v5031_v12  ;;  %v1668_v29 = vsel %vm1131_vm5, %v1667_v35, %v1658_v27 }
 0x405   :  { %3940 = vmatprep.subr.bf16.mxu1 %v4445_v17  ;;  %v1671_v46 = vpack.c.bf16 %v1668_v29, %v1668_v29  ;;  %v1895_v29 = vld [vmem:[#allocation4] ss:$2 sm:$0x1] }
 0x406   :  { %3825 = vmatpush3.bf16.msra.mxu0 %v5045_v15 }
 0x407   :  { %3826 = vmatprep.subr.bf16.mxu0 %v5057_v20 }
 0x408   :  { %3941 = vmatpush3.bf16.msra.mxu1 %v5050_v11 }
 0x409   :  { %3942 = vmatprep.subr.bf16.mxu1 %v4445_v17 }
 0x40a   :  { %3827 = vmatpush3.bf16.msra.mxu0 %v5064_v39 }
 0x40b   :  { %3828 = vmatprep.subr.bf16.mxu0 %v5094_v50 }
 0x40c   :  { %3943 = vmatpush3.bf16.msra.mxu1 %v5069_v40 }
 0x40d   :  { %3846 = vmatprep.subr.bf16.mxu1 %v4982_v33  ;;  %v1535_v33 = vsel %vm78_vm11, %v1534_v42, %v5193_v0 }
 0x40e   :  { %3829 = vmatpush3.bf16.msra.mxu0 %v5099_v51  ;;  %v1540_v58 = vpack.c.bf16 %v1535_v33, %v1535_v33 }
 0x40f   :  { %3945 = vmatmul.mubr.msk.bf16.vlgmr.msra.gmra.mrb[24].mxu1 %vm1264_vm3, %v1542_v30  ;;  %3830 = vmatprep.subr.bf16.mxu0 %v5106_v54 }
 0x410   :  { %3847 = vmatpush3.bf16.msra.mxu1 %v4987_v34  ;;  %1708 = vmatprep.mubr.bf16.mxu1 %v1671_v46  ;;  %v1646_v34 = vpop.permute.xlu0 %1645 }
 0x411   :  { %3848 = vmatprep.subr.bf16.mxu1 %v4999_v8  ;;  %v1664_v8 = vsel %vm73_vm10, %v5149_v41, %v1646_v34  ;;  %v5351_v41 = vld [vmem:[%s6456_s5 + $0x44] ss:$8 sps:$4 sm:$0xff]   ;;  %vm3540_vm10 = vcmask 123904  }
 0x412   :  { %3831 = vmatpush3.bf16.msra.mxu0 %v5111_v55  ;;  %6617 = vst [vmem:[#allocation17_spill] sm:$0xff] %v5351_v41 }
 0x413   :  { %3832 = vmatprep.subr.bf16.mxu0 %v5120_v56 }
 0x414   :  { %3849 = vmatpush3.bf16.msra.mxu1 %v5007_v37 }
 0x415   :  { %3850 = vmatprep.subr.bf16.mxu1 %v5019_v10 }
 0x416   :  { %3833 = vmatpush3.bf16.msra.mxu0 %v5125_v57 }
 0x417   :  { %3948 = vmatprep.subr.bf16.mxu0 %v4445_v17 }
 0x418   :  { %3851 = vmatpush3.bf16.msra.mxu1 %v5026_v38 }
 0x419   :  { %1579 = vmatmul.mubr.bf16.vlgmr.msra.gmra.mrb[24].mxu0 %v1540_v58  ;;  %3852 = vmatprep.subr.bf16.mxu1 %v5038_v14 }
 0x41a   :  { %3949 = vmatpush3.bf16.msra.mxu0 %v4994_v36  ;;  %3958 = vmatprep.mubr.msk.bf16.mxu0 %vm4448_vm2, %v4445_v17  ;;  %v1662_v36 = vpop.permute.xlu0 %1661  ;;  %vm1348_vm2 = vcmask 779264  }
 0x41b   :  { %3950 = vmatprep.subr.bf16.mxu0 %v4445_v17  ;;  %v1669_v37 = vsel %vm1133_vm0, %v1658_v27, %v1662_v36  ;;  %v5495_v27 = vld [vmem:[%s6456_s5 + $0xe0] ss:$8 sps:$4 sm:$0xff]  }
 0x41c   :  { %3853 = vmatpush3.bf16.msra.mxu1 %v5045_v15  ;;  %v1672_v10 = vpack.c.bf16 %v1669_v37, %v1669_v37  ;;  %v5284_v15 = vld [vmem:[#allocation4 + $0x5] ss:$2 sm:$0x1]  ;;  %6638 = vst [vmem:[#allocation38_spill] sm:$0xff] %v5495_v27 }
 0x41d   :  { %3854 = vmatprep.subr.bf16.mxu1 %v5057_v20 }
 0x41e   :  { %3951 = vmatpush3.bf16.msra.mxu0 %v5012_v9  ;;  %v1665_v9 = vsel %vm78_vm11, %v1664_v8, %v5211_v32 }
 0x41f   :  { %3952 = vmatprep.subr.bf16.mxu0 %v4445_v17  ;;  %v1670_v38 = vpack.c.bf16 %v1665_v9, %v1665_v9 }
 0x420   :  { %3855 = vmatpush3.bf16.msra.mxu1 %v5064_v39  ;;  %v5295_v39 = vld [vmem:[%s6456_s5 + $0x4] ss:$8 sps:$4 sm:$0xff]  }
 0x421   :  { %3856 = vmatprep.subr.bf16.mxu1 %v5094_v50  ;;  %v5309_v50 = vld [vmem:[%s6456_s5 + $0x14] ss:$8 sps:$4 sm:$0xff]  }
 0x422   :  { %3953 = vmatpush3.bf16.msra.mxu0 %v5031_v12  ;;  %v5280_v12 = vld [vmem:[#allocation4 + $0x1] ss:$2 sm:$0x1] }
 0x423   :  { %3954 = vmatprep.subr.bf16.mxu0 %v4445_v17 }
 0x424   :  { %3857 = vmatpush3.bf16.msra.mxu1 %v5099_v51  ;;  %v5314_v51 = vld [vmem:[%s6456_s5 + $0x10] ss:$8 sps:$4 sm:$0xff]  }
 0x425   :  { %3858 = vmatprep.subr.bf16.mxu1 %v5106_v54  ;;  %v5323_v54 = vld [vmem:[%s6456_s5 + $0x24] ss:$8 sps:$4 sm:$0xff]  }
 0x426   :  { %3955 = vmatpush3.bf16.msra.mxu0 %v5050_v11  ;;  %v5286_v11 = vld [vmem:[#allocation4 + $0x6] ss:$2 sm:$0x1] }
 0x427   :  { %3956 = vmatprep.subr.bf16.mxu0 %v4445_v17  ;;  %v1899_v17 = vld [vmem:[#allocation4 + $0x2] ss:$2 sm:$0x1]  ;;  %v4160_v20 = vpack.i.bf16 %v5286_v11, %v5284_v15 }
 0x428   :  { %3859 = vmatpush3.bf16.msra.mxu1 %v5111_v55  ;;  %v4155_v14 = vpack.i.bf16 %v1899_v17, %v5280_v12  ;;  %1913 = vrot.lane.b32.xlu0 %v1899_v17, %s4456_s21  ;;  %v5328_v55 = vld [vmem:[%s6456_s5 + $0x20] ss:$8 sps:$4 sm:$0xff]  }
 0x429   :  { %3860 = vmatprep.subr.bf16.mxu1 %v5120_v56  ;;  %6614 = vst [vmem:[#allocation14_spill] sm:$0xff] %v5328_v55  ;;  %v5337_v56 = vld [vmem:[%s6456_s5 + $0x34] ss:$8 sps:$4 sm:$0xff]  }
 0x42a   :  { %3957 = vmatpush3.bf16.msra.mxu0 %v5069_v40  ;;  %4156 = vrot.lane.b32.xlu1 %v4155_v14, %s4451_s2  ;;  %v5300_v40 = vld [vmem:[%s6456_s5] ss:$8 sps:$4 sm:$0xff]   ;;  %6615 = vst [vmem:[#allocation15_spill] sm:$0xff] %v5337_v56 }
 0x42b   :  { %2362 = vmatprep.subr.bf16.mxu0 %v5295_v39 }
 0x42c   :  { %3861 = vmatpush3.bf16.msra.mxu1 %v5125_v57  ;;  %4161 = vrot.lane.b32.xlu0 %v4160_v20, %s4451_s2  ;;  %v5342_v57 = vld [vmem:[%s6456_s5 + $0x30] ss:$8 sps:$4 sm:$0xff]  }
 0x42d   :  { %3959 = vmatmul.mubr.msk.bf16.vlgmr.msra.gmra.mrb[28].mxu0 %vm1264_vm3, %v1672_v10  ;;  %2528 = vmatprep.subr.bf16.mxu1 %v5295_v39  ;;  %6616 = vst [vmem:[#allocation16_spill] sm:$0xff] %v5342_v57 }
 0x42e   :  { %2363 = vmatpush1.bf16.msra.mxu0 %v5300_v40 }
 0x42f   :  { %1709 = vmatmul.mubr.bf16.vlgmr.msra.gmra.mrb[28].mxu1 %v1670_v38  ;;  %2364 = vmatprep.subr.bf16.mxu0 %v5309_v50 }
 0x430   :  { %2529 = vmatpush1.bf16.msra.mxu1 %v5300_v40 }
 0x431   :  { %2530 = vmatprep.subr.bf16.mxu1 %v5309_v50 }
 0x432   :  { %2365 = vmatpush1.bf16.msra.mxu0 %v5314_v51 }
 0x433   :  { %2366 = vmatprep.subr.bf16.mxu0 %v5323_v54 }
 0x434   :  { %2531 = vmatpush1.bf16.msra.mxu1 %v5314_v51 }
 0x435   :  { %2532 = vmatprep.subr.bf16.mxu1 %v5323_v54 }
 0x436   :  { %2367 = vmatpush1.bf16.msra.mxu0 %v5328_v55 }
 0x437   :  { %2368 = vmatprep.subr.bf16.mxu0 %v5337_v56 }
 0x438   :  { %2533 = vmatpush1.bf16.msra.mxu1 %v5328_v55 }
 0x439   :  { %2534 = vmatprep.subr.bf16.mxu1 %v5337_v56 }
 0x43a   :  { %2369 = vmatpush1.bf16.msra.mxu0 %v5342_v57 }
 0x43b   :  { %2370 = vmatprep.subr.bf16.mxu0 %v5351_v41 }
 0x43c   :  { %2535 = vmatpush1.bf16.msra.mxu1 %v5342_v57 }
 0x43d   :  { %2536 = vmatprep.subr.bf16.mxu1 %v5351_v41 }
 0x43e   :  { %2371 = vmatpush1.bf16.msra.mxu0 %v5356_v60 }
 0x43f   :  { %2372 = vmatprep.subr.bf16.mxu0 %v5365_v23 }
 0x440   :  { %2537 = vmatpush1.bf16.msra.mxu1 %v5356_v60 }
 0x441   :  { %2538 = vmatprep.subr.bf16.mxu1 %v5365_v23 }
 0x442   :  { %2373 = vmatpush1.bf16.msra.mxu0 %v5370_v43 }
 0x443   :  { %2374 = vmatprep.subr.bf16.mxu0 %v5379_v44 }
 0x444   :  { %2539 = vmatpush1.bf16.msra.mxu1 %v5370_v43 }
 0x445   :  { %2540 = vmatprep.subr.bf16.mxu1 %v5379_v44 }
 0x446   :  { %2375 = vmatpush1.bf16.msra.mxu0 %v5384_v47 }
 0x447   :  { %2376 = vmatprep.subr.bf16.mxu0 %v5393_v48 }
 0x448   :  { %2541 = vmatpush1.bf16.msra.mxu1 %v5384_v47 }
 0x449   :  { %2542 = vmatprep.subr.bf16.mxu1 %v5393_v48 }
 0x44a   :  { %2377 = vmatpush1.bf16.msra.mxu0 %v5398_v49 }
 0x44b   :  { %2378 = vmatprep.subr.bf16.mxu0 %v5407_v52 }
 0x44c   :  { %2543 = vmatpush1.bf16.msra.mxu1 %v5398_v49 }
 0x44d   :  { %2544 = vmatprep.subr.bf16.mxu1 %v5407_v52 }
 0x44e   :  { %2379 = vmatpush1.bf16.msra.mxu0 %v5412_v53 }
 0x44f   :  { %2380 = vmatprep.subr.bf16.mxu0 %v5421_v59 }
 0x450   :  { %2545 = vmatpush1.bf16.msra.mxu1 %v5412_v53  ;;  %v5704_v53 = vld [vmem:[%s6456_s5 + $0x1d4] ss:$8 sps:$4 sm:$0xff]  }
 0x451   :  { %2546 = vmatprep.subr.bf16.mxu1 %v5421_v59  ;;  %6647 = vst [vmem:[#allocation47_spill] sm:$0xff] %v5704_v53 }
 0x452   :  { %2381 = vmatpush1.bf16.msra.mxu0 %v5426_v61 }
 0x453   :  { %2382 = vmatprep.subr.bf16.mxu0 %v5435_v62 }
 0x454   :  { %2547 = vmatpush1.bf16.msra.mxu1 %v5426_v61 }
 0x455   :  { %2548 = vmatprep.subr.bf16.mxu1 %v5435_v62 }
 0x456   :  { %2383 = vmatpush1.bf16.msra.mxu0 %v5440_v63 }
 0x457   :  { %2384 = vmatprep.subr.bf16.mxu0 %v5449_v3 }
 0x458   :  { %2549 = vmatpush1.bf16.msra.mxu1 %v5440_v63 }
 0x459   :  { %2550 = vmatprep.subr.bf16.mxu1 %v5449_v3 }
 0x45a   :  { %2385 = vmatpush1.bf16.msra.mxu0 %v5454_v4 }
 0x45b   :  { %2386 = vmatprep.subr.bf16.mxu0 %v5463_v1 }
 0x45c   :  { %2551 = vmatpush1.bf16.msra.mxu1 %v5454_v4 }
 0x45d   :  { %2552 = vmatprep.subr.bf16.mxu1 %v5463_v1 }
 0x45e   :  { %2387 = vmatpush1.bf16.msra.mxu0 %v5468_v7 }
 0x45f   :  { %2388 = vmatprep.subr.bf16.mxu0 %v5476_v45 }
 0x460   :  { %2553 = vmatpush1.bf16.msra.mxu1 %v5468_v7 }
 0x461   :  { %2554 = vmatprep.subr.bf16.mxu1 %v5476_v45 }
 0x462   :  { %2389 = vmatpush1.bf16.msra.mxu0 %v5481_v13 }
 0x463   :  { %2390 = vmatprep.subr.bf16.mxu0 %v5487_v16 }
 0x464   :  { %2555 = vmatpush1.bf16.msra.mxu1 %v5481_v13  ;;  %v5668_v13 = vld [vmem:[%s6456_s5 + $0x1a4] ss:$8 sps:$4 sm:$0xff]  }
 0x465   :  { %2556 = vmatprep.subr.bf16.mxu1 %v5487_v16  ;;  %v5662_v16 = vld [vmem:[%s6456_s5 + $0x190] ss:$8 sps:$4 sm:$0xff]  }
 0x466   :  { %2391 = vmatpush1.bf16.msra.mxu0 %v5495_v27 }
 0x467   :  { %2392 = vmatprep.subr.bf16.mxu0 %v5502_v6 }
 0x468   :  { %2557 = vmatpush1.bf16.msra.mxu1 %v5495_v27 }
 0x469   :  { %2558 = vmatprep.subr.bf16.mxu1 %v5502_v6  ;;  %v5645_v6 = vld [vmem:[%s6456_s5 + $0x180] ss:$8 sps:$4 sm:$0xff]  }
 0x46a   :  { %2393 = vmatpush1.bf16.msra.mxu0 %v5513_v31  ;;  %6643 = vst [vmem:[#allocation43_spill] sm:$0xff] %v5645_v6 }
 0x46c   :  { %2559 = vmatpush1.bf16.msra.mxu1 %v5513_v31 }
 0x49a   :  { %v5520_v33 = vpop.permute.xlu0 %1913 }
 0x49c   :  { %v5507_v30 = vpop.permute.xlu1 %4156 }
 0x49d   :  { %v4158_v46 = vunpack.i.l.bf16 %v5507_v30 }
 0x49f   :  { %v1928_v42 = vsel %vm78_vm11, %v1895_v29, %v4158_v46  ;;  %v1929_v34 = vsel %vm1129_vm4, %v4158_v46, %v5520_v33  ;;  %v5536_v29 = vld [vmem:[%s6456_s5 + $0x104] ss:$8 sps:$4 sm:$0xff]   ;;  %v5541_v46 = vld [vmem:[%s6456_s5 + $0x100] ss:$8 sps:$4 sm:$0xff]  }
 0x4a0   :  { %v1933_v58 = vpack.c.bf16 %v1928_v42, %v1928_v42  ;;  %v1934_v36 = vpack.c.bf16 %v1929_v34, %v1929_v34  ;;  %6641 = vst [vmem:[#allocation41_spill] sm:$0xff] %v5536_v29  ;;  %v5546_v42 = vld [vmem:[%s6456_s5 + $0x114] ss:$8 sps:$4 sm:$0xff]   ;;  %2403 = vmatprep.subr.bf16.mxu0 %v5536_v29  ;;  %2569 = vmatprep.subr.bf16.mxu1 %v5536_v29 }
 0x4a1   :  { %v5601_v29 = vld [vmem:[%s6456_s5 + $0x154] ss:$8 sps:$4 sm:$0xff]  }
 0x4a2   :  { %2394 = vmatprep.mubr.bf16.mxu0 %v1934_v36 }
 0x4a3   :  { %2395 = vmatmul.mubr.bf16.vlgmr.msra.gmra.mrb[32].mxu0 %v1933_v58 }
 0x4a4   :  { %2404 = vmatpush1.bf16.msra.mxu0 %v5541_v46 }
 0x4a5   :  { %2405 = vmatprep.subr.bf16.mxu0 %v5546_v42 }
 0x4ae   :  { %v1342_v0 = vpop.f32.mrb[16].mxu1 }
 0x4af   :  { %v3918_v2 = vpop.f32.mrb[17].mxu1 }
 0x4b0   :  { %v1345_v22 = vpop.f32.mrb[18].mxu1 }
 0x4b1   :  { %v3919_v5 = vpop.f32.mrb[19].mxu1 }
 0x4b8   :  { %v3778_v32 = vpop.f32.mrb[16].mxu0 }
 0x4b9   :  { %v3779_v24 = vpop.f32.mrb[17].mxu0 }
 0x4ba   :  { %v3780_v25 = vadd.f32 %v3779_v24, %v3778_v32  ;;  %v3781_v26 = vpop.f32.mrb[18].mxu0 }
 0x4bb   :  { %v3782_v28 = vpop.f32.mrb[19].mxu0 }
 0x4bc   :  { %v5505_v35 = vadd.f32 %v3780_v25, %v1342_v0 }
 0x4be   :  { %v1357_v8 = vmul.f32 %v5505_v35, %v5505_v35  ;;  %v1349_v37 = vsel %vm1348_vm2, %v5505_v35, 0.0 }
 0x4bf   :  { %v1350_v10 = vrot.slane %v1349_v37, 4 }
 0x4c0   :  { %v1358_v9 = vsel %vm1348_vm2, %v1357_v8, 0.0 }
 0x4c1   :  { %v1359_v17 = vrot.slane %v1358_v9, 4  ;;  %v1351_v2 = vadd.f32 %v1350_v10, %v1349_v37 }
 0x4c3   :  { %v1360_v25 = vadd.f32 %v1359_v17, %v1358_v9  ;;  %v1352_v58 = vrot.slane %v1351_v2, 2  ;;  %v5558_v9 = vld [vmem:[%s6456_s5 + $0x110] ss:$8 sps:$4 sm:$0xff]  }
 0x4c4   :  { %2406 = vmatpush1.bf16.msra.mxu0 %v5558_v9 }
 0x4c5   :  { %v1361_v8 = vrot.slane %v1360_v25, 2  ;;  %v1353_v17 = vadd.f32 %v1352_v58, %v1351_v2 }
 0x4c7   :  { %v1354_v2 = vrot.slane %v1353_v17, 1 }
 0x4cc   :  { %v1473_v38 = vpop.f32.mrb[20].mxu0 }
 0x4cd   :  { %v3932_v14 = vpop.f32.mrb[21].mxu0 }
 0x4ce   :  { %v3806_v20 = vpop.f32.mrb[20].mxu1  ;;  %v1476_v0 = vpop.f32.mrb[22].mxu0 }
 0x4cf   :  { %v3807_v22 = vpop.f32.mrb[21].mxu1  ;;  %v3933_v5 = vpop.f32.mrb[23].mxu0  ;;  %v1362_v0 = vadd.f32 %v1361_v8, %v1360_v25  ;;  %v5583_v8 = vld [vmem:[%s6456_s5 + $0x130] ss:$8 sps:$4 sm:$0xff]  }
 0x4d0   :  { %v3808_v32 = vadd.f32 %v3807_v22, %v3806_v20  ;;  %v3809_v24 = vpop.f32.mrb[22].mxu1 }
 0x4d1   :  { %v3810_v26 = vpop.f32.mrb[23].mxu1  ;;  %v5577_v24 = vld [vmem:[%s6456_s5 + $0x134] ss:$8 sps:$4 sm:$0xff]   ;;  %v1363_v25 = vrot.slane %v1362_v0, 1 }
 0x4d2   :  { %v5531_v28 = vadd.f32 %v3808_v32, %v1473_v38  ;;  %v5565_v38 = vld [vmem:[%s6456_s5 + $0x124] ss:$8 sps:$4 sm:$0xff]   ;;  %v5571_v32 = vld [vmem:[%s6456_s5 + $0x120] ss:$8 sps:$4 sm:$0xff]  }
 0x4d3   :  { %2407 = vmatprep.subr.bf16.mxu0 %v5565_v38 }
 0x4d4   :  { %v1479_v34 = vsel %vm1348_vm2, %v5531_v28, 0.0  ;;  %v1487_v36 = vmul.f32 %v5531_v28, %v5531_v28  ;;  %2408 = vmatpush1.bf16.msra.mxu0 %v5571_v32 }
 0x4d5   :  { %v1480_v37 = vrot.slane %v1479_v34, 4  ;;  %2409 = vmatprep.subr.bf16.mxu0 %v5577_v24 }
 0x4d6   :  { %v1488_v10 = vsel %vm1348_vm2, %v1487_v36, 0.0 }
 0x4d7   :  { %v1481_v14 = vadd.f32 %v1480_v37, %v1479_v34  ;;  %v1489_v20 = vrot.slane %v1488_v10, 4  ;;  %v5589_v37 = vld [vmem:[%s6456_s5 + $0x144] ss:$8 sps:$4 sm:$0xff]  }
 0x4d8   :  { %2410 = vmatpush1.bf16.msra.mxu0 %v5583_v8 }
 0x4d9   :  { %v1482_v22 = vrot.slane %v1481_v14, 2  ;;  %v1490_v5 = vadd.f32 %v1489_v20, %v1488_v10  ;;  %v1355_v10 = vadd.f32 %v1354_v2, %v1353_v17  ;;  %2411 = vmatprep.subr.bf16.mxu0 %v5589_v37 }
 0x4db   :  { %v1483_v26 = vadd.f32 %v1482_v22, %v1481_v14  ;;  %v1491_v58 = vrot.slane %v1490_v5, 2  ;;  %v1364_v22 = vadd.f32 %v1363_v25, %v1362_v0  ;;  %v5607_v25 = vld [vmem:[%s6456_s5 + $0x150] ss:$8 sps:$4 sm:$0xff]  }
 0x4dd   :  { %v1484_v34 = vrot.slane %v1483_v26, 1  ;;  %v1492_v36 = vadd.f32 %v1491_v58, %v1490_v5  ;;  %v5595_v58 = vld [vmem:[%s6456_s5 + $0x140] ss:$8 sps:$4 sm:$0xff]  }
 0x4de   :  { %2412 = vmatpush1.bf16.msra.mxu0 %v5595_v58 }
 0x4df   :  { %v1485_v14 = vadd.f32 %v1484_v34, %v1483_v26  ;;  %v1493_v20 = vrot.slane %v1492_v36, 1  ;;  %2413 = vmatprep.subr.bf16.mxu0 %v5601_v29  ;;  %v5613_v34 = vld [vmem:[%s6456_s5 + $0x164] ss:$8 sps:$4 sm:$0xff]  }
 0x4e1   :  { %v1486_v18 = vadd.f32 %v1485_v14, %v1355_v10  ;;  %v1494_v5 = vadd.f32 %v1493_v20, %v1492_v36  ;;  %v5619_v36 = vld [vmem:[%s6456_s5 + $0x160] ss:$8 sps:$4 sm:$0xff]   ;;  %v5625_v10 = vld [vmem:[%s6456_s5 + $0x174] ss:$8 sps:$4 sm:$0xff]  }
 0x4e2   :  { %v1620_v19 = vpop.f32.mrb[24].mxu1  ;;  %2414 = vmatpush1.bf16.msra.mxu0 %v5607_v25 }
 0x4e3   :  { %v1495_v17 = vadd.f32 %v1494_v5, %v1364_v22  ;;  %v3946_v2 = vpop.f32.mrb[25].mxu1  ;;  %2415 = vmatprep.subr.bf16.mxu0 %v5613_v34  ;;  %v5631_v22 = vld [vmem:[%s6456_s5 + $0x170] ss:$8 sps:$4 sm:$0xff]  }
 0x4e4   :  { %v1623_v0 = vpop.f32.mrb[26].mxu1 }
 0x4e5   :  { %v3947_v26 = vpop.f32.mrb[27].mxu1  ;;  %v5637_v0 = vld [vmem:[%s6456_s5 + $0x184] ss:$8 sps:$4 sm:$0xff]  }
 0x4e6   :  { %2416 = vmatpush1.bf16.msra.mxu0 %v5619_v36  ;;  %6642 = vst [vmem:[#allocation42_spill] sm:$0xff] %v5637_v0 }
 0x4e7   :  { %2417 = vmatprep.subr.bf16.mxu0 %v5625_v10 }
 0x4ea   :  { %2418 = vmatpush1.bf16.msra.mxu0 %v5631_v22 }
 0x4eb   :  { %2419 = vmatprep.subr.bf16.mxu0 %v5637_v0 }
 0x4ec   :  { %v3834_v14 = vpop.f32.mrb[24].mxu0 }
 0x4ed   :  { %v3835_v20 = vpop.f32.mrb[25].mxu0 }
 0x4ee   :  { %v3836_v5 = vadd.f32 %v3835_v20, %v3834_v14  ;;  %v3837_v2 = vpop.f32.mrb[26].mxu0  ;;  %2420 = vmatpush1.bf16.msra.mxu0 %v5645_v6 }
 0x4ef   :  { %v3838_v26 = vpop.f32.mrb[27].mxu0 }
 0x4f0   :  { %v5639_v31 = vadd.f32 %v3836_v5, %v1620_v19  ;;  %v5655_v19 = vld [vmem:[%s6456_s5 + $0x194] ss:$8 sps:$4 sm:$0xff]  }
 0x4f1   :  { %6644 = vst [vmem:[#allocation44_spill] sm:$0xff] %v5655_v19  ;;  %2421 = vmatprep.subr.bf16.mxu0 %v5655_v19 }
 0x4f2   :  { %v1626_v14 = vsel %vm1348_vm2, %v5639_v31, 0.0  ;;  %v1634_v20 = vmul.f32 %v5639_v31, %v5639_v31  ;;  %2422 = vmatpush1.bf16.msra.mxu0 %v5662_v16 }
 0x4f3   :  { %v1627_v5 = vrot.slane %v1626_v14, 4  ;;  %2423 = vmatprep.subr.bf16.mxu0 %v5668_v13 }
 0x4f4   :  { %v1635_v2 = vsel %vm1348_vm2, %v1634_v20, 0.0 }
 0x4f5   :  { %v1628_v26 = vadd.f32 %v1627_v5, %v1626_v14  ;;  %v1636_v27 = vrot.slane %v1635_v2, 4  ;;  %v5674_v14 = vld [vmem:[%s6456_s5 + $0x1a0] ss:$8 sps:$4 sm:$0xff]   ;;  %v5680_v5 = vld [vmem:[%s6456_s5 + $0x1b4] ss:$8 sps:$4 sm:$0xff]  }
 0x4f6   :  { %2424 = vmatpush1.bf16.msra.mxu0 %v5674_v14 }
 0x4f7   :  { %v1629_v45 = vrot.slane %v1628_v26, 2  ;;  %v1637_v7 = vadd.f32 %v1636_v27, %v1635_v2  ;;  %2425 = vmatprep.subr.bf16.mxu0 %v5680_v5  ;;  %v5692_v2 = vld [vmem:[%s6456_s5 + $0x1c4] ss:$8 sps:$4 sm:$0xff]  }
 0x4f8   :  { %6645 = vst [vmem:[#allocation45_spill] sm:$0xff] %v5692_v2 }
 0x4f9   :  { %v1630_v1 = vadd.f32 %v1629_v45, %v1628_v26  ;;  %v1638_v20 = vrot.slane %v1637_v7, 2  ;;  %v5686_v45 = vld [vmem:[%s6456_s5 + $0x1b0] ss:$8 sps:$4 sm:$0xff]  }
 0x4fa   :  { %2426 = vmatpush1.bf16.msra.mxu0 %v5686_v45 }
 0x4fb   :  { %v1631_v4 = vrot.slane %v1630_v1, 1  ;;  %v1639_v3 = vadd.f32 %v1638_v20, %v1637_v7  ;;  %2427 = vmatprep.subr.bf16.mxu0 %v5692_v2 }
 0x4fd   :  { %v1632_v63 = vadd.f32 %v1631_v4, %v1630_v1  ;;  %v1640_v27 = vrot.slane %v1639_v3, 1  ;;  %v5698_v1 = vld [vmem:[%s6456_s5 + $0x1c0] ss:$8 sps:$4 sm:$0xff]  }
 0x4fe   :  { %6646 = vst [vmem:[#allocation46_spill] sm:$0xff] %v5698_v1  ;;  %2428 = vmatpush1.bf16.msra.mxu0 %v5698_v1 }
 0x4ff   :  { %v1633_v26 = vadd.f32 %v1632_v63, %v1486_v18  ;;  %v1641_v62 = vadd.f32 %v1640_v27, %v1639_v3  ;;  %v5710_v27 = vld [vmem:[%s6456_s5 + $0x1d0] ss:$8 sps:$4 sm:$0xff]   ;;  %2429 = vmatprep.subr.bf16.mxu0 %v5704_v53 }
 0x500   :  { %v1750_v61 = vpop.f32.mrb[28].mxu0  ;;  %6648 = vst [vmem:[#allocation48_spill] sm:$0xff] %v5710_v27 }
 0x501   :  { %v1642_v7 = vadd.f32 %v1641_v62, %v1495_v17  ;;  %v3960_v4 = vpop.f32.mrb[29].mxu0 }
 0x502   :  { %v3862_v20 = vpop.f32.mrb[28].mxu1  ;;  %v1753_v59 = vpop.f32.mrb[30].mxu0  ;;  %v5716_v4 = vld [vmem:[%s6456_s5 + $0x1e4] ss:$8 sps:$4 sm:$0xff]   ;;  %2430 = vmatpush1.bf16.msra.mxu0 %v5710_v27 }
 0x503   :  { %v3863_v18 = vpop.f32.mrb[29].mxu1  ;;  %v3961_v63 = vpop.f32.mrb[31].mxu0  ;;  %6649 = vst [vmem:[#allocation49_spill] sm:$0xff] %v5716_v4  ;;  %2431 = vmatprep.subr.bf16.mxu0 %v5716_v4 }
 0x504   :  { %v3864_v62 = vadd.f32 %v3863_v18, %v3862_v20  ;;  %v3865_v3 = vpop.f32.mrb[30].mxu1 }
 0x505   :  { %v3866_v17 = vpop.f32.mrb[31].mxu1  ;;  %v5723_v3 = vld [vmem:[%s6456_s5 + $0x1e0] ss:$8 sps:$4 sm:$0xff]  }
 0x506   :  { %v1751_v59 = vadd.f32 %v3864_v62, %v1750_v61  ;;  %6650 = vst [vmem:[#allocation50_spill] sm:$0xff] %v5723_v3  ;;  %2432 = vmatpush1.bf16.msra.mxu0 %v5723_v3 }
 0x508   :  { %v1756_v63 = vsel %vm1348_vm2, %v1751_v59, 0.0  ;;  %v1764_v20 = vmul.f32 %v1751_v59, %v1751_v59 }
 0x509   :  { %v1757_v18 = vrot.slane %v1756_v63, 4 }
 0x50a   :  { %v1765_v61 = vsel %vm1348_vm2, %v1764_v20, 0.0 }
 0x50b   :  { %v1758_v62 = vadd.f32 %v1757_v18, %v1756_v63  ;;  %v1766_v17 = vrot.slane %v1765_v61, 4 }
 0x50d   :  { %v1759_v52 = vrot.slane %v1758_v62, 2  ;;  %v1767_v49 = vadd.f32 %v1766_v17, %v1765_v61 }
 0x50f   :  { %v1760_v48 = vadd.f32 %v1759_v52, %v1758_v62  ;;  %v1768_v47 = vrot.slane %v1767_v49, 2  ;;  %v5755_v62 = vld [vmem:[%s6456_s5 + $0x204] ss:$8 sps:$4 sm:$0xff]  }
 0x510   :  { %6653 = vst [vmem:[#allocation53_spill] sm:$0xff] %v5755_v62 }
 0x511   :  { %v1761_v44 = vrot.slane %v1760_v48, 1  ;;  %v1769_v43 = vadd.f32 %v1768_v47, %v1767_v49 }
 0x513   :  { %v1762_v23 = vadd.f32 %v1761_v44, %v1760_v48  ;;  %v1770_v60 = vrot.slane %v1769_v43, 1  ;;  %v1780_v44 = vld [vmem:[%s6462_s11] sm:$0x1] }
 0x515   :  { %v1763_v41 = vadd.f32 %v1762_v23, %v1633_v26  ;;  %v1771_v57 = vadd.f32 %v1770_v60, %v1769_v43 }
 0x517   :  { %v1772_v56 = vadd.f32 %v1771_v57, %v1642_v7  ;;  %v1774_v27 = vmul.f32 0.125, %v1763_v41  ;;  %v5741_v7 = vld [vmem:[%s6456_s5 + $0x1f4] ss:$8 sps:$4 sm:$0xff]  }
 0x518   :  { %6651 = vst [vmem:[#allocation51_spill] sm:$0xff] %v5741_v7  ;;  %2433 = vmatprep.subr.bf16.mxu0 %v5741_v7 }
 0x519   :  { %v1775_v55 = vmul.f32 0.125, %v1772_v56  ;;  %v1776_v20 = vmul.f32 %v1774_v27, %v1774_v27  ;;  %v1783_v4 = vsub.f32 %v5505_v35, %v1774_v27  ;;  %v1796_v63 = vsub.f32 %v5531_v28, %v1774_v27  ;;  %v3634_v56 = vld [vmem:[%s6463_s12] ss:$0 sm:$0xff] }
 0x51a   :  { %v1802_v18 = vsub.f32 %v5639_v31, %v1774_v27  ;;  %v1805_v61 = vsub.f32 %v1751_v59, %v1774_v27  ;;  %v5746_v27 = vld [vmem:[%s6456_s5 + $0x1f0] ss:$8 sps:$4 sm:$0xff]  }
 0x51b   :  { %v1777_v17 = vsub.f32 %v1775_v55, %v1776_v20  ;;  %6652 = vst [vmem:[#allocation52_spill] sm:$0xff] %v5746_v27  ;;  %2434 = vmatpush1.bf16.msra.mxu0 %v5746_v27  ;;  %v5757_v20 = vpop.permute.xlu0 %4161 }
 0x51c   :  { %2444 = vmatprep.subr.bf16.mxu0 %v5755_v62 }
 0x51d   :  { %v1778_v52 = vadd.f32 1e-05, %v1777_v17 }
 0x51f   :  { %4375 = vrsqrt.f32 %v1778_v52 }
 0x529   :  { %v4376_v23 = vpop.eup %4375 }
 0x52a   :  { %v1781_v60 = vmul.f32 %v4376_v23, %v1780_v44  ;;  %v2496_v44 = vld [vmem:[#allocation4 + $0x7] ss:$2 sm:$0x1]  ;;  %v5768_v23 = vld [vmem:[#allocation4 + $0x9] ss:$2 sm:$0x1] }
 0x52b   :  { %6654 = vst [vmem:[#allocation54_spill] sm:$0xff] %v5768_v23 }
 0x52c   :  { %v1787_v57 = vrot.slane %v1781_v60, %v4815_v21  ;;  %v2666_v60 = vld [vmem:[#allocation4 + $0xa] ss:$2 sm:$0x1] }
 0x52e   :  { %v1788_v41 = vmul.f32 %v1787_v57, %v1783_v4  ;;  %v1797_v43 = vmul.f32 %v1796_v63, %v1787_v57  ;;  %v1803_v47 = vmul.f32 %v1802_v18, %v1787_v57  ;;  %v1806_v48 = vmul.f32 %v1805_v61, %v1787_v57  ;;  %v5770_v57 = vld [vmem:[#allocation4 + $0xd] ss:$2 sm:$0x1] }
 0x52f   :  { %v6540_v63 = vunpack.i.l.bf16 %v5757_v20  ;;  %6655 = vst [vmem:[#allocation55_spill] sm:$0xff] %v5770_v57 }
 0x530   :  { %v1795_v49 = vadd.f32 %v3634_v56, %v1788_v41  ;;  %v1798_v55 = vadd.f32 %v3634_v56, %v1797_v43  ;;  %v1804_v35 = vadd.f32 %v3634_v56, %v1803_v47  ;;  %v1807_v31 = vadd.f32 %v3634_v56, %v1806_v48  ;;  %v2674_v56 = vld [vmem:[#allocation4 + $0xe] ss:$2 sm:$0x1] }
 0x531   :  { %v4165_v41 = vpack.i.bf16 %v2666_v60, %v5768_v23  ;;  %v4170_v43 = vpack.i.bf16 %v2674_v56, %v5770_v57  ;;  %v6675_v57 = vunpack.i.l.bf16 %v5757_v20 }
 0x532   :  { %v1799_v28 = vmax.f32 %v1795_v49, %v1798_v55  ;;  %v1808_v26 = vmax.f32 %v1804_v35, %v1807_v31  ;;  %v2843_v49 = vld [vmem:[#allocation4 + $0xf] ss:$2 sm:$0x1]  ;;  %v4159_v55 = vunpack.i.h.bf16 %v5507_v30 }
 0x534   :  { %v1800_v59 = vmax.f32 %v1799_v28, 0.0  ;;  %v1809_v4 = vmax.f32 %v1808_v26, 0.0  ;;  %v2514_v31 = vsel %vm78_vm11, %v5280_v12, %v4159_v55 }
 0x536   :  { %1801 = vst.msk [vmem:[#allocation4 + $0x3] sm:$0x3] %vm1348_vm2, %v1800_v59  ;;  %1810 = vst.msk [vmem:[#allocation4 + $0xb] sm:$0x3] %vm1348_vm2, %v1809_v4 }
 0x53d   :  { %v1903_v18 = vld [vmem:[#allocation4 + $0x4] ss:$2 sm:$0x1]  ;;  %v1901_v61 = vld [vmem:[#allocation4 + $0x3] ss:$2 sm:$0x1] }
 0x53e   :  { %2504 = vrot.lane.b32.xlu0 %v1903_v18, %s4454_s7  ;;  %v1931_v17 = vsel %vm78_vm11, %v1903_v18, %v6540_v63  ;;  %2500 = vrot.lane.b32.xlu1 %v1901_v61, %s4456_s21  ;;  %v5779_v47 = vld [vmem:[#allocation4 + $0xc] ss:$2 sm:$0x1]  ;;  %v2668_v48 = vld [vmem:[#allocation4 + $0xb] ss:$2 sm:$0x1]  ;;  %v2519_v18 = vpack.c.bf16 %v2514_v31, %v2514_v31 }
 0x53f   :  { %v1936_v52 = vpack.c.bf16 %v1931_v17, %v1931_v17  ;;  %v5810_v17 = vld [vmem:[%s6456_s5 + $0x214] ss:$8 sps:$4 sm:$0xff]   ;;  %v5881_v31 = vld [vmem:[%s6456_s5 + $0x264] ss:$8 sps:$4 sm:$0xff]  }
 0x540   :  { %6657 = vst [vmem:[#allocation57_spill] sm:$0xff] %v5810_v17  ;;  %6667 = vst [vmem:[#allocation67_spill] sm:$0xff] %v5881_v31  ;;  %v5928_v63 = vld [vmem:[%s6456_s5 + $0x294] ss:$8 sps:$4 sm:$0xff]  }
 0x541   :  { %2435 = vmatprep.mubr.bf16.mxu0 %v1936_v52  ;;  %6673 = vst [vmem:[#allocation73_spill] sm:$0xff] %v5928_v63 }
 0x542   :  { %2511 = vrot.lane.b32.xlu0 %v2496_v44, %s4456_s21  ;;  %1917 = vrot.lane.b32.xlu1 %v1901_v61, %s4454_s7  ;;  %v5817_v44 = vld [vmem:[%s6456_s5 + $0x210] ss:$8 sps:$4 sm:$0xff]  }
 0x543   :  { %6658 = vst [vmem:[#allocation58_spill] sm:$0xff] %v5817_v44 }
 0x546   :  { %2680 = vrot.lane.b32.xlu0 %v2666_v60, %s4456_s21  ;;  %1925 = vrot.lane.b32.xlu1 %v5286_v11, %s4456_s21  ;;  %v6539_v11 = vunpack.i.h.bf16 %v5757_v20  ;;  %v5824_v60 = vld [vmem:[%s6456_s5 + $0x224] ss:$8 sps:$4 sm:$0xff]  }
 0x547   :  { %6659 = vst [vmem:[#allocation59_spill] sm:$0xff] %v5824_v60 }
 0x548   :  { %v2517_v35 = vsel %vm78_vm11, %v5284_v15, %v6539_v11  ;;  %v5804_v15 = vld [vmem:[%s6456_s5 + $0x200] ss:$8 sps:$4 sm:$0xff]   ;;  %v5940_v11 = vld [vmem:[%s6456_s5 + $0x290] ss:$8 sps:$4 sm:$0xff]  }
 0x549   :  { %v2522_v4 = vpack.c.bf16 %v2517_v35, %v2517_v35  ;;  %6656 = vst [vmem:[#allocation56_spill] sm:$0xff] %v5804_v15  ;;  %v5874_v35 = vld [vmem:[%s6456_s5 + $0x250] ss:$8 sps:$4 sm:$0xff]  }
 0x54a   :  { %4171 = vrot.lane.b32.xlu0 %v4170_v43, %s4451_s2  ;;  %4166 = vrot.lane.b32.xlu1 %v4165_v41, %s4451_s2  ;;  %v5839_v41 = vld [vmem:[%s6456_s5 + $0x234] ss:$8 sps:$4 sm:$0xff]   ;;  %v5846_v43 = vld [vmem:[%s6456_s5 + $0x230] ss:$8 sps:$4 sm:$0xff]   ;;  %6666 = vst [vmem:[#allocation66_spill] sm:$0xff] %v5874_v35 }
 0x54b   :  { %6661 = vst [vmem:[#allocation61_spill] sm:$0xff] %v5839_v41  ;;  %6662 = vst [vmem:[#allocation62_spill] sm:$0xff] %v5846_v43 }
 0x54e   :  { %2851 = vrot.lane.b32.xlu0 %v5779_v47, %s4454_s7  ;;  %2847 = vrot.lane.b32.xlu1 %v2668_v48, %s4456_s21 }
 0x552   :  { %2684 = vrot.lane.b32.xlu1 %v2668_v48, %s4454_s7  ;;  %2858 = vrot.lane.b32.xlu0 %v2843_v49, %s4456_s21  ;;  %v5853_v48 = vld [vmem:[%s6456_s5 + $0x244] ss:$8 sps:$4 sm:$0xff]   ;;  %v5860_v49 = vld [vmem:[%s6456_s5 + $0x240] ss:$8 sps:$4 sm:$0xff]  }
 0x553   :  { %6663 = vst [vmem:[#allocation63_spill] sm:$0xff] %v5853_v48  ;;  %6664 = vst [vmem:[#allocation64_spill] sm:$0xff] %v5860_v49 }
 0x556   :  { %2692 = vrot.lane.b32.xlu1 %v2674_v56, %s4456_s21  ;;  %v5832_v56 = vld [vmem:[%s6456_s5 + $0x220] ss:$8 sps:$4 sm:$0xff]  }
 0x557   :  { %6660 = vst [vmem:[#allocation60_spill] sm:$0xff] %v5832_v56 }
 0x5b0   :  { %v5795_v28 = vpop.permute.xlu1 %2500 }
 0x5b1   :  { %v2515_v26 = vsel %vm1129_vm4, %v4159_v55, %v5795_v28  ;;  %v5867_v55 = vld [vmem:[%s6456_s5 + $0x254] ss:$8 sps:$4 sm:$0xff]  }
 0x5b2   :  { %v2520_v59 = vpack.c.bf16 %v2515_v26, %v2515_v26  ;;  %6665 = vst [vmem:[#allocation65_spill] sm:$0xff] %v5867_v55  ;;  %v2505_v26 = vpop.permute.xlu0 %2504 }
 0x5b4   :  { %2560 = vmatprep.mubr.bf16.mxu1 %v2520_v59  ;;  %v1918_v61 = vpop.permute.xlu1 %1917  ;;  %v5888_v59 = vld [vmem:[%s6456_s5 + $0x260] ss:$8 sps:$4 sm:$0xff]  }
 0x5b5   :  { %v1930_v30 = vsel %vm1133_vm0, %v5520_v33, %v1918_v61  ;;  %2561 = vmatmul.mubr.bf16.vlgmr.msra.gmra.mrb[32].mxu1 %v2519_v18  ;;  %6668 = vst [vmem:[#allocation68_spill] sm:$0xff] %v5888_v59  ;;  %v5902_v18 = vld [vmem:[%s6456_s5 + $0x270] ss:$8 sps:$4 sm:$0xff]   ;;  %v5909_v61 = vld [vmem:[%s6456_s5 + $0x284] ss:$8 sps:$4 sm:$0xff]  }
 0x5b6   :  { %v1935_v12 = vpack.c.bf16 %v1930_v30, %v1930_v30  ;;  %2570 = vmatpush1.bf16.msra.mxu1 %v5541_v46  ;;  %2601 = vmatprep.mubr.bf16.mxu1 %v2522_v4  ;;  %v5895_v4 = vld [vmem:[%s6456_s5 + $0x274] ss:$8 sps:$4 sm:$0xff]   ;;  %6670 = vst [vmem:[#allocation70_spill] sm:$0xff] %v5902_v18  ;;  %6671 = vst [vmem:[#allocation71_spill] sm:$0xff] %v5909_v61  ;;  %v5911_v30 = vpop.permute.xlu0 %2511 }
 0x5b7   :  { %2571 = vmatprep.subr.bf16.mxu1 %v5546_v42  ;;  %6669 = vst [vmem:[#allocation69_spill] sm:$0xff] %v5895_v4 }
 0x5b8   :  { %2436 = vmatmul.mubr.bf16.vlgmr.msra.gmra.mrb[32].mxu0 %v1935_v12  ;;  %v1926_v52 = vpop.permute.xlu1 %1925 }
 0x5b9   :  { %2445 = vmatpush1.bf16.msra.mxu0 %v5804_v15  ;;  %v1938_v33 = vpack.c.bf16 %v1926_v52, %v1926_v52  ;;  %v1932_v23 = vsel %vm1129_vm4, %v6675_v57, %v1926_v52  ;;  %v6681_v52 = vld [vmem:[#allocation16_spill] sm:$0xff] }
 0x5ba   :  { %2572 = vmatpush1.bf16.msra.mxu1 %v5558_v9  ;;  %2446 = vmatprep.subr.bf16.mxu0 %v5810_v17  ;;  %v5931_v21 = vpop.permute.xlu0 %2680 }
 0x5bb   :  { %2573 = vmatprep.subr.bf16.mxu1 %v5565_v38  ;;  %3719 = vmatprep.mubr.msk.bf16.mxu0 %vm1133_vm0, %v1938_v33  ;;  %v5920_v33 = vld [vmem:[%s6456_s5 + $0x280] ss:$8 sps:$4 sm:$0xff]   ;;  %6674 = vst [vmem:[#allocation74_spill] sm:$0xff] %v5931_v21 }
 0x5bc   :  { %v5914_v12 = vpop.permute.xlu1 %4166  ;;  %6672 = vst [vmem:[#allocation72_spill] sm:$0xff] %v5920_v33 }
 0x5bd   :  { %2447 = vmatpush1.bf16.msra.mxu0 %v5817_v44 }
 0x5be   :  { %2574 = vmatpush1.bf16.msra.mxu1 %v5571_v32  ;;  %2448 = vmatprep.subr.bf16.mxu0 %v5824_v60 }
 0x5bf   :  { %2575 = vmatprep.subr.bf16.mxu1 %v5577_v24 }
 0x5c1   :  { %2449 = vmatpush1.bf16.msra.mxu0 %v5832_v56 }
 0x5c2   :  { %2576 = vmatpush1.bf16.msra.mxu1 %v5583_v8  ;;  %2450 = vmatprep.subr.bf16.mxu0 %v5839_v41 }
 0x5c3   :  { %2577 = vmatprep.subr.bf16.mxu1 %v5589_v37 }
 0x5c5   :  { %2451 = vmatpush1.bf16.msra.mxu0 %v5846_v43 }
 0x5c6   :  { %2578 = vmatpush1.bf16.msra.mxu1 %v5595_v58  ;;  %2452 = vmatprep.subr.bf16.mxu0 %v5853_v48 }
 0x5c7   :  { %2579 = vmatprep.subr.bf16.mxu1 %v5601_v29 }
 0x5c9   :  { %2453 = vmatpush1.bf16.msra.mxu0 %v5860_v49 }
 0x5ca   :  { %2580 = vmatpush1.bf16.msra.mxu1 %v5607_v25  ;;  %2454 = vmatprep.subr.bf16.mxu0 %v5867_v55 }
 0x5cb   :  { %2581 = vmatprep.subr.bf16.mxu1 %v5613_v34 }
 0x5cd   :  { %2455 = vmatpush1.bf16.msra.mxu0 %v5874_v35 }
 0x5ce   :  { %2582 = vmatpush1.bf16.msra.mxu1 %v5619_v36  ;;  %2456 = vmatprep.subr.bf16.mxu0 %v5881_v31 }
 0x5cf   :  { %2583 = vmatprep.subr.bf16.mxu1 %v5625_v10 }
 0x5d1   :  { %2457 = vmatpush1.bf16.msra.mxu0 %v5888_v59 }
 0x5d2   :  { %2584 = vmatpush1.bf16.msra.mxu1 %v5631_v22  ;;  %2458 = vmatprep.subr.bf16.mxu0 %v5895_v4 }
 0x5d3   :  { %2585 = vmatprep.subr.bf16.mxu1 %v5637_v0  ;;  %v1937_v0 = vpack.c.bf16 %v1932_v23, %v1932_v23  ;;  %v6680_v23 = vld [vmem:[#allocation49_spill] sm:$0xff] }
 0x5d5   :  { %2459 = vmatpush1.bf16.msra.mxu0 %v5902_v18 }
 0x5d6   :  { %2586 = vmatpush1.bf16.msra.mxu1 %v5645_v6  ;;  %2460 = vmatprep.subr.bf16.mxu0 %v5909_v61 }
 0x5d7   :  { %2587 = vmatprep.subr.bf16.mxu1 %v5655_v19  ;;  %v6676_v19 = vunpack.i.l.bf16 %v5914_v12 }
 0x5d9   :  { %2461 = vmatpush1.bf16.msra.mxu0 %v5920_v33  ;;  %v2696_v6 = vsel %vm1129_vm4, %v6676_v19, %v5931_v21  ;;  %v6679_v19 = vld [vmem:[#allocation15_spill] sm:$0xff]  ;;  %v2516_v21 = vsel %vm1133_vm0, %v5795_v28, %v2505_v26  ;;  %v6687_v28 = vld [vmem:[#allocation22_spill] sm:$0xff]  ;;  %v6689_v26 = vld [vmem:[#allocation24_spill] sm:$0xff] }
 0x5da   :  { %2588 = vmatpush1.bf16.msra.mxu1 %v5662_v16  ;;  %2462 = vmatprep.subr.bf16.mxu0 %v5928_v63  ;;  %v2701_v57 = vpack.c.bf16 %v2696_v6, %v2696_v6  ;;  %v6677_v6 = vld [vmem:[#allocation14_spill] sm:$0xff] }
 0x5db   :  { %2589 = vmatprep.subr.bf16.mxu1 %v5668_v13 }
 0x5dd   :  { %2463 = vmatpush1.bf16.msra.mxu0 %v5940_v11 }
 0x5de   :  { %2590 = vmatpush1.bf16.msra.mxu1 %v5674_v14  ;;  %2709 = vmatprep.subr.bf16.mxu0 %v5295_v39 }
 0x5df   :  { %2591 = vmatprep.subr.bf16.mxu1 %v5680_v5 }
 0x5e0   :  { %2477 = vmatmul.mubr.bf16.vlgmr.msra.gmra.mrb[32].mxu0 %v1937_v0  ;;  %v6678_v0 = vld [vmem:[#allocation48_spill] sm:$0xff] }
 0x5e1   :  { %2710 = vmatpush1.bf16.msra.mxu0 %v5300_v40  ;;  %2741 = vmatprep.mubr.bf16.mxu0 %v2701_v57  ;;  %v6682_v57 = vld [vmem:[#allocation17_spill] sm:$0xff] }
 0x5e2   :  { %2592 = vmatpush1.bf16.msra.mxu1 %v5686_v45  ;;  %2711 = vmatprep.subr.bf16.mxu0 %v5309_v50 }
 0x5e3   :  { %2593 = vmatprep.subr.bf16.mxu1 %v5692_v2  ;;  %v6707_v2 = vld [vmem:[#allocation38_spill] sm:$0xff] }
 0x5e5   :  { %2712 = vmatpush1.bf16.msra.mxu0 %v5314_v51 }
 0x5e6   :  { %2594 = vmatpush1.bf16.msra.mxu1 %v5698_v1  ;;  %2713 = vmatprep.subr.bf16.mxu0 %v5323_v54  ;;  %v2521_v1 = vpack.c.bf16 %v2516_v21, %v2516_v21  ;;  %v6688_v21 = vld [vmem:[#allocation23_spill] sm:$0xff] }
 0x5e7   :  { %2595 = vmatprep.subr.bf16.mxu1 %v5704_v53  ;;  %v6683_v53 = vld [vmem:[#allocation18_spill] sm:$0xff] }
 0x5e9   :  { %2714 = vmatpush1.bf16.msra.mxu0 %v6677_v6 }
 0x5ea   :  { %2596 = vmatpush1.bf16.msra.mxu1 %v6678_v0  ;;  %2715 = vmatprep.subr.bf16.mxu0 %v6679_v19  ;;  %v6684_v0 = vld [vmem:[#allocation19_spill] sm:$0xff] }
 0x5eb   :  { %2597 = vmatprep.subr.bf16.mxu1 %v6680_v23  ;;  %v2524_v23 = vpack.c.bf16 %v5911_v30, %v5911_v30 }
 0x5ed   :  { %2716 = vmatpush1.bf16.msra.mxu0 %v6681_v52 }
 0x5ee   :  { %2598 = vmatpush1.bf16.msra.mxu1 %v5723_v3  ;;  %2717 = vmatprep.subr.bf16.mxu0 %v6682_v57  ;;  %v6685_v3 = vld [vmem:[#allocation20_spill] sm:$0xff] }
 0x5ef   :  { %2599 = vmatprep.subr.bf16.mxu1 %v5741_v7  ;;  %v6686_v7 = vld [vmem:[#allocation21_spill] sm:$0xff] }
 0x5f1   :  { %2718 = vmatpush1.bf16.msra.mxu0 %v6683_v53 }
 0x5f2   :  { %2600 = vmatpush1.bf16.msra.mxu1 %v5746_v27  ;;  %2719 = vmatprep.subr.bf16.mxu0 %v6684_v0 }
 0x5f3   :  { %2610 = vmatprep.subr.bf16.mxu1 %v5755_v62  ;;  %v2662_v62 = vld [vmem:[#allocation4 + $0x8] ss:$2 sm:$0x1] }
 0x5f5   :  { %2602 = vmatmul.mubr.bf16.vlgmr.msra.gmra.mrb[32].mxu1 %v2521_v1  ;;  %2720 = vmatpush1.bf16.msra.mxu0 %v6685_v3  ;;  %v6690_v1 = vld [vmem:[#allocation25_spill] sm:$0xff] }
 0x5f6   :  { %2611 = vmatpush1.bf16.msra.mxu1 %v5804_v15  ;;  %2721 = vmatprep.subr.bf16.mxu0 %v6686_v7  ;;  %v6691_v15 = vld [vmem:[#allocation26_spill] sm:$0xff] }
 0x5f7   :  { %2612 = vmatprep.subr.bf16.mxu1 %v5810_v17  ;;  %3720 = vmatprep.mubr.msk.bf16.mxu1 %vm1133_vm0, %v2524_v23  ;;  %v6692_v23 = vld [vmem:[#allocation27_spill] sm:$0xff]  ;;  %v6701_v17 = vld [vmem:[#allocation36_spill] sm:$0xff] }
 0x5f9   :  { %2722 = vmatpush1.bf16.msra.mxu0 %v6687_v28 }
 0x5fa   :  { %2613 = vmatpush1.bf16.msra.mxu1 %v5817_v44  ;;  %2723 = vmatprep.subr.bf16.mxu0 %v6688_v21  ;;  %v6693_v44 = vld [vmem:[#allocation28_spill] sm:$0xff] }
 0x5fb   :  { %2614 = vmatprep.subr.bf16.mxu1 %v5824_v60  ;;  %v6694_v60 = vld [vmem:[#allocation29_spill] sm:$0xff] }
 0x5fd   :  { %2724 = vmatpush1.bf16.msra.mxu0 %v6689_v26 }
 0x5fe   :  { %2615 = vmatpush1.bf16.msra.mxu1 %v5832_v56  ;;  %2725 = vmatprep.subr.bf16.mxu0 %v6690_v1  ;;  %v6695_v56 = vld [vmem:[#allocation30_spill] sm:$0xff] }
 0x5ff   :  { %2616 = vmatprep.subr.bf16.mxu1 %v5839_v41  ;;  %v6696_v41 = vld [vmem:[#allocation31_spill] sm:$0xff] }
 0x601   :  { %2726 = vmatpush1.bf16.msra.mxu0 %v6691_v15 }
 0x602   :  { %2617 = vmatpush1.bf16.msra.mxu1 %v5846_v43  ;;  %2727 = vmatprep.subr.bf16.mxu0 %v6692_v23  ;;  %v6697_v43 = vld [vmem:[#allocation32_spill] sm:$0xff] }
 0x603   :  { %2618 = vmatprep.subr.bf16.mxu1 %v5853_v48  ;;  %v6698_v48 = vld [vmem:[#allocation33_spill] sm:$0xff] }
 0x605   :  { %2728 = vmatpush1.bf16.msra.mxu0 %v6693_v44 }
 0x606   :  { %2619 = vmatpush1.bf16.msra.mxu1 %v5860_v49  ;;  %2729 = vmatprep.subr.bf16.mxu0 %v6694_v60  ;;  %v6699_v49 = vld [vmem:[#allocation34_spill] sm:$0xff] }
 0x607   :  { %2620 = vmatprep.subr.bf16.mxu1 %v5867_v55  ;;  %v6700_v55 = vld [vmem:[#allocation35_spill] sm:$0xff] }
 0x609   :  { %2730 = vmatpush1.bf16.msra.mxu0 %v6695_v56 }
 0x60a   :  { %2621 = vmatpush1.bf16.msra.mxu1 %v5874_v35  ;;  %2731 = vmatprep.subr.bf16.mxu0 %v6696_v41  ;;  %v6010_v35 = vpop.permute.xlu0 %4171 }
 0x60b   :  { %2622 = vmatprep.subr.bf16.mxu1 %v5881_v31  ;;  %v4173_v27 = vunpack.i.l.bf16 %v6010_v35  ;;  %v6705_v31 = vunpack.i.l.bf16 %v5914_v12 }
 0x60d   :  { %2732 = vmatpush1.bf16.msra.mxu0 %v6697_v43 }
 0x60e   :  { %2623 = vmatpush1.bf16.msra.mxu1 %v5888_v59  ;;  %2733 = vmatprep.subr.bf16.mxu0 %v6698_v48  ;;  %v6014_v59 = vpop.permute.xlu1 %2847 }
 0x60f   :  { %2624 = vmatprep.subr.bf16.mxu1 %v5895_v4  ;;  %6702 = vst [vmem:[#allocation14_spill] sm:$0xff] %v6014_v59  ;;  %v6703_v4 = vld [vmem:[#allocation37_spill] sm:$0xff] }
 0x611   :  { %2734 = vmatpush1.bf16.msra.mxu0 %v6699_v49 }
 0x612   :  { %2625 = vmatpush1.bf16.msra.mxu1 %v5902_v18  ;;  %2735 = vmatprep.subr.bf16.mxu0 %v6700_v55  ;;  %v6704_v18 = vunpack.i.h.bf16 %v5757_v20  ;;  %v6706_v55 = vunpack.i.h.bf16 %v5914_v12 }
 0x613   :  { %2626 = vmatprep.subr.bf16.mxu1 %v5909_v61 }
 0x614   :  { %v2518_v61 = vsel %vm1129_vm4, %v6704_v18, %v5911_v30 }
 0x615   :  { %2736 = vmatpush1.bf16.msra.mxu0 %v6701_v17  ;;  %v2695_v17 = vsel %vm78_vm11, %v2662_v62, %v6705_v31  ;;  %v2523_v20 = vpack.c.bf16 %v2518_v61, %v2518_v61  ;;  %v2698_v62 = vsel %vm78_vm11, %v5779_v47, %v4173_v27  ;;  %v6709_v31 = vld [vmem:[#allocation40_spill] sm:$0xff]  ;;  %v4174_v47 = vunpack.i.h.bf16 %v6010_v35  ;;  %v6726_v61 = vld [vmem:[#allocation74_spill] sm:$0xff] }
 0x616   :  { %2627 = vmatpush1.bf16.msra.mxu1 %v5920_v33  ;;  %2737 = vmatprep.subr.bf16.mxu0 %v6703_v4  ;;  %v2862_v33 = vsel %vm1129_vm4, %v6706_v55, %v6014_v59  ;;  %v2700_v18 = vpack.c.bf16 %v2695_v17, %v2695_v17  ;;  %v6710_v55 = vld [vmem:[#allocation41_spill] sm:$0xff]  ;;  %v2703_v59 = vpack.c.bf16 %v2698_v62, %v2698_v62  ;;  %v2685_v17 = vpop.permute.xlu1 %2684 }
 0x617   :  { %2628 = vmatprep.subr.bf16.mxu1 %v5928_v63  ;;  %v6708_v63 = vld [vmem:[#allocation39_spill] sm:$0xff]  ;;  %v2867_v30 = vpack.c.bf16 %v2862_v33, %v2862_v33  ;;  %v6727_v33 = vld [vmem:[#allocation52_spill] sm:$0xff] }
 0x619   :  { %2738 = vmatpush1.bf16.msra.mxu0 %v6707_v2 }
 0x61a   :  { %2629 = vmatpush1.bf16.msra.mxu1 %v5940_v11  ;;  %2739 = vmatprep.subr.bf16.mxu0 %v6708_v63 }
 0x61b   :  { %2875 = vmatprep.subr.bf16.mxu1 %v5295_v39  ;;  %v6711_v39 = vld [vmem:[#allocation42_spill] sm:$0xff] }
 0x61d   :  { %2643 = vmatmul.mubr.bf16.vlgmr.msra.gmra.mrb[32].mxu1 %v2523_v20  ;;  %2740 = vmatpush1.bf16.msra.mxu0 %v6709_v31 }
 0x61e   :  { %2876 = vmatpush1.bf16.msra.mxu1 %v5300_v40  ;;  %2907 = vmatprep.mubr.bf16.mxu1 %v2867_v30  ;;  %v6712_v40 = vld [vmem:[#allocation43_spill] sm:$0xff] }
 0x61f   :  { %2750 = vmatprep.subr.bf16.mxu0 %v6710_v55  ;;  %2877 = vmatprep.subr.bf16.mxu1 %v5309_v50  ;;  %v6713_v50 = vld [vmem:[#allocation44_spill] sm:$0xff] }
 0x620   :  { %2742 = vmatmul.mubr.bf16.vlgmr.msra.gmra.mrb[36].mxu0 %v2700_v18 }
 0x621   :  { %2751 = vmatpush1.bf16.msra.mxu0 %v5541_v46  ;;  %2782 = vmatprep.mubr.bf16.mxu0 %v2703_v59  ;;  %v6725_v59 = vld [vmem:[#allocation51_spill] sm:$0xff] }
 0x622   :  { %2878 = vmatpush1.bf16.msra.mxu1 %v5314_v51  ;;  %2752 = vmatprep.subr.bf16.mxu0 %v5546_v42  ;;  %v6714_v51 = vld [vmem:[#allocation45_spill] sm:$0xff] }
 0x623   :  { %2879 = vmatprep.subr.bf16.mxu1 %v5323_v54  ;;  %v6715_v54 = vld [vmem:[#allocation35_spill] sm:$0xff] }
 0x625   :  { %2753 = vmatpush1.bf16.msra.mxu0 %v5558_v9 }
 0x626   :  { %2880 = vmatpush1.bf16.msra.mxu1 %v6677_v6  ;;  %2754 = vmatprep.subr.bf16.mxu0 %v5565_v38 }
 0x627   :  { %2881 = vmatprep.subr.bf16.mxu1 %v6679_v19  ;;  %v6728_v19 = vld [vmem:[#allocation53_spill] sm:$0xff] }
 0x629   :  { %2755 = vmatpush1.bf16.msra.mxu0 %v5571_v32 }
 0x62a   :  { %2882 = vmatpush1.bf16.msra.mxu1 %v6681_v52  ;;  %2756 = vmatprep.subr.bf16.mxu0 %v5577_v24  ;;  %v6729_v52 = vld [vmem:[#allocation56_spill] sm:$0xff] }
 0x62b   :  { %2883 = vmatprep.subr.bf16.mxu1 %v6682_v57  ;;  %v6730_v57 = vld [vmem:[#allocation57_spill] sm:$0xff] }
 0x62d   :  { %2757 = vmatpush1.bf16.msra.mxu0 %v5583_v8 }
 0x62e   :  { %2884 = vmatpush1.bf16.msra.mxu1 %v6683_v53  ;;  %2758 = vmatprep.subr.bf16.mxu0 %v5589_v37  ;;  %v6716_v53 = vld [vmem:[#allocation46_spill] sm:$0xff] }
 0x62f   :  { %2885 = vmatprep.subr.bf16.mxu1 %v6684_v0 }
 0x631   :  { %2759 = vmatpush1.bf16.msra.mxu0 %v5595_v58 }
 0x632   :  { %2886 = vmatpush1.bf16.msra.mxu1 %v6685_v3  ;;  %2760 = vmatprep.subr.bf16.mxu0 %v5601_v29  ;;  %v6717_v3 = vld [vmem:[#allocation36_spill] sm:$0xff] }
 0x633   :  { %2887 = vmatprep.subr.bf16.mxu1 %v6686_v7  ;;  %v6718_v7 = vld [vmem:[#allocation47_spill] sm:$0xff] }
 0x635   :  { %2761 = vmatpush1.bf16.msra.mxu0 %v5607_v25 }
 0x636   :  { %2888 = vmatpush1.bf16.msra.mxu1 %v6687_v28  ;;  %2762 = vmatprep.subr.bf16.mxu0 %v5613_v34  ;;  %v6731_v28 = vld [vmem:[#allocation58_spill] sm:$0xff] }
 0x637   :  { %2889 = vmatprep.subr.bf16.mxu1 %v6688_v21  ;;  %v6734_v21 = vld [vmem:[#allocation61_spill] sm:$0xff] }
 0x639   :  { %2763 = vmatpush1.bf16.msra.mxu0 %v5619_v36 }
 0x63a   :  { %2890 = vmatpush1.bf16.msra.mxu1 %v6689_v26  ;;  %2764 = vmatprep.subr.bf16.mxu0 %v5625_v10 }
 0x63b   :  { %2891 = vmatprep.subr.bf16.mxu1 %v6690_v1 }
 0x63d   :  { %2765 = vmatpush1.bf16.msra.mxu0 %v5631_v22 }
 0x63e   :  { %2892 = vmatpush1.bf16.msra.mxu1 %v6691_v15  ;;  %2766 = vmatprep.subr.bf16.mxu0 %v6711_v39  ;;  %v6719_v15 = vld [vmem:[#allocation48_spill] sm:$0xff] }
 0x63f   :  { %2893 = vmatprep.subr.bf16.mxu1 %v6692_v23 }
 0x641   :  { %2767 = vmatpush1.bf16.msra.mxu0 %v6712_v40 }
 0x642   :  { %2894 = vmatpush1.bf16.msra.mxu1 %v6693_v44  ;;  %2768 = vmatprep.subr.bf16.mxu0 %v6713_v50  ;;  %v6720_v44 = vld [vmem:[#allocation49_spill] sm:$0xff] }
 0x643   :  { %2895 = vmatprep.subr.bf16.mxu1 %v6694_v60  ;;  %v6721_v60 = vunpack.i.h.bf16 %v5914_v12 }
 0x645   :  { %2769 = vmatpush1.bf16.msra.mxu0 %v5662_v16 }
 0x646   :  { %2896 = vmatpush1.bf16.msra.mxu1 %v6695_v56  ;;  %2770 = vmatprep.subr.bf16.mxu0 %v5668_v13  ;;  %v6722_v56 = vld [vmem:[#allocation54_spill] sm:$0xff] }
 0x647   :  { %2897 = vmatprep.subr.bf16.mxu1 %v6696_v41  ;;  %v2861_v41 = vsel %vm78_vm11, %v6722_v56, %v6721_v60  ;;  %v4343_v60 = vld [vmem:[%s6457_s6 + $0x24] ss:$8 sps:$4 sm:$0xff]   ;;  %v4341_v56 = vld [vmem:[%s6457_s6 + $0x20] ss:$8 sps:$4 sm:$0xff]  }
 0x649   :  { %2771 = vmatpush1.bf16.msra.mxu0 %v5674_v14 }
 0x64a   :  { %2898 = vmatpush1.bf16.msra.mxu1 %v6697_v43  ;;  %2772 = vmatprep.subr.bf16.mxu0 %v5680_v5  ;;  %v6723_v43 = vld [vmem:[#allocation55_spill] sm:$0xff] }
 0x64b   :  { %2899 = vmatprep.subr.bf16.mxu1 %v6698_v48  ;;  %v2864_v48 = vsel %vm78_vm11, %v6723_v43, %v4174_v47  ;;  %v4344_v43 = vld [vmem:[%s6457_s6 + $0x30] ss:$8 sps:$4 sm:$0xff]  }
 0x64c   :  { %v2869_v12 = vpack.c.bf16 %v2864_v48, %v2864_v48  ;;  %v4349_v48 = vld [vmem:[%s6457_s6 + $0x44] ss:$8 sps:$4 sm:$0xff]  }
 0x64d   :  { %2773 = vmatpush1.bf16.msra.mxu0 %v5686_v45 }
 0x64e   :  { %2900 = vmatpush1.bf16.msra.mxu1 %v6699_v49  ;;  %2774 = vmatprep.subr.bf16.mxu0 %v6714_v51  ;;  %v6724_v49 = vld [vmem:[#allocation50_spill] sm:$0xff] }
 0x64f   :  { %2901 = vmatprep.subr.bf16.mxu1 %v6715_v54 }
 0x651   :  { %2775 = vmatpush1.bf16.msra.mxu0 %v6716_v53 }
 0x652   :  { %2902 = vmatpush1.bf16.msra.mxu1 %v6717_v3  ;;  %2776 = vmatprep.subr.bf16.mxu0 %v6718_v7 }
 0x653   :  { %2903 = vmatprep.subr.bf16.mxu1 %v6703_v4  ;;  %v2866_v4 = vpack.c.bf16 %v2861_v41, %v2861_v41  ;;  %v4346_v41 = vld [vmem:[%s6457_s6 + $0x34] ss:$8 sps:$4 sm:$0xff]  }
 0x655   :  { %2777 = vmatpush1.bf16.msra.mxu0 %v6719_v15 }
 0x656   :  { %2904 = vmatpush1.bf16.msra.mxu1 %v6707_v2  ;;  %2778 = vmatprep.subr.bf16.mxu0 %v6720_v44  ;;  %v2693_v2 = vpop.permute.xlu1 %2692 }
 0x657   :  { %2905 = vmatprep.subr.bf16.mxu1 %v6708_v63  ;;  %v2697_v63 = vsel %vm1133_vm0, %v6726_v61, %v2685_v17  ;;  %v2705_v6 = vpack.c.bf16 %v2693_v2, %v2693_v2  ;;  %v4340_v17 = vld [vmem:[%s6457_s6 + $0x14] ss:$8 sps:$4 sm:$0xff]   ;;  %v4353_v61 = vld [vmem:[%s6457_s6 + $0x60] ss:$8 sps:$4 sm:$0xff]  }
 0x658   :  { %v2702_v0 = vpack.c.bf16 %v2697_v63, %v2697_v63  ;;  %v4358_v63 = vld [vmem:[%s6457_s6 + $0x74] ss:$8 sps:$4 sm:$0xff]  }
 0x659   :  { %2779 = vmatpush1.bf16.msra.mxu0 %v6724_v49 }
 0x65a   :  { %2906 = vmatpush1.bf16.msra.mxu1 %v6709_v31  ;;  %2780 = vmatprep.subr.bf16.mxu0 %v6725_v59 }
 0x65b   :  { %2916 = vmatprep.subr.bf16.mxu1 %v6710_v55 }
 0x65d   :  { %2781 = vmatpush1.bf16.msra.mxu0 %v6727_v33  ;;  %2908 = vmatmul.mubr.bf16.vlgmr.msra.gmra.mrb[36].mxu1 %v2866_v4  ;;  %v4355_v4 = vld [vmem:[%s6457_s6 + $0x64] ss:$8 sps:$4 sm:$0xff]  }
 0x65e   :  { %2917 = vmatpush1.bf16.msra.mxu1 %v5541_v46  ;;  %2791 = vmatprep.subr.bf16.mxu0 %v6728_v19  ;;  %v6732_v46 = vld [vmem:[#allocation59_spill] sm:$0xff] }
 0x65f   :  { %2918 = vmatprep.subr.bf16.mxu1 %v5546_v42  ;;  %2948 = vmatprep.mubr.bf16.mxu1 %v2869_v12  ;;  %v6733_v42 = vld [vmem:[#allocation60_spill] sm:$0xff] }
 0x660   :  { %2783 = vmatmul.mubr.bf16.vlgmr.msra.gmra.mrb[36].mxu0 %v2702_v0  ;;  %v4356_v12 = vld [vmem:[%s6457_s6 + $0x70] ss:$8 sps:$4 sm:$0xff]   ;;  %v4364_v0 = vld [vmem:[%s6457_s6 + $0x94] ss:$8 sps:$4 sm:$0xff]  }
 0x661   :  { %2792 = vmatpush1.bf16.msra.mxu0 %v6729_v52  ;;  %3721 = vmatprep.mubr.msk.bf16.mxu0 %vm1133_vm0, %v2705_v6  ;;  %v4361_v6 = vld [vmem:[%s6457_s6 + $0x84] ss:$8 sps:$4 sm:$0xff]  }
 0x662   :  { %2919 = vmatpush1.bf16.msra.mxu1 %v5558_v9  ;;  %2793 = vmatprep.subr.bf16.mxu0 %v6730_v57  ;;  %v6735_v9 = vld [vmem:[#allocation62_spill] sm:$0xff] }
 0x663   :  { %2920 = vmatprep.subr.bf16.mxu1 %v5565_v38  ;;  %v6736_v38 = vld [vmem:[#allocation63_spill] sm:$0xff] }
 0x665   :  { %2794 = vmatpush1.bf16.msra.mxu0 %v6731_v28 }
 0x666   :  { %2921 = vmatpush1.bf16.msra.mxu1 %v5571_v32  ;;  %2795 = vmatprep.subr.bf16.mxu0 %v6732_v46  ;;  %v6737_v32 = vld [vmem:[#allocation64_spill] sm:$0xff] }
 0x667   :  { %2922 = vmatprep.subr.bf16.mxu1 %v5577_v24  ;;  %v6738_v24 = vld [vmem:[#allocation65_spill] sm:$0xff] }
 0x669   :  { %2796 = vmatpush1.bf16.msra.mxu0 %v6733_v42 }
 0x66a   :  { %2923 = vmatpush1.bf16.msra.mxu1 %v5583_v8  ;;  %2797 = vmatprep.subr.bf16.mxu0 %v6734_v21  ;;  %v6739_v8 = vld [vmem:[#allocation66_spill] sm:$0xff] }
 0x66b   :  { %2924 = vmatprep.subr.bf16.mxu1 %v5589_v37  ;;  %v6740_v37 = vld [vmem:[#allocation67_spill] sm:$0xff] }
 0x66d   :  { %2798 = vmatpush1.bf16.msra.mxu0 %v6735_v9 }
 0x66e   :  { %2925 = vmatpush1.bf16.msra.mxu1 %v5595_v58  ;;  %2799 = vmatprep.subr.bf16.mxu0 %v6736_v38  ;;  %v6741_v58 = vld [vmem:[#allocation68_spill] sm:$0xff] }
 0x66f   :  { %2926 = vmatprep.subr.bf16.mxu1 %v5601_v29  ;;  %v6742_v29 = vld [vmem:[#allocation69_spill] sm:$0xff] }
 0x671   :  { %2800 = vmatpush1.bf16.msra.mxu0 %v6737_v32 }
 0x672   :  { %2927 = vmatpush1.bf16.msra.mxu1 %v5607_v25  ;;  %2801 = vmatprep.subr.bf16.mxu0 %v6738_v24  ;;  %v6743_v25 = vld [vmem:[#allocation70_spill] sm:$0xff] }
 0x673   :  { %2928 = vmatprep.subr.bf16.mxu1 %v5613_v34  ;;  %v6744_v34 = vld [vmem:[#allocation71_spill] sm:$0xff] }
 0x675   :  { %2802 = vmatpush1.bf16.msra.mxu0 %v6739_v8 }
 0x676   :  { %2929 = vmatpush1.bf16.msra.mxu1 %v5619_v36  ;;  %2803 = vmatprep.subr.bf16.mxu0 %v6740_v37  ;;  %v6745_v36 = vld [vmem:[#allocation72_spill] sm:$0xff] }
 0x677   :  { %2930 = vmatprep.subr.bf16.mxu1 %v5625_v10  ;;  %v2699_v10 = vsel %vm1129_vm4, %v4173_v27, %v2693_v2  ;;  %v4350_v2 = vld [vmem:[%s6457_s6 + $0x50] ss:$8 sps:$4 sm:$0xff]  }
 0x678   :  { %v2704_v26 = vpack.c.bf16 %v2699_v10, %v2699_v10 }
 0x679   :  { %2804 = vmatpush1.bf16.msra.mxu0 %v6741_v58 }
 0x67a   :  { %2931 = vmatpush1.bf16.msra.mxu1 %v5631_v22  ;;  %2805 = vmatprep.subr.bf16.mxu0 %v6742_v29  ;;  %v6746_v22 = vld [vmem:[#allocation73_spill] sm:$0xff] }
 0x67b   :  { %2932 = vmatprep.subr.bf16.mxu1 %v6711_v39 }
 0x67d   :  { %2806 = vmatpush1.bf16.msra.mxu0 %v6743_v25 }
 0x67e   :  { %2933 = vmatpush1.bf16.msra.mxu1 %v6712_v40  ;;  %2807 = vmatprep.subr.bf16.mxu0 %v6744_v34 }
 0x67f   :  { %2934 = vmatprep.subr.bf16.mxu1 %v6713_v50 }
 0x681   :  { %2808 = vmatpush1.bf16.msra.mxu0 %v6745_v36 }
 0x682   :  { %2935 = vmatpush1.bf16.msra.mxu1 %v5662_v16  ;;  %2809 = vmatprep.subr.bf16.mxu0 %v6746_v22  ;;  %v6747_v16 = vld [vmem:[#allocation14_spill] sm:$0xff] }
 0x683   :  { %2936 = vmatprep.subr.bf16.mxu1 %v5668_v13  ;;  %v2852_v13 = vpop.permute.xlu0 %2851 }
 0x685   :  { %2810 = vmatpush1.bf16.msra.mxu0 %v5940_v11 }
 0x686   :  { %2937 = vmatpush1.bf16.msra.mxu1 %v5674_v14  ;;  %v2863_v14 = vsel %vm1133_vm0, %v6747_v16, %v2852_v13 }
 0x687   :  { %2938 = vmatprep.subr.bf16.mxu1 %v5680_v5  ;;  %v2859_v5 = vpop.permute.xlu0 %2858  ;;  %v2868_v27 = vpack.c.bf16 %v2863_v14, %v2863_v14 }
 0x688   :  { %2824 = vmatmul.mubr.bf16.vlgmr.msra.gmra.mrb[36].mxu0 %v2704_v26  ;;  %v2865_v30 = vsel %vm1129_vm4, %v4174_v47, %v2859_v5  ;;  %v4337_v47 = vld [vmem:[%s6457_s6 + $0x4] ss:$8 sps:$4 sm:$0xff]  }
 0x689   :  { %v2870_v62 = vpack.c.bf16 %v2865_v30, %v2865_v30  ;;  %3298 = vmatprep.subr.bf16.mxu0 %v4337_v47 }
 0x68a   :  { %2939 = vmatpush1.bf16.msra.mxu1 %v5686_v45  ;;  %v2871_v45 = vpack.c.bf16 %v2859_v5, %v2859_v5 }
 0x68b   :  { %2940 = vmatprep.subr.bf16.mxu1 %v6714_v51 }
 0x68e   :  { %2941 = vmatpush1.bf16.msra.mxu1 %v6716_v53 }
 0x68f   :  { %2942 = vmatprep.subr.bf16.mxu1 %v6718_v7 }
 0x692   :  { %2943 = vmatpush1.bf16.msra.mxu1 %v6719_v15  ;;  %v4335_v15 = vld [vmem:[%s6457_s6] ss:$8 sps:$4 sm:$0xff]  }
 0x693   :  { %2944 = vmatprep.subr.bf16.mxu1 %v6720_v44  ;;  %3299 = vmatpush1.bf16.msra.mxu0 %v4335_v15  ;;  %v4338_v44 = vld [vmem:[%s6457_s6 + $0x10] ss:$8 sps:$4 sm:$0xff]  }
 0x694   :  { %3300 = vmatprep.subr.bf16.mxu0 %v4340_v17 }
 0x696   :  { %2945 = vmatpush1.bf16.msra.mxu1 %v6724_v49  ;;  %v4347_v49 = vld [vmem:[%s6457_s6 + $0x40] ss:$8 sps:$4 sm:$0xff]  }
 0x697   :  { %2946 = vmatprep.subr.bf16.mxu1 %v6725_v59  ;;  %3301 = vmatpush1.bf16.msra.mxu0 %v4338_v44  ;;  %v4352_v59 = vld [vmem:[%s6457_s6 + $0x54] ss:$8 sps:$4 sm:$0xff]  }
 0x698   :  { %3302 = vmatprep.subr.bf16.mxu0 %v4343_v60 }
 0x69a   :  { %2947 = vmatpush1.bf16.msra.mxu1 %v6727_v33  ;;  %v4359_v33 = vld [vmem:[%s6457_s6 + $0x80] ss:$8 sps:$4 sm:$0xff]  }
 0x69b   :  { %2957 = vmatprep.subr.bf16.mxu1 %v6728_v19  ;;  %3303 = vmatpush1.bf16.msra.mxu0 %v4341_v56  ;;  %v4362_v19 = vld [vmem:[%s6457_s6 + $0x90] ss:$8 sps:$4 sm:$0xff]  }
 0x69c   :  { %3304 = vmatprep.subr.bf16.mxu0 %v4346_v41 }
 0x69d   :  { %2949 = vmatmul.mubr.bf16.vlgmr.msra.gmra.mrb[36].mxu1 %v2868_v27 }
 0x69e   :  { %2958 = vmatpush1.bf16.msra.mxu1 %v6729_v52  ;;  %3722 = vmatprep.mubr.msk.bf16.mxu1 %vm1133_vm0, %v2871_v45  ;;  %v4367_v52 = vld [vmem:[%s6457_s6 + $0xa4] ss:$8 sps:$4 sm:$0xff]  }
 0x69f   :  { %2959 = vmatprep.subr.bf16.mxu1 %v6730_v57  ;;  %3305 = vmatpush1.bf16.msra.mxu0 %v4344_v43  ;;  %v4365_v57 = vld [vmem:[%s6457_s6 + $0xa0] ss:$8 sps:$4 sm:$0xff]   ;;  %v6749_v43 = vld [vmem:[#allocation13_spill] sm:$0xff] }
 0x6a0   :  { %3306 = vmatprep.subr.bf16.mxu0 %v4349_v48 }
 0x6a2   :  { %2960 = vmatpush1.bf16.msra.mxu1 %v6731_v28  ;;  %v4370_v28 = vld [vmem:[%s6457_s6 + $0xb4] ss:$8 sps:$4 sm:$0xff]  }
 0x6a3   :  { %2961 = vmatprep.subr.bf16.mxu1 %v6732_v46  ;;  %3307 = vmatpush1.bf16.msra.mxu0 %v4347_v49  ;;  %v4368_v46 = vld [vmem:[%s6457_s6 + $0xb0] ss:$8 sps:$4 sm:$0xff]   ;;  %v4458_v49 = vmov 1966171168  }
 0x6a4   :  { %3308 = vmatprep.subr.bf16.mxu0 %v4352_v59  ;;  %v3067_v59 = vunpack.c.l.s4 %v4458_v49  ;;  %v3427_v49 = vld [vmem:[%s6468_s17 + $0x48] sm:$0xff] }
 0x6a6   :  { %2962 = vmatpush1.bf16.msra.mxu1 %v6733_v42  ;;  %v3418_v42 = vld [vmem:[%s6468_s17] sm:$0xff] }
 0x6a7   :  { %2963 = vmatprep.subr.bf16.mxu1 %v6734_v21  ;;  %3309 = vmatpush1.bf16.msra.mxu0 %v4350_v2  ;;  %v3419_v21 = vld [vmem:[%s6468_s17 + $0x8] sm:$0xff] }
 0x6a8   :  { %3310 = vmatprep.subr.bf16.mxu0 %v4355_v4 }
 0x6aa   :  { %2964 = vmatpush1.bf16.msra.mxu1 %v6735_v9  ;;  %v4457_v9 = vmov 0.0|0.0  }
 0x6ab   :  { %2965 = vmatprep.subr.bf16.mxu1 %v6736_v38  ;;  %3311 = vmatpush1.bf16.msra.mxu0 %v4353_v61  ;;  %v3963_v38 = vpack.c.bf16 %v3419_v21, %v3418_v42 }
 0x6ac   :  { %3312 = vmatprep.subr.bf16.mxu0 %v4358_v63 }
 0x6ae   :  { %2966 = vmatpush1.bf16.msra.mxu1 %v6737_v32 }
 0x6af   :  { %2967 = vmatprep.subr.bf16.mxu1 %v6738_v24  ;;  %3313 = vmatpush1.bf16.msra.mxu0 %v4356_v12 }
 0x6b0   :  { %3314 = vmatprep.subr.bf16.mxu0 %v4361_v6  ;;  %v3068_v6 = vunpack.c.0.s8 %v3067_v59 }
 0x6b2   :  { %2968 = vmatpush1.bf16.msra.mxu1 %v6739_v8 }
 0x6b3   :  { %v6185_v1 = vpop.f32.mrb[32].mxu0  ;;  %2969 = vmatprep.subr.bf16.mxu1 %v6740_v37  ;;  %3315 = vmatpush1.bf16.msra.mxu0 %v4359_v33 }
 0x6b4   :  { %v6188_v23 = vpop.f32.mrb[33].mxu0  ;;  %v2489_v55 = vmul.f32 %v6185_v1, %v6185_v1  ;;  %3316 = vmatprep.subr.bf16.mxu0 %v4364_v0 }
 0x6b5   :  { %v2482_v20 = vpop.f32.mrb[34].mxu0  ;;  %v2490_v35 = vmul.f32 %v6188_v23, %v6188_v23 }
 0x6b6   :  { %v2483_v18 = vpop.f32.mrb[35].mxu0  ;;  %2970 = vmatpush1.bf16.msra.mxu1 %v6741_v58 }
 0x6b7   :  { %2971 = vmatprep.subr.bf16.mxu1 %v6742_v29  ;;  %3317 = vmatpush1.bf16.msra.mxu0 %v4362_v19 }
 0x6b8   :  { %3318 = vmatprep.subr.bf16.mxu0 %v4367_v52 }
 0x6ba   :  { %2972 = vmatpush1.bf16.msra.mxu1 %v6743_v25 }
 0x6bb   :  { %2973 = vmatprep.subr.bf16.mxu1 %v6744_v34  ;;  %3319 = vmatpush1.bf16.msra.mxu0 %v4365_v57 }
 0x6bc   :  { %3320 = vmatprep.subr.bf16.mxu0 %v4370_v28 }
 0x6be   :  { %2974 = vmatpush1.bf16.msra.mxu1 %v6745_v36 }
 0x6bf   :  { %2975 = vmatprep.subr.bf16.mxu1 %v6746_v22  ;;  %3321 = vmatpush1.bf16.msra.mxu0 %v4368_v46 }
 0x6c2   :  { %2976 = vmatpush1.bf16.msra.mxu1 %v5940_v11 }
 0x6c3   :  { %3962 = vmatprep.subr.bf16.mxu1 %v4457_v9 }
 0x6c5   :  { %2990 = vmatmul.mubr.bf16.vlgmr.msra.gmra.mrb[36].mxu1 %v2870_v62 }
 0x6c6   :  { %3964 = vmatpush1.bf16.msra.mxu1 %v3963_v38 }
 0x6c7   :  { %3965 = vmatprep.subr.bf16.mxu1 %v4457_v9 }
 0x6f0   :  { %v6200_v31 = vpop.f32.mrb[32].mxu1 }
 0x6f1   :  { %v6206_v39 = vadd.f32 %v6200_v31, %v6185_v1  ;;  %v2655_v40 = vmul.f32 %v6200_v31, %v6200_v31  ;;  %v6210_v50 = vpop.f32.mrb[33].mxu1 }
 0x6f2   :  { %v6216_v11 = vadd.f32 %v6210_v50, %v6188_v23  ;;  %v2656_v51 = vmul.f32 %v6210_v50, %v6210_v50  ;;  %v2648_v54 = vpop.f32.mrb[34].mxu1 }
 0x6f3   :  { %v6220_v53 = vadd.f32 %v2655_v40, %v2489_v55  ;;  %v2649_v3 = vpop.f32.mrb[35].mxu1 }
 0x6f4   :  { %v6222_v7 = vadd.f32 %v2656_v51, %v2490_v35 }
 0x75b   :  { %v2825_v32 = vpop.f32.mrb[36].mxu0 }
 0x75c   :  { %v2834_v24 = vadd.f32 %v2825_v32, %v6206_v39  ;;  %v2836_v8 = vmul.f32 %v2825_v32, %v2825_v32  ;;  %v2827_v37 = vpop.f32.mrb[37].mxu0 }
 0x75d   :  { %v2835_v58 = vadd.f32 %v2827_v37, %v6216_v11  ;;  %v2837_v29 = vmul.f32 %v2827_v37, %v2827_v37  ;;  %v2829_v25 = vpop.f32.mrb[38].mxu0 }
 0x75e   :  { %v2840_v34 = vadd.f32 %v2836_v8, %v6220_v53  ;;  %v2830_v36 = vpop.f32.mrb[39].mxu0 }
 0x75f   :  { %v2841_v10 = vadd.f32 %v2837_v29, %v6222_v7 }
 0x798   :  { %v2991_v22 = vpop.f32.mrb[36].mxu1 }
 0x799   :  { %v3000_v26 = vadd.f32 %v2991_v22, %v2834_v24  ;;  %v3002_v13 = vmul.f32 %v2991_v22, %v2991_v22  ;;  %v2993_v16 = vpop.f32.mrb[37].mxu1 }
 0x79a   :  { %v3001_v14 = vadd.f32 %v2993_v16, %v2835_v58  ;;  %v3003_v5 = vmul.f32 %v2993_v16, %v2993_v16  ;;  %v2995_v45 = vpop.f32.mrb[38].mxu1 }
 0x79b   :  { %v3006_v27 = vadd.f32 %v3002_v13, %v2840_v34  ;;  %v3009_v20 = vmul.f32 0.25, %v3000_v26  ;;  %v2996_v18 = vpop.f32.mrb[39].mxu1 }
 0x79c   :  { %v3007_v30 = vadd.f32 %v3003_v5, %v2841_v10  ;;  %v3010_v62 = vmul.f32 0.25, %v3001_v14 }
 0x79d   :  { %v3011_v55 = vmul.f32 0.25, %v3006_v27  ;;  %v3013_v39 = vmul.f32 %v3009_v20, %v3009_v20  ;;  %v3036_v40 = vsub.f32 %v6185_v1, %v3009_v20  ;;  %v3053_v35 = vsub.f32 %v6200_v31, %v3009_v20  ;;  %v3021_v1 = vld [vmem:[%s6464_s13] sm:$0x3]  ;;  %v6748_v31 = vld [vmem:[#allocation12_spill] sm:$0xff]  ;;  %s4459_s13 = smov [#allocation8]  }
 0x79e   :  { %v3086_v11 = vsub.f32 %v2825_v32, %v3009_v20  ;;  %v3092_v51 = vsub.f32 %v2991_v22, %v3009_v20  ;;  %v3012_v54 = vmul.f32 0.25, %v3007_v30  ;;  %v3014_v53 = vmul.f32 %v3010_v62, %v3010_v62 }
 0x79f   :  { %v3015_v3 = vsub.f32 %v3011_v55, %v3013_v39  ;;  %v3037_v7 = vsub.f32 %v6188_v23, %v3010_v62  ;;  %v3054_v47 = vsub.f32 %v6210_v50, %v3010_v62  ;;  %v3087_v15 = vsub.f32 %v2827_v37, %v3010_v62  ;;  %v3035_v23 = vld [vmem:[%s6465_s14] sm:$0x3]  ;;  %s3559_s14 = sshll.u32 %s4459_s13, 4  ;;  %s3560_s14 = int_to_ptr.vmem [resolvable:$true] %s3559_s14 }
 0x7a0   :  { %v3016_v17 = vsub.f32 %v3012_v54, %v3014_v53  ;;  %v3093_v44 = vsub.f32 %v2993_v16, %v3010_v62  ;;  %v6316_v41 = vsub.s32 1, %v6748_v31  ;;  %v3026_v48 = vrot.slane %v3021_v1, %v6749_v43  ;;  %s4393_s10 = scalar_lea.vmem %s3560_s14, 32  ;;  %p4398_p1 = scmp.lt.s32.totalorder %s3560_s14, %s3560_s14 }
 0x7a1   :  { %v3017_v60 = vadd.f32 1e-05, %v3015_v3  ;;  %v3044_v63 = vrot.slane %v3035_v23, %v6749_v43  ;;  %v3071_v14 = vsub.s32 %v3068_v6, %v6748_v31  ;;  %v6750_v30 = vlaneseq  ;;  %v3424_v31 = vld [vmem:[%s6468_s17 + $0x30] sm:$0xff]  ;;  %p4394_p0 = scmp.ne.s32.totalorder %s3560_s14, %s4393_s10  ;;  %p4399_p2 = scmp.lt.s32.totalorder %s4393_s10, %s4393_s10 }
 0x7a2   :  { %v3018_v56 = vadd.f32 1e-05, %v3016_v17  ;;  %v3030_v50 = vrot.slane %v3021_v1, %v6316_v41  ;;  %v3048_v33 = vrot.slane %v3035_v23, %v6316_v41  ;;  %v3421_v17 = vld [vmem:[%s6468_s17 + $0x18] sm:$0xff]  ;;  %v3432_v6 = vld [vmem:[%s6468_s17 + $0x70] sm:$0xff] }
 0x7a3   :  { %4377 = vrsqrt.f32 %v3017_v60  ;;  %vm3083_vm6 = vcmp.lt.s32.totalorder %v6750_v30, 192  ;;  %v3422_v60 = vld [vmem:[%s6468_s17 + $0x20] sm:$0xff]  ;;  %p4400_p3 = por %p4399_p2, %p4398_p1 }
 0x7a4   :  { %4379 = vrsqrt.f32 %v3018_v56  ;;  %v3423_v56 = vld [vmem:[%s6468_s17 + $0x28] sm:$0xff] }
 0x7a5   :  { %v3969_v1 = vpack.c.bf16 %v3423_v56, %v3422_v60  ;;  %p4401_p4 = pnand %p4400_p3, %p4394_p0 }
 0x7ad   :  { %v4378_v2 = vpop.eup %4377 }
 0x7ae   :  { %v4380_v4 = vpop.eup %4379  ;;  %v3033_v61 = vmul.f32 %v4378_v2, %v3026_v48  ;;  %v3425_v48 = vld [vmem:[%s6468_s17 + $0x38] sm:$0xff]  ;;  %v3428_v2 = vld [vmem:[%s6468_s17 + $0x50] sm:$0xff] }
 0x7af   :  { %v3034_v12 = vmul.f32 %v4380_v4, %v3030_v50  ;;  %v3972_v23 = vpack.c.bf16 %v3425_v48, %v3424_v31  ;;  %v3426_v50 = vld [vmem:[%s6468_s17 + $0x40] sm:$0xff]  ;;  %v3429_v4 = vld [vmem:[%s6468_s17 + $0x58] sm:$0xff] }
 0x7b0   :  { %v3038_v0 = vmul.f32 %v3036_v40, %v3033_v61  ;;  %v3055_v19 = vmul.f32 %v3053_v35, %v3033_v61  ;;  %v3088_v52 = vmul.f32 %v3086_v11, %v3033_v61  ;;  %v3094_v57 = vmul.f32 %v3092_v51, %v3033_v61 }
 0x7b1   :  { %v3039_v28 = vmul.f32 %v3037_v7, %v3034_v12  ;;  %v3056_v46 = vmul.f32 %v3054_v47, %v3034_v12  ;;  %v3089_v42 = vmul.f32 %v3087_v15, %v3034_v12  ;;  %v3095_v21 = vmul.f32 %v3093_v44, %v3034_v12  ;;  %v3420_v15 = vld [vmem:[%s6468_s17 + $0x10] sm:$0xff]  ;;  %v3431_v12 = vld [vmem:[%s6468_s17 + $0x68] sm:$0xff] }
 0x7b2   :  { %v3051_v38 = vadd.f32 %v3044_v63, %v3038_v0  ;;  %v3057_v32 = vadd.f32 %v3055_v19, %v3044_v63  ;;  %v3090_v24 = vadd.f32 %v3088_v52, %v3044_v63  ;;  %v3096_v8 = vadd.f32 %v3094_v57, %v3044_v63  ;;  %v3430_v63 = vld [vmem:[%s6468_s17 + $0x60] sm:$0xff]  ;;  %v3433_v0 = vld [vmem:[%s6468_s17 + $0x78] sm:$0xff]  ;;  %v3435_v57 = vld [vmem:[%s6468_s17 + $0x88] sm:$0xff] }
 0x7b3   :  { %v3052_v37 = vadd.f32 %v3048_v33, %v3039_v28  ;;  %v3058_v58 = vadd.f32 %v3056_v46, %v3048_v33  ;;  %v3091_v29 = vadd.f32 %v3089_v42, %v3048_v33  ;;  %v3097_v25 = vadd.f32 %v3095_v21, %v3048_v33  ;;  %v3434_v52 = vld [vmem:[%s6468_s17 + $0x80] sm:$0xff]  ;;  %v3436_v46 = vld [vmem:[%s6468_s17 + $0x90] sm:$0xff]  ;;  %v3437_v42 = vld [vmem:[%s6468_s17 + $0x98] sm:$0xff] }
 0x7b4   :  { %v3059_v34 = vmax.f32 %v3051_v38, %v3057_v32  ;;  %v3098_v36 = vmax.f32 %v3090_v24, %v3096_v8  ;;  %v3966_v44 = vpack.c.bf16 %v3421_v17, %v3420_v15  ;;  %v3975_v59 = vpack.c.bf16 %v3427_v49, %v3426_v50  ;;  %v3438_v38 = vld [vmem:[%s6468_s17 + $0xa0] sm:$0xff]  ;;  %v3439_v32 = vld [vmem:[%s6468_s17 + $0xa8] sm:$0xff]  ;;  %v3440_v8 = vld [vmem:[%s6468_s17 + $0xb0] sm:$0xff] }
 0x7b5   :  { %v3060_v10 = vmax.f32 %v3052_v37, %v3058_v58  ;;  %v3099_v22 = vmax.f32 %v3091_v29, %v3097_v25  ;;  %v3978_v61 = vpack.c.bf16 %v3429_v4, %v3428_v2  ;;  %v3981_v33 = vpack.c.bf16 %v3431_v12, %v3430_v63  ;;  %v3441_v37 = vld [vmem:[%s6468_s17 + $0xb8] sm:$0xff]  ;;  %v3388_v63 = vld [vmem:[%s6466_s15] sm:$0x3] }
 0x7b6   :  { %v3061_v26 = vmax.f32 %v3059_v34, 0.0  ;;  %v3100_v13 = vmax.f32 %v3098_v36, 0.0  ;;  %3967 = vmatpush1.bf16.msra.mxu1 %v3966_v44  ;;  %v3984_v19 = vpack.c.bf16 %v3433_v0, %v3432_v6  ;;  %v3987_v28 = vpack.c.bf16 %v3435_v57, %v3434_v52  ;;  %v3402_v12 = vld [vmem:[%s6467_s16] sm:$0x3] }
 0x7b7   :  { %v3062_v16 = vmax.f32 %v3060_v10, 0.0  ;;  %v3101_v5 = vmax.f32 %v3099_v22, 0.0  ;;  %3968 = vmatprep.subr.bf16.mxu1 %v4457_v9  ;;  %v3990_v21 = vpack.c.bf16 %v3437_v42, %v3436_v46  ;;  %v3993_v24 = vpack.c.bf16 %v3439_v32, %v3438_v38 }
 0x7b8   :  { %v3996_v58 = vpack.c.bf16 %v3441_v37, %v3440_v8  ;;  %v3393_v6 = vrot.slane %v3388_v63, %v6749_v43  ;;  %v3397_v52 = vrot.slane %v3388_v63, %v6316_v41  ;;  %v3407_v46 = vrot.slane %v3402_v12, %v6749_v43 }
 0x7b9   :  { %v3065_v45 = vcombine.low %v3061_v26, %v3062_v16  ;;  %v3104_v27 = vcombine.low %v3100_v13, %v3101_v5 }
 0x7ba   :  { %3970 = vmatpush1.bf16.msra.mxu1 %v3969_v1 }
 0x7bb   :  { %v3072_v20 = vrot.slane %v3065_v45, %v3071_v14  ;;  %v3111_v18 = vrot.slane %v3104_v27, %v3071_v14  ;;  %3971 = vmatprep.subr.bf16.mxu1 %v4457_v9 }
 0x7bd   :  { %v3079_v62 = vrot.slane %v3072_v20, %v3071_v14  ;;  %v3118_v55 = vrot.slane %v3111_v18, %v3071_v14 }
 0x7be   :  { %3973 = vmatpush1.bf16.msra.mxu1 %v3972_v23 }
 0x7bf   :  { %3085 = vst.msk [vmem:[#allocation5] ss:$2 sm:$0x3] %vm3083_vm6, %v3079_v62  ;;  %3121 = vst.msk [vmem:[#allocation5 + $0x1] ss:$2 sm:$0x3] %vm3083_vm6, %v3118_v55  ;;  %3974 = vmatprep.subr.bf16.mxu1 %v4457_v9 }
 0x7c2   :  { %3976 = vmatpush1.bf16.msra.mxu1 %v3975_v59 }
 0x7c3   :  { %3977 = vmatprep.subr.bf16.mxu1 %v4457_v9 }
 0x7c6   :  { %v3122_v39 = vld [vmem:[#allocation5] ss:$2 sm:$0x3]  ;;  %v3123_v40 = vld [vmem:[#allocation5 + $0x1] ss:$2 sm:$0x3]  ;;  %3979 = vmatpush1.bf16.msra.mxu1 %v3978_v61 }
 0x7c7   :  { %v3132_v35 = vrot.slane %v3122_v39, %v6316_v41  ;;  %v3143_v11 = vrot.slane %v3123_v40, %v6316_v41  ;;  %v3128_v51 = vrot.slane %v3122_v39, %v6749_v43  ;;  %v3139_v54 = vrot.slane %v3123_v40, %v6749_v43  ;;  %3980 = vmatprep.subr.bf16.mxu1 %v4457_v9 }
 0x7c9   :  { %v3148_v53 = vsel %vm3146_vm7, %v3132_v35, %v3143_v11  ;;  %v3147_v3 = vsel %vm3146_vm7, %v3128_v51, %v3139_v54 }
 0x7ca   :  { %v3150_v7 = vpack.c.bf16 %v3148_v53, %v3148_v53  ;;  %v3149_v47 = vpack.c.bf16 %v3147_v3, %v3147_v3  ;;  %3982 = vmatpush1.bf16.msra.mxu1 %v3981_v33 }
 0x7cb   :  { %3983 = vmatprep.subr.bf16.mxu1 %v4457_v9 }
 0x7cc   :  { %3747 = vmatprep.mubr.msk.bf16.mxu0 %vm1129_vm4, %v3150_v7 }
 0x7cd   :  { %3331 = vmatmul.mubr.bf16.vlgmr.msra.gmra.mrb[40].mxu0 %v3149_v47 }
 0x7ce   :  { %3985 = vmatpush1.bf16.msra.mxu1 %v3984_v19 }
 0x7cf   :  { %3986 = vmatprep.subr.bf16.mxu1 %v4457_v9 }
 0x7d2   :  { %3988 = vmatpush1.bf16.msra.mxu1 %v3987_v28 }
 0x7d3   :  { %3989 = vmatprep.subr.bf16.mxu1 %v4457_v9 }
 0x7d6   :  { %3991 = vmatpush1.bf16.msra.mxu1 %v3990_v21  ;;  %v3411_v21 = vrot.slane %v3402_v12, %v6316_v41 }
 0x7d7   :  { %3992 = vmatprep.subr.bf16.mxu1 %v4457_v9 }
 0x7da   :  { %3994 = vmatpush1.bf16.msra.mxu1 %v3993_v24 }
 0x7db   :  { %3995 = vmatprep.subr.bf16.mxu1 %v4457_v9 }
 0x7de   :  { %3997 = vmatpush1.bf16.msra.mxu1 %v3996_v58 }
 0x8a0   :  { %v3332_v29 = vpop.f32.mrb[40].mxu0 }
 0x8a1   :  { %v3340_v25 = vsel %vm3339_vm8, %v3332_v29, 0.0  ;;  %v3358_v34 = vmul.f32 %v3332_v29, %v3332_v29  ;;  %v3334_v36 = vpop.f32.mrb[41].mxu0 }
 0x8a2   :  { %v3341_v10 = vrot.slane %v3340_v25, 4  ;;  %v3348_v22 = vsel %vm3347_vm9, %v3334_v36, 0.0  ;;  %v3359_v26 = vmul.f32 %v3334_v36, %v3334_v36  ;;  %v3336_v13 = vpop.f32.mrb[42].mxu0 }
 0x8a3   :  { %v3360_v16 = vsel %vm3339_vm8, %v3358_v34, 0.0  ;;  %v3349_v14 = vrot.slane %v3348_v22, 4  ;;  %v3337_v5 = vpop.f32.mrb[43].mxu0 }
 0x8a4   :  { %v3342_v45 = vadd.f32 %v3341_v10, %v3340_v25  ;;  %v3361_v27 = vrot.slane %v3360_v16, 4  ;;  %v3367_v20 = vsel %vm3347_vm9, %v3359_v26, 0.0  ;;  %v3748_v10 = vld [vmem:[%s6469_s18] ss:$0 sm:$0xff] }
 0x8a5   :  { %v3350_v18 = vadd.f32 %v3349_v14, %v3348_v22  ;;  %v3368_v30 = vrot.slane %v3367_v20, 4 }
 0x8a6   :  { %v3343_v9 = vrot.slane %v3342_v45, 2  ;;  %v3362_v62 = vadd.f32 %v3361_v27, %v3360_v16 }
 0x8a7   :  { %v3351_v55 = vrot.slane %v3350_v18, 2  ;;  %v3369_v39 = vadd.f32 %v3368_v30, %v3367_v20 }
 0x8a8   :  { %v3344_v40 = vadd.f32 %v3343_v9, %v3342_v45  ;;  %v3363_v35 = vrot.slane %v3362_v62, 2 }
 0x8a9   :  { %v3352_v11 = vadd.f32 %v3351_v55, %v3350_v18  ;;  %v3370_v51 = vrot.slane %v3369_v39, 2 }
 0x8aa   :  { %v3345_v54 = vrot.slane %v3344_v40, 1  ;;  %v3364_v53 = vadd.f32 %v3363_v35, %v3362_v62 }
 0x8ab   :  { %v3353_v3 = vrot.slane %v3352_v11, 1  ;;  %v3371_v7 = vadd.f32 %v3370_v51, %v3369_v39 }
 0x8ac   :  { %v3346_v47 = vadd.f32 %v3345_v54, %v3344_v40  ;;  %v3365_v15 = vrot.slane %v3364_v53, 1 }
 0x8ad   :  { %v3354_v17 = vadd.f32 %v3353_v3, %v3352_v11  ;;  %v3372_v44 = vrot.slane %v3371_v7, 1 }
 0x8ae   :  { %v3356_v60 = vmul.f32 0.5, %v3346_v47  ;;  %v3366_v56 = vadd.f32 %v3365_v15, %v3364_v53 }
 0x8af   :  { %v3357_v1 = vmul.f32 0.5, %v3354_v17  ;;  %v3373_v31 = vadd.f32 %v3372_v44, %v3371_v7 }
 0x8b0   :  { %v3374_v48 = vmul.f32 0.5, %v3366_v56  ;;  %v3376_v23 = vmul.f32 %v3356_v60, %v3356_v60  ;;  %v3380_v33 = vsub.f32 %v3332_v29, %v3356_v60  ;;  %v3522_v29 = vld [vmem:[%s6751_s9] sm:$0x3] }
 0x8b1   :  { %v3375_v50 = vmul.f32 0.5, %v3373_v31  ;;  %v3377_v49 = vmul.f32 %v3357_v1, %v3357_v1  ;;  %v3381_v19 = vsub.f32 %v3334_v36, %v3357_v1  ;;  %v3523_v25 = vmax.f32 %v3522_v29, 1e-08 }
 0x8b2   :  { %v3378_v59 = vsub.f32 %v3374_v48, %v3376_v23 }
 0x8b3   :  { %v3379_v2 = vsub.f32 %v3375_v50, %v3377_v49  ;;  %v3524_v34 = vmin.f32 %v3523_v25, 1.0 }
 0x8b4   :  { %v3382_v4 = vadd.f32 1e-05, %v3378_v59 }
 0x8b5   :  { %v3383_v61 = vadd.f32 1e-05, %v3379_v2  ;;  %v3528_v36 = vsub.f32 1.0, %v3524_v34 }
 0x8b6   :  { %4381 = vrsqrt.f32 %v3382_v4 }
 0x8b7   :  { %4383 = vrsqrt.f32 %v3383_v61 }
 0x8b8   :  { %4385 = vlog2.f32 %v3524_v34 }
 0x8b9   :  { %4387 = vlog2.f32 %v3528_v36 }
 0x8c0   :  { %v4382_v0 = vpop.eup %4381 }
 0x8c1   :  { %v4384_v57 = vpop.eup %4383  ;;  %v3386_v28 = vmul.f32 %v4382_v0, %v3380_v33 }
 0x8c2   :  { %v3387_v42 = vmul.f32 %v4384_v57, %v3381_v19  ;;  %v4386_v43 = vpop.eup %4385 }
 0x8c3   :  { %v3400_v38 = vmul.f32 %v3393_v6, %v3386_v28  ;;  %v4388_v41 = vpop.eup %4387  ;;  %v3526_v22 = vmul.f32 0.6931472, %v4386_v43 }
 0x8c4   :  { %v3401_v32 = vmul.f32 %v3397_v52, %v3387_v42  ;;  %v3530_v16 = vmul.f32 0.6931472, %v4388_v41 }
 0x8c5   :  { %v3414_v24 = vadd.f32 %v3407_v46, %v3400_v38 }
 0x8c6   :  { %v3415_v8 = vadd.f32 %v3411_v21, %v3401_v32 }
 0x8c7   :  { %v3416_v58 = vmax.f32 %v3414_v24, 0.0 }
 0x8c8   :  { %v3417_v37 = vmax.f32 %v3415_v8, 0.0 }
 0x8ca   :  { %3749 = vmatprep.mubr.msk.f32.mxu1 %vm1129_vm4, %v3417_v37 }
 0x8cb   :  { %3517 = vmatmul.mubr.f32.vlgmr.msra.gmra.mrb[40].mxu1 %v3416_v58 }
 0x99e   :  { %v3518_v26 = vpop.f32.mrb[40].mxu1 }
 0x99f   :  { %v3519_v13 = vadd.f32 %v3748_v10, %v3518_v26  ;;  %v3520_v14 = vpop.f32.mrb[41].mxu1 }
 0x9a1   :  { %v3527_v5 = vadd.f32 %v3526_v22, %v3519_v13  ;;  %3542 = vst.msk [vmem:[#allocation8] sm:$0x3] %vm3540_vm10, %v3519_v13 }
 0x9a2   :  { %4404 = shalt.err (!%p4401_p4)
}
 0x9a3   :  { %s4405_s28 = scalar_lea.hbm %s6471_s20, 32 }
 0x9a4   :  { %p4406_p5 = scmp.ne.s32.totalorder %s6471_s20, %s4405_s28  ;;  %p4409_p6 = scmp.lt.u32.totalorder %s4405_s28, %s6471_s20 }
 0x9a6   :  { %p4411_p7 = pnand %p4409_p6, %p4406_p5 }
 0x9a8   :  { %4414 = shalt.err (!%p4411_p7)
}
 0x9a9   :  { %3562 = dma.vmem_to_hbm [thread:$0]  %s3560_s14, 32, %s6471_s20, [#allocation9]   ;;  %v3531_v45 = vsub.f32 %v3527_v5, %v3530_v16 }
 0x9aa   :  { %s4460_s0 = smov [#allocation6]  }
 0x9ab   :  { %v3533_v27 = vmul.f32 2.0, %v3531_v45  ;;  %s3549_s11 = sshll.u32 %s4460_s0, 4  ;;  %s3550_s11 = int_to_ptr.vmem [resolvable:$true] %s3549_s11 }
 0x9ac   :  { %s4415_s5 = scalar_lea.vmem %s3550_s11, 32  ;;  %p4420_p9 = scmp.lt.s32.totalorder %s3550_s11, %s3550_s11 }
 0x9ad   :  { %v3534_v20 = vsub.f32 0.0, %v3533_v27  ;;  %p4416_p8 = scmp.ne.s32.totalorder %s3550_s11, %s4415_s5  ;;  %p4421_p10 = scmp.lt.s32.totalorder %s4415_s5, %s4415_s5 }
 0x9af   :  { %v3535_v18 = vmul.f32 1.442695, %v3534_v20  ;;  %p4422_p11 = por %p4421_p10, %p4420_p9 }
 0x9b1   :  { %4389 = vpow2.f32 %v3535_v18  ;;  %p4423_p12 = pnand %p4422_p11, %p4416_p8 }
 0x9bb   :  { %v4390_v30 = vpop.eup %4389 }
 0x9bc   :  { %v3537_v9 = vadd.f32 1.0, %v4390_v30 }
 0x9be   :  { %4391 = vrcp.f32 %v3537_v9 }
 0x9c8   :  { %v4392_v62 = vpop.eup %4391 }
 0x9c9   :  { %3541 = vst.msk [vmem:[#allocation6] sm:$0x3] %vm3540_vm10, %v4392_v62 }
 0x9ca   :  { %4426 = shalt.err (!%p4423_p12)
}
 0x9cb   :  { %s4427_s8 = scalar_lea.hbm %s6470_s19, 32 }
 0x9cc   :  { %p4428_p13 = scmp.ne.s32.totalorder %s6470_s19, %s4427_s8  ;;  %p4431_p0 = scmp.lt.u32.totalorder %s4427_s8, %s6470_s19 }
 0x9ce   :  { %p4433_p1 = pnand %p4431_p0, %p4428_p13 }
 0x9d0   :  { %4436 = shalt.err (!%p4433_p1)
}
 0x9d1   :  { %3552 = dma.vmem_to_hbm [thread:$0]  %s3550_s11, 32, %s6470_s19, [#allocation7]  }
 0x9d2   :  { %4437 = dma.done.wait [#allocation7], 32  }
 0x9d3   :  { %4438 = vsyncadd [#allocation7], 4294967264 }
 0x9d4   :  { %4439 = dma.done.wait [#allocation9], 32  }
 0x9d5   :  { %4440 = vsyncadd [#allocation9], 4294967264 }
 0x9d6   :  { %3569 = vsyncpa [#allocation7], 1 }
 0x9d7   :  { %3570 = vsyncpa [#allocation9], 1 }

</bundles_post_ra>
